<compile_context>
chip_gen: v6e
topology: v6e:2x2x1
jax: 0.10.0
libtpu: 0.0.40
codegen_flags: <defaults>
</compile_context>

<pallas_src>
import jax
import jax.numpy as jnp
from jax.experimental import pallas as pl
from jax.experimental.pallas import tpu as pltpu


_TAPS = tuple((dy, dx) for dy in range(3) for dx in range(3))   # dy-major 3x3 taps


def _downsample_even(y):
    """Keep even rows/cols of a (B, H, W, C) value (stride-2 output selection).

    Uses only static unit slices + concatenation (no strided slicing, no exotic
    reshapes) so it lowers under Mosaic and the Pallas interpreter alike.
    """
    _, h, w, _ = y.shape
    y = jnp.concatenate([y[:, 2 * i:2 * i + 1] for i in range(h // 2)], axis=1)
    y = jnp.concatenate([y[:, :, 2 * j:2 * j + 1] for j in range(w // 2)], axis=2)
    return y


def _make_fused_kernel(cfg, compute_dtype):
    """Build the fused kernel for a static per-layer geometry list.

    cfg[i]: dict(stride, h_in, w_in, h_out, w_out, c_in, c_out) -- Python ints.
    Ref order: x_cols, (w0, s0), (w1, s1), ..., out, act_scratch_1..act_scratch_{L-1}.
    """
    n_layers = len(cfg)

    def kernel(*refs):
        x_ref = refs[0]                        # (B, H0*W0, 9*C0): pre-im2col'd input
        o_ref = refs[1 + 2 * n_layers]         # (1, B, C_final)
        act = refs[2 + 2 * n_layers:]          # halo-padded VMEM buffers, layers 1..L-1

        c0 = cfg[0]
        B = x_ref.shape[0]

        # ---- layer 0: single dense matmul on the pre-built im2col tile ----------
        w_ref, s_ref = refs[1], refs[2]
        m0 = B * c0["h_out"] * c0["w_out"]
        acc = jnp.dot(x_ref[...].reshape(m0, 9 * c0["c_in"]), w_ref[...],
                      preferred_element_type=jnp.float32)
        y = jnp.maximum(acc + s_ref[...], 0.0)                 # folded BN shift + ReLU
        y = y.reshape(B, c0["h_out"], c0["w_out"], c0["c_out"])

        # ---- layers 1..L-1 -------------------------------------------------------
        for li in range(1, n_layers):
            c = cfg[li]
            w_ref, s_ref = refs[1 + 2 * li], refs[2 + 2 * li]
            a = act[li - 1]
            hi, wi, ci, co = c["h_in"], c["w_in"], c["c_in"], c["c_out"]

            # Zero only the 1-wide halo strips (interior is fully overwritten).
            zrow = jnp.zeros((B, 1, wi + 2, ci), compute_dtype)
            zcol = jnp.zeros((B, hi + 2, 1, ci), compute_dtype)
            a[:, 0:1] = zrow
            a[:, hi + 1:hi + 2] = zrow
            a[:, :, 0:1] = zcol
            a[:, :, wi + 1:wi + 2] = zcol
            # Drop the previous layer's activations into the interior.
            a[:, 1:hi + 1, 1:wi + 1, :] = y.astype(compute_dtype)

            # im2col: 9 contiguous tap slices stacked along the contraction axis
            # -> ONE MXU matmul per layer (K = 9*ci), computed at stride 1.
            taps = jnp.concatenate(
                [a[:, dy:dy + hi, dx:dx + wi, :] for dy, dx in _TAPS], axis=-1)
            acc = jnp.dot(taps.reshape(B * hi * wi, 9 * ci), w_ref[...],
                          preferred_element_type=jnp.float32)
            y = acc.reshape(B, hi, wi, co)
            if c["stride"] == 2:
                y = _downsample_even(y)                         # stride-2 selection
            y = jnp.maximum(y + s_ref[...].reshape(1, 1, 1, co), 0.0)

        # AdaptiveAvgPool2d((1,1)) + Flatten: 1/(H*W) is folded into the last layer,
        # so pooling is a plain spatial sum.  Lane-dense (B, 128) store.
        pooled = jnp.sum(y, axis=(1, 2))
        o_ref[...] = pooled[None].astype(o_ref.dtype)

    return kernel


def feature_nn_forward(x_nchw, layer_params, *, batch_block=1, use_bf16=True):
    """Fused eval-mode FeatureNN forward.

    layer_params[i]: dict(w=(9*Cin, Cout) BN-scale-folded weights, shift=(1, Cout),
    stride=int).  The last layer's w/shift additionally carry the 1/(H_out*W_out)
    average-pool factor.
    """
    compute_dtype = jnp.bfloat16 if use_bf16 else jnp.float32
    x = jnp.transpose(x_nchw, (0, 2, 3, 1)).astype(jnp.float32)        # NCHW -> NHWC
    n, h, w, c = x.shape
    b = int(batch_block)
    assert n % b == 0, "batch_block must divide the batch size"

    # Static per-layer geometry.
    cfg = []
    h_in, w_in, c_in = h, w, c
    for p in layer_params:
        s = int(p["stride"])
        h_out = (h_in + 2 - 3) // s + 1
        w_out = (w_in + 2 - 3) // s + 1
        c_out = p["w"].shape[1]
        cfg.append(dict(stride=s, h_in=h_in, w_in=w_in, h_out=h_out, w_out=w_out,
                        c_in=c_in, c_out=c_out))
        h_in, w_in, c_in = h_out, w_out, c_out

    # Layer-0 im2col in plain XLA (tiny): dense (N, H0out*W0out, 9*C0) kernel input.
    c0 = cfg[0]
    s0 = c0["stride"]
    xp = jnp.pad(x, ((0, 0), (1, 1), (1, 1), (0, 0)))
    cols = [xp[:, dy:dy + s0 * (c0["h_out"] - 1) + 1:s0,
               dx:dx + s0 * (c0["w_out"] - 1) + 1:s0, :]
            for dy, dx in _TAPS]
    x_cols = jnp.concatenate(cols, axis=-1).reshape(
        n, c0["h_out"] * c0["w_out"], 9 * c0["c_in"]).astype(compute_dtype)

    kernel = _make_fused_kernel(cfg, compute_dtype)

    m_img = c0["h_out"] * c0["w_out"]
    in_specs = [pl.BlockSpec((b, m_img, 9 * c0["c_in"]), lambda i: (i, 0, 0))]
    args = [x_cols]
    for p in layer_params:
        w_mat = p["w"].astype(compute_dtype)          # bf16 MXU operands, f32 accumulate
        shift = p["shift"].astype(jnp.float32)        # epilogue stays f32
        in_specs.append(pl.BlockSpec(w_mat.shape, lambda i: (0, 0)))
        in_specs.append(pl.BlockSpec(shift.shape, lambda i: (0, 0)))
        args += [w_mat, shift]

    # One halo-padded VMEM activation buffer per layer input (layers 1..L-1).
    scratch = [pltpu.VMEM((b, cc["h_in"] + 2, cc["w_in"] + 2, cc["c_in"]), compute_dtype)
               for cc in cfg[1:]]

    c_final = cfg[-1]["c_out"]
    out = pl.pallas_call(
        kernel,
        out_shape=jax.ShapeDtypeStruct((n // b, b, c_final), jnp.float32),
        grid=(n // b,),
        in_specs=in_specs,
        out_specs=pl.BlockSpec((1, b, c_final), lambda i: (i, 0, 0)),
        scratch_shapes=scratch,
        compiler_params=pltpu.CompilerParams(
            dimension_semantics=("parallel",),
            vmem_limit_bytes=32 * 1024 * 1024),
    )(*args)
    return out.reshape(n, c_final)                                      # nn.Flatten()


# ----------------------------------------------------------------------------- params


def xavier_uniform_conv(key, c_out, c_in, kh=3, kw=3):
    fan_in, fan_out = c_in * kh * kw, c_out * kh * kw
    bound = (6.0 / (fan_in + fan_out)) ** 0.5
    return jax.random.uniform(key, (c_out, c_in, kh, kw), jnp.float32, -bound, bound)


def fold_conv_bn(w_torch, conv_bias, gamma, beta, r_mean, r_var, eps, extra_scale=1.0):
    """Fold eval-mode BatchNorm (and optional pooling 1/HW) into conv weights/shift.

    Returns (w_mat, shift): w_mat is (9*Cin, Cout) with rows ordered (dy, dx, Cin) to
    match the kernel's tap layout; shift is (1, Cout).
    """
    c_out, c_in = w_torch.shape[0], w_torch.shape[1]
    w_mat = jnp.transpose(w_torch, (2, 3, 1, 0)).reshape(9 * c_in, c_out)
    bn_scale = gamma / jnp.sqrt(r_var + eps)
    scale = bn_scale * extra_scale
    shift = (beta + (conv_bias - r_mean) * bn_scale) * extra_scale
    return w_mat * scale[None, :], shift.reshape(1, c_out)


def reference_forward(x_nchw, torch_params):
    """Pure-JAX reference (lax conv, explicit eval-mode BN) for the correctness check."""
    x = x_nchw
    for p in torch_params:
        x = jax.lax.conv_general_dilated(
            x, p["w_torch"], window_strides=(p["stride"],) * 2,
            padding=((1, 1), (1, 1)),
            dimension_numbers=("NCHW", "OIHW", "NCHW"),
            precision=jax.lax.Precision.HIGHEST)
        x = x + p["bias"][None, :, None, None]
        x = (x - p["mean"][None, :, None, None]) / jnp.sqrt(
            p["var"][None, :, None, None] + p["eps"])
        x = x * p["gamma"][None, :, None, None] + p["beta"][None, :, None, None]
        x = jnp.maximum(x, 0.0)
        # Dropout(p=0.2) is identity in eval mode.
    return jnp.mean(x, axis=(2, 3))                 # AdaptiveAvgPool2d((1,1)) + Flatten


if __name__ == "__main__":
    N, C, H, W = 2, 4, 16, 16
    base_channels, num_conv_layers = 32, 3
    eps = 1e-5

    key = jax.random.PRNGKey(0)
    kx, *kws = jax.random.split(key, 1 + num_conv_layers)
    x = jax.random.normal(kx, (N, C, H, W), jnp.float32)

    layer_params, torch_params = [], []
    in_ch, h_cur, w_cur = C, H, W
    for i in range(num_conv_layers):
        out_ch = base_channels * 2 ** i
        stride = 1 if i == 0 else 2
        w_torch = xavier_uniform_conv(kws[i], out_ch, in_ch)
        conv_bias = jnp.zeros((out_ch,), jnp.float32)      # init_weights: constant_(bias, 0)
        gamma = jnp.ones((out_ch,), jnp.float32)           # BatchNorm2d weight = 1
        beta = jnp.zeros((out_ch,), jnp.float32)           # BatchNorm2d bias = 0
        r_mean = jnp.zeros((out_ch,), jnp.float32)
        r_var = jnp.ones((out_ch,), jnp.float32)

        h_cur = (h_cur + 2 - 3) // stride + 1
        w_cur = (w_cur + 2 - 3) // stride + 1
        extra = 1.0 / (h_cur * w_cur) if i == num_conv_layers - 1 else 1.0  # fold avg-pool

        w_mat, shift = fold_conv_bn(w_torch, conv_bias, gamma, beta,
                                    r_mean, r_var, eps, extra_scale=extra)
        layer_params.append(dict(w=w_mat, shift=shift, stride=stride))
        torch_params.append(dict(w_torch=w_torch, bias=conv_bias, gamma=gamma, beta=beta,
                                 mean=r_mean, var=r_var, eps=eps, stride=stride))
        in_ch = out_ch

    # batch_block=1 keeps grid=(2,) -> both v7x TensorCores busy under "parallel".
    out = jax.block_until_ready(
        feature_nn_forward(x, layer_params, batch_block=1, use_bf16=True))
    ref = jax.block_until_ready(reference_forward(x, torch_params))

    assert out.shape == (N, base_channels * 2 ** (num_conv_layers - 1))
    tol = 5e-2   # bf16 MXU operands vs f32 HIGHEST-precision reference
    if not jnp.allclose(out, ref, atol=tol, rtol=tol):
        max_err = jnp.max(jnp.abs(out - ref))
        raise AssertionError(f"Pallas output does not match reference (max abs err {max_err})")
    print("KERNEL_OK")
</pallas_src>

<mosaic_0001>
module attributes {stable_mosaic.version = 11 : i64} {
  func.func @kernel(%arg0: i32, %arg1: memref<1x256x36xbf16, #tpu.memory_space<vmem>>, %arg2: memref<36x32xbf16, #tpu.memory_space<vmem>>, %arg3: memref<1x32xf32, #tpu.memory_space<vmem>>, %arg4: memref<288x64xbf16, #tpu.memory_space<vmem>>, %arg5: memref<1x64xf32, #tpu.memory_space<vmem>>, %arg6: memref<576x128xbf16, #tpu.memory_space<vmem>>, %arg7: memref<1x128xf32, #tpu.memory_space<vmem>>, %arg8: memref<1x1x128xf32, #tpu.memory_space<vmem>>, %arg9: memref<1x18x18x32xbf16, #tpu.memory_space<vmem>>, %arg10: memref<1x10x10x64xbf16, #tpu.memory_space<vmem>>) attributes {dimension_semantics = [#tpu.dimension_semantics<parallel>], iteration_bounds = array<i64: 2>, scalar_prefetch = 0 : i64, scratch_operands = 2 : i64, tpu.core_type = #tpu.core_type<tc>, window_params = [{transform_indices = @transform_0, window_bounds = array<i64: 1, 256, 36>}, {pipeline_mode = #tpu.pipeline_mode<synchronous>, transform_indices = @transform_1, window_bounds = array<i64: 36, 32>}, {pipeline_mode = #tpu.pipeline_mode<synchronous>, transform_indices = @transform_2, window_bounds = array<i64: 1, 32>}, {pipeline_mode = #tpu.pipeline_mode<synchronous>, transform_indices = @transform_3, window_bounds = array<i64: 288, 64>}, {pipeline_mode = #tpu.pipeline_mode<synchronous>, transform_indices = @transform_4, window_bounds = array<i64: 1, 64>}, {pipeline_mode = #tpu.pipeline_mode<synchronous>, transform_indices = @transform_5, window_bounds = array<i64: 576, 128>}, {pipeline_mode = #tpu.pipeline_mode<synchronous>, transform_indices = @transform_6, window_bounds = array<i64: 1, 128>}, {transform_indices = @transform_7, window_bounds = array<i64: 1, 1, 128>}]} {
    %c0 = arith.constant 0 : index
    %c0_0 = arith.constant 0 : index
    %c0_1 = arith.constant 0 : index
    %0 = vector.load %arg1[%c0, %c0_0, %c0_1] : memref<1x256x36xbf16, #tpu.memory_space<vmem>>, vector<1x256x36xbf16>
    %1 = vector.shape_cast %0 : vector<1x256x36xbf16> to vector<256x36xbf16>
    %c0_2 = arith.constant 0 : index
    %c0_3 = arith.constant 0 : index
    %2 = vector.load %arg2[%c0_2, %c0_3] : memref<36x32xbf16, #tpu.memory_space<vmem>>, vector<36x32xbf16>
    %cst = arith.constant dense<0.000000e+00> : vector<256x32xf32>
    %3 = tpu.matmul %1, %2, %cst {dimension_numbers = #tpu.dot_dimension_numbers<[1], [0], [0], [1], [0, 0, 1, 1], [], []>} : vector<256x36xbf16>, vector<36x32xbf16>, vector<256x32xf32> -> vector<256x32xf32>
    %c0_4 = arith.constant 0 : index
    %c0_5 = arith.constant 0 : index
    %4 = vector.load %arg3[%c0_4, %c0_5] : memref<1x32xf32, #tpu.memory_space<vmem>>, vector<1x32xf32>
    %5 = vector.broadcast %4 : vector<1x32xf32> to vector<256x32xf32>
    %6 = arith.addf %3, %5 : vector<256x32xf32>
    %cst_6 = arith.constant 0.000000e+00 : f32
    %7 = vector.broadcast %cst_6 : f32 to vector<256x32xf32>
    %8 = arith.maximumf %6, %7 : vector<256x32xf32>
    %9 = vector.shape_cast %8 : vector<256x32xf32> to vector<1x16x16x32xf32>
    %cst_7 = arith.constant 0.000000e+00 : bf16
    %10 = vector.broadcast %cst_7 : bf16 to vector<1x1x18x32xbf16>
    %cst_8 = arith.constant 0.000000e+00 : bf16
    %11 = vector.broadcast %cst_8 : bf16 to vector<1x18x1x32xbf16>
    %c0_9 = arith.constant 0 : index
    %c0_10 = arith.constant 0 : index
    %c0_11 = arith.constant 0 : index
    %c0_12 = arith.constant 0 : index
    %12 = vector.load %arg9[%c0_9, %c0_10, %c0_11, %c0_12] : memref<1x18x18x32xbf16, #tpu.memory_space<vmem>>, vector<1x1x18x32xbf16>
    tpu.vector_store %arg9[%c0_9, %c0_10, %c0_11, %c0_12], %10 {strides = array<i32>} : memref<1x18x18x32xbf16, #tpu.memory_space<vmem>>, vector<1x1x18x32xbf16>,
    %c0_13 = arith.constant 0 : index
    %c17 = arith.constant 17 : index
    %c0_14 = arith.constant 0 : index
    %c0_15 = arith.constant 0 : index
    %13 = vector.load %arg9[%c0_13, %c17, %c0_14, %c0_15] : memref<1x18x18x32xbf16, #tpu.memory_space<vmem>>, vector<1x1x18x32xbf16>
    tpu.vector_store %arg9[%c0_13, %c17, %c0_14, %c0_15], %10 {strides = array<i32>} : memref<1x18x18x32xbf16, #tpu.memory_space<vmem>>, vector<1x1x18x32xbf16>,
    %c0_16 = arith.constant 0 : index
    %c0_17 = arith.constant 0 : index
    %c0_18 = arith.constant 0 : index
    %c0_19 = arith.constant 0 : index
    %14 = vector.load %arg9[%c0_16, %c0_17, %c0_18, %c0_19] : memref<1x18x18x32xbf16, #tpu.memory_space<vmem>>, vector<1x18x1x32xbf16>
    tpu.vector_store %arg9[%c0_16, %c0_17, %c0_18, %c0_19], %11 {strides = array<i32>} : memref<1x18x18x32xbf16, #tpu.memory_space<vmem>>, vector<1x18x1x32xbf16>,
    %c0_20 = arith.constant 0 : index
    %c0_21 = arith.constant 0 : index
    %c17_22 = arith.constant 17 : index
    %c0_23 = arith.constant 0 : index
    %15 = vector.load %arg9[%c0_20, %c0_21, %c17_22, %c0_23] : memref<1x18x18x32xbf16, #tpu.memory_space<vmem>>, vector<1x18x1x32xbf16>
    tpu.vector_store %arg9[%c0_20, %c0_21, %c17_22, %c0_23], %11 {strides = array<i32>} : memref<1x18x18x32xbf16, #tpu.memory_space<vmem>>, vector<1x18x1x32xbf16>,
    %16 = arith.truncf %9 : vector<1x16x16x32xf32> to vector<1x16x16x32xbf16>
    %c0_24 = arith.constant 0 : index
    %c1 = arith.constant 1 : index
    %c1_25 = arith.constant 1 : index
    %c0_26 = arith.constant 0 : index
    %17 = vector.load %arg9[%c0_24, %c1, %c1_25, %c0_26] : memref<1x18x18x32xbf16, #tpu.memory_space<vmem>>, vector<1x16x16x32xbf16>
    tpu.vector_store %arg9[%c0_24, %c1, %c1_25, %c0_26], %16 {strides = array<i32>} : memref<1x18x18x32xbf16, #tpu.memory_space<vmem>>, vector<1x16x16x32xbf16>,
    %c0_27 = arith.constant 0 : index
    %c0_28 = arith.constant 0 : index
    %c0_29 = arith.constant 0 : index
    %c0_30 = arith.constant 0 : index
    %18 = vector.load %arg9[%c0_27, %c0_28, %c0_29, %c0_30] : memref<1x18x18x32xbf16, #tpu.memory_space<vmem>>, vector<1x16x16x32xbf16>
    %c0_31 = arith.constant 0 : index
    %c0_32 = arith.constant 0 : index
    %c1_33 = arith.constant 1 : index
    %c0_34 = arith.constant 0 : index
    %19 = vector.load %arg9[%c0_31, %c0_32, %c1_33, %c0_34] : memref<1x18x18x32xbf16, #tpu.memory_space<vmem>>, vector<1x16x16x32xbf16>
    %c0_35 = arith.constant 0 : index
    %c0_36 = arith.constant 0 : index
    %c2 = arith.constant 2 : index
    %c0_37 = arith.constant 0 : index
    %20 = vector.load %arg9[%c0_35, %c0_36, %c2, %c0_37] : memref<1x18x18x32xbf16, #tpu.memory_space<vmem>>, vector<1x16x16x32xbf16>
    %c0_38 = arith.constant 0 : index
    %c1_39 = arith.constant 1 : index
    %c0_40 = arith.constant 0 : index
    %c0_41 = arith.constant 0 : index
    %21 = vector.load %arg9[%c0_38, %c1_39, %c0_40, %c0_41] : memref<1x18x18x32xbf16, #tpu.memory_space<vmem>>, vector<1x16x16x32xbf16>
    %c0_42 = arith.constant 0 : index
    %c1_43 = arith.constant 1 : index
    %c1_44 = arith.constant 1 : index
    %c0_45 = arith.constant 0 : index
    %22 = vector.load %arg9[%c0_42, %c1_43, %c1_44, %c0_45] : memref<1x18x18x32xbf16, #tpu.memory_space<vmem>>, vector<1x16x16x32xbf16>
    %c0_46 = arith.constant 0 : index
    %c1_47 = arith.constant 1 : index
    %c2_48 = arith.constant 2 : index
    %c0_49 = arith.constant 0 : index
    %23 = vector.load %arg9[%c0_46, %c1_47, %c2_48, %c0_49] : memref<1x18x18x32xbf16, #tpu.memory_space<vmem>>, vector<1x16x16x32xbf16>
    %c0_50 = arith.constant 0 : index
    %c2_51 = arith.constant 2 : index
    %c0_52 = arith.constant 0 : index
    %c0_53 = arith.constant 0 : index
    %24 = vector.load %arg9[%c0_50, %c2_51, %c0_52, %c0_53] : memref<1x18x18x32xbf16, #tpu.memory_space<vmem>>, vector<1x16x16x32xbf16>
    %c0_54 = arith.constant 0 : index
    %c2_55 = arith.constant 2 : index
    %c1_56 = arith.constant 1 : index
    %c0_57 = arith.constant 0 : index
    %25 = vector.load %arg9[%c0_54, %c2_55, %c1_56, %c0_57] : memref<1x18x18x32xbf16, #tpu.memory_space<vmem>>, vector<1x16x16x32xbf16>
    %c0_58 = arith.constant 0 : index
    %c2_59 = arith.constant 2 : index
    %c2_60 = arith.constant 2 : index
    %c0_61 = arith.constant 0 : index
    %26 = vector.load %arg9[%c0_58, %c2_59, %c2_60, %c0_61] : memref<1x18x18x32xbf16, #tpu.memory_space<vmem>>, vector<1x16x16x32xbf16>
    %27 = tpu.concatenate %18, %19, %20, %21, %22, %23, %24, %25, %26 in 3 : vector<1x16x16x32xbf16>, vector<1x16x16x32xbf16>, vector<1x16x16x32xbf16>, vector<1x16x16x32xbf16>, vector<1x16x16x32xbf16>, vector<1x16x16x32xbf16>, vector<1x16x16x32xbf16>, vector<1x16x16x32xbf16>, vector<1x16x16x32xbf16> -> vector<1x16x16x288xbf16>
    %28 = vector.shape_cast %27 : vector<1x16x16x288xbf16> to vector<256x288xbf16>
    %c0_62 = arith.constant 0 : index
    %c0_63 = arith.constant 0 : index
    %29 = vector.load %arg4[%c0_62, %c0_63] : memref<288x64xbf16, #tpu.memory_space<vmem>>, vector<288x64xbf16>
    %cst_64 = arith.constant dense<0.000000e+00> : vector<256x64xf32>
    %30 = tpu.matmul %28, %29, %cst_64 {dimension_numbers = #tpu.dot_dimension_numbers<[1], [0], [0], [1], [0, 0, 1, 1], [], []>} : vector<256x288xbf16>, vector<288x64xbf16>, vector<256x64xf32> -> vector<256x64xf32>
    %31 = vector.shape_cast %30 : vector<256x64xf32> to vector<1x16x16x64xf32>
    %32 = vector.extract_strided_slice %31 {offsets = [0, 0, 0, 0], sizes = [1, 1, 16, 64], strides = [1, 1, 1, 1]} : vector<1x16x16x64xf32> to vector<1x1x16x64xf32>
    %33 = vector.extract_strided_slice %31 {offsets = [0, 2, 0, 0], sizes = [1, 1, 16, 64], strides = [1, 1, 1, 1]} : vector<1x16x16x64xf32> to vector<1x1x16x64xf32>
    %34 = vector.extract_strided_slice %31 {offsets = [0, 4, 0, 0], sizes = [1, 1, 16, 64], strides = [1, 1, 1, 1]} : vector<1x16x16x64xf32> to vector<1x1x16x64xf32>
    %35 = vector.extract_strided_slice %31 {offsets = [0, 6, 0, 0], sizes = [1, 1, 16, 64], strides = [1, 1, 1, 1]} : vector<1x16x16x64xf32> to vector<1x1x16x64xf32>
    %36 = vector.extract_strided_slice %31 {offsets = [0, 8, 0, 0], sizes = [1, 1, 16, 64], strides = [1, 1, 1, 1]} : vector<1x16x16x64xf32> to vector<1x1x16x64xf32>
    %37 = vector.extract_strided_slice %31 {offsets = [0, 10, 0, 0], sizes = [1, 1, 16, 64], strides = [1, 1, 1, 1]} : vector<1x16x16x64xf32> to vector<1x1x16x64xf32>
    %38 = vector.extract_strided_slice %31 {offsets = [0, 12, 0, 0], sizes = [1, 1, 16, 64], strides = [1, 1, 1, 1]} : vector<1x16x16x64xf32> to vector<1x1x16x64xf32>
    %39 = vector.extract_strided_slice %31 {offsets = [0, 14, 0, 0], sizes = [1, 1, 16, 64], strides = [1, 1, 1, 1]} : vector<1x16x16x64xf32> to vector<1x1x16x64xf32>
    %40 = tpu.concatenate %32, %33, %34, %35, %36, %37, %38, %39 in 1 : vector<1x1x16x64xf32>, vector<1x1x16x64xf32>, vector<1x1x16x64xf32>, vector<1x1x16x64xf32>, vector<1x1x16x64xf32>, vector<1x1x16x64xf32>, vector<1x1x16x64xf32>, vector<1x1x16x64xf32> -> vector<1x8x16x64xf32>
    %41 = vector.extract_strided_slice %40 {offsets = [0, 0, 0, 0], sizes = [1, 8, 1, 64], strides = [1, 1, 1, 1]} : vector<1x8x16x64xf32> to vector<1x8x1x64xf32>
    %42 = vector.extract_strided_slice %40 {offsets = [0, 0, 2, 0], sizes = [1, 8, 1, 64], strides = [1, 1, 1, 1]} : vector<1x8x16x64xf32> to vector<1x8x1x64xf32>
    %43 = vector.extract_strided_slice %40 {offsets = [0, 0, 4, 0], sizes = [1, 8, 1, 64], strides = [1, 1, 1, 1]} : vector<1x8x16x64xf32> to vector<1x8x1x64xf32>
    %44 = vector.extract_strided_slice %40 {offsets = [0, 0, 6, 0], sizes = [1, 8, 1, 64], strides = [1, 1, 1, 1]} : vector<1x8x16x64xf32> to vector<1x8x1x64xf32>
    %45 = vector.extract_strided_slice %40 {offsets = [0, 0, 8, 0], sizes = [1, 8, 1, 64], strides = [1, 1, 1, 1]} : vector<1x8x16x64xf32> to vector<1x8x1x64xf32>
    %46 = vector.extract_strided_slice %40 {offsets = [0, 0, 10, 0], sizes = [1, 8, 1, 64], strides = [1, 1, 1, 1]} : vector<1x8x16x64xf32> to vector<1x8x1x64xf32>
    %47 = vector.extract_strided_slice %40 {offsets = [0, 0, 12, 0], sizes = [1, 8, 1, 64], strides = [1, 1, 1, 1]} : vector<1x8x16x64xf32> to vector<1x8x1x64xf32>
    %48 = vector.extract_strided_slice %40 {offsets = [0, 0, 14, 0], sizes = [1, 8, 1, 64], strides = [1, 1, 1, 1]} : vector<1x8x16x64xf32> to vector<1x8x1x64xf32>
    %49 = tpu.concatenate %41, %42, %43, %44, %45, %46, %47, %48 in 2 : vector<1x8x1x64xf32>, vector<1x8x1x64xf32>, vector<1x8x1x64xf32>, vector<1x8x1x64xf32>, vector<1x8x1x64xf32>, vector<1x8x1x64xf32>, vector<1x8x1x64xf32>, vector<1x8x1x64xf32> -> vector<1x8x8x64xf32>
    %c0_65 = arith.constant 0 : index
    %c0_66 = arith.constant 0 : index
    %50 = vector.load %arg5[%c0_65, %c0_66] : memref<1x64xf32, #tpu.memory_space<vmem>>, vector<1x64xf32>
    %51 = vector.shape_cast %50 : vector<1x64xf32> to vector<1x1x1x64xf32>
    %52 = vector.broadcast %51 : vector<1x1x1x64xf32> to vector<1x8x8x64xf32>
    %53 = arith.addf %49, %52 : vector<1x8x8x64xf32>
    %cst_67 = arith.constant 0.000000e+00 : f32
    %54 = vector.broadcast %cst_67 : f32 to vector<1x8x8x64xf32>
    %55 = arith.maximumf %53, %54 : vector<1x8x8x64xf32>
    %cst_68 = arith.constant 0.000000e+00 : bf16
    %56 = vector.broadcast %cst_68 : bf16 to vector<1x1x10x64xbf16>
    %cst_69 = arith.constant 0.000000e+00 : bf16
    %57 = vector.broadcast %cst_69 : bf16 to vector<1x10x1x64xbf16>
    %c0_70 = arith.constant 0 : index
    %c0_71 = arith.constant 0 : index
    %c0_72 = arith.constant 0 : index
    %c0_73 = arith.constant 0 : index
    %58 = vector.load %arg10[%c0_70, %c0_71, %c0_72, %c0_73] : memref<1x10x10x64xbf16, #tpu.memory_space<vmem>>, vector<1x1x10x64xbf16>
    tpu.vector_store %arg10[%c0_70, %c0_71, %c0_72, %c0_73], %56 {strides = array<i32>} : memref<1x10x10x64xbf16, #tpu.memory_space<vmem>>, vector<1x1x10x64xbf16>,
    %c0_74 = arith.constant 0 : index
    %c9 = arith.constant 9 : index
    %c0_75 = arith.constant 0 : index
    %c0_76 = arith.constant 0 : index
    %59 = vector.load %arg10[%c0_74, %c9, %c0_75, %c0_76] : memref<1x10x10x64xbf16, #tpu.memory_space<vmem>>, vector<1x1x10x64xbf16>
    tpu.vector_store %arg10[%c0_74, %c9, %c0_75, %c0_76], %56 {strides = array<i32>} : memref<1x10x10x64xbf16, #tpu.memory_space<vmem>>, vector<1x1x10x64xbf16>,
    %c0_77 = arith.constant 0 : index
    %c0_78 = arith.constant 0 : index
    %c0_79 = arith.constant 0 : index
    %c0_80 = arith.constant 0 : index
    %60 = vector.load %arg10[%c0_77, %c0_78, %c0_79, %c0_80] : memref<1x10x10x64xbf16, #tpu.memory_space<vmem>>, vector<1x10x1x64xbf16>
    tpu.vector_store %arg10[%c0_77, %c0_78, %c0_79, %c0_80], %57 {strides = array<i32>} : memref<1x10x10x64xbf16, #tpu.memory_space<vmem>>, vector<1x10x1x64xbf16>,
    %c0_81 = arith.constant 0 : index
    %c0_82 = arith.constant 0 : index
    %c9_83 = arith.constant 9 : index
    %c0_84 = arith.constant 0 : index
    %61 = vector.load %arg10[%c0_81, %c0_82, %c9_83, %c0_84] : memref<1x10x10x64xbf16, #tpu.memory_space<vmem>>, vector<1x10x1x64xbf16>
    tpu.vector_store %arg10[%c0_81, %c0_82, %c9_83, %c0_84], %57 {strides = array<i32>} : memref<1x10x10x64xbf16, #tpu.memory_space<vmem>>, vector<1x10x1x64xbf16>,
    %62 = arith.truncf %55 : vector<1x8x8x64xf32> to vector<1x8x8x64xbf16>
    %c0_85 = arith.constant 0 : index
    %c1_86 = arith.constant 1 : index
    %c1_87 = arith.constant 1 : index
    %c0_88 = arith.constant 0 : index
    %63 = vector.load %arg10[%c0_85, %c1_86, %c1_87, %c0_88] : memref<1x10x10x64xbf16, #tpu.memory_space<vmem>>, vector<1x8x8x64xbf16>
    tpu.vector_store %arg10[%c0_85, %c1_86, %c1_87, %c0_88], %62 {strides = array<i32>} : memref<1x10x10x64xbf16, #tpu.memory_space<vmem>>, vector<1x8x8x64xbf16>,
    %c0_89 = arith.constant 0 : index
    %c0_90 = arith.constant 0 : index
    %c0_91 = arith.constant 0 : index
    %c0_92 = arith.constant 0 : index
    %64 = vector.load %arg10[%c0_89, %c0_90, %c0_91, %c0_92] : memref<1x10x10x64xbf16, #tpu.memory_space<vmem>>, vector<1x8x8x64xbf16>
    %c0_93 = arith.constant 0 : index
    %c0_94 = arith.constant 0 : index
    %c1_95 = arith.constant 1 : index
    %c0_96 = arith.constant 0 : index
    %65 = vector.load %arg10[%c0_93, %c0_94, %c1_95, %c0_96] : memref<1x10x10x64xbf16, #tpu.memory_space<vmem>>, vector<1x8x8x64xbf16>
    %c0_97 = arith.constant 0 : index
    %c0_98 = arith.constant 0 : index
    %c2_99 = arith.constant 2 : index
    %c0_100 = arith.constant 0 : index
    %66 = vector.load %arg10[%c0_97, %c0_98, %c2_99, %c0_100] : memref<1x10x10x64xbf16, #tpu.memory_space<vmem>>, vector<1x8x8x64xbf16>
    %c0_101 = arith.constant 0 : index
    %c1_102 = arith.constant 1 : index
    %c0_103 = arith.constant 0 : index
    %c0_104 = arith.constant 0 : index
    %67 = vector.load %arg10[%c0_101, %c1_102, %c0_103, %c0_104] : memref<1x10x10x64xbf16, #tpu.memory_space<vmem>>, vector<1x8x8x64xbf16>
    %c0_105 = arith.constant 0 : index
    %c1_106 = arith.constant 1 : index
    %c1_107 = arith.constant 1 : index
    %c0_108 = arith.constant 0 : index
    %68 = vector.load %arg10[%c0_105, %c1_106, %c1_107, %c0_108] : memref<1x10x10x64xbf16, #tpu.memory_space<vmem>>, vector<1x8x8x64xbf16>
    %c0_109 = arith.constant 0 : index
    %c1_110 = arith.constant 1 : index
    %c2_111 = arith.constant 2 : index
    %c0_112 = arith.constant 0 : index
    %69 = vector.load %arg10[%c0_109, %c1_110, %c2_111, %c0_112] : memref<1x10x10x64xbf16, #tpu.memory_space<vmem>>, vector<1x8x8x64xbf16>
    %c0_113 = arith.constant 0 : index
    %c2_114 = arith.constant 2 : index
    %c0_115 = arith.constant 0 : index
    %c0_116 = arith.constant 0 : index
    %70 = vector.load %arg10[%c0_113, %c2_114, %c0_115, %c0_116] : memref<1x10x10x64xbf16, #tpu.memory_space<vmem>>, vector<1x8x8x64xbf16>
    %c0_117 = arith.constant 0 : index
    %c2_118 = arith.constant 2 : index
    %c1_119 = arith.constant 1 : index
    %c0_120 = arith.constant 0 : index
    %71 = vector.load %arg10[%c0_117, %c2_118, %c1_119, %c0_120] : memref<1x10x10x64xbf16, #tpu.memory_space<vmem>>, vector<1x8x8x64xbf16>
    %c0_121 = arith.constant 0 : index
    %c2_122 = arith.constant 2 : index
    %c2_123 = arith.constant 2 : index
    %c0_124 = arith.constant 0 : index
    %72 = vector.load %arg10[%c0_121, %c2_122, %c2_123, %c0_124] : memref<1x10x10x64xbf16, #tpu.memory_space<vmem>>, vector<1x8x8x64xbf16>
    %73 = tpu.concatenate %64, %65, %66, %67, %68, %69, %70, %71, %72 in 3 : vector<1x8x8x64xbf16>, vector<1x8x8x64xbf16>, vector<1x8x8x64xbf16>, vector<1x8x8x64xbf16>, vector<1x8x8x64xbf16>, vector<1x8x8x64xbf16>, vector<1x8x8x64xbf16>, vector<1x8x8x64xbf16>, vector<1x8x8x64xbf16> -> vector<1x8x8x576xbf16>
    %74 = vector.shape_cast %73 : vector<1x8x8x576xbf16> to vector<64x576xbf16>
    %c0_125 = arith.constant 0 : index
    %c0_126 = arith.constant 0 : index
    %75 = vector.load %arg6[%c0_125, %c0_126] : memref<576x128xbf16, #tpu.memory_space<vmem>>, vector<576x128xbf16>
    %cst_127 = arith.constant dense<0.000000e+00> : vector<64x128xf32>
    %76 = tpu.matmul %74, %75, %cst_127 {dimension_numbers = #tpu.dot_dimension_numbers<[1], [0], [0], [1], [0, 0, 1, 1], [], []>} : vector<64x576xbf16>, vector<576x128xbf16>, vector<64x128xf32> -> vector<64x128xf32>
    %77 = vector.shape_cast %76 : vector<64x128xf32> to vector<1x8x8x128xf32>
    %78 = vector.extract_strided_slice %77 {offsets = [0, 0, 0, 0], sizes = [1, 1, 8, 128], strides = [1, 1, 1, 1]} : vector<1x8x8x128xf32> to vector<1x1x8x128xf32>
    %79 = vector.extract_strided_slice %77 {offsets = [0, 2, 0, 0], sizes = [1, 1, 8, 128], strides = [1, 1, 1, 1]} : vector<1x8x8x128xf32> to vector<1x1x8x128xf32>
    %80 = vector.extract_strided_slice %77 {offsets = [0, 4, 0, 0], sizes = [1, 1, 8, 128], strides = [1, 1, 1, 1]} : vector<1x8x8x128xf32> to vector<1x1x8x128xf32>
    %81 = vector.extract_strided_slice %77 {offsets = [0, 6, 0, 0], sizes = [1, 1, 8, 128], strides = [1, 1, 1, 1]} : vector<1x8x8x128xf32> to vector<1x1x8x128xf32>
    %82 = tpu.concatenate %78, %79, %80, %81 in 1 : vector<1x1x8x128xf32>, vector<1x1x8x128xf32>, vector<1x1x8x128xf32>, vector<1x1x8x128xf32> -> vector<1x4x8x128xf32>
    %83 = vector.extract_strided_slice %82 {offsets = [0, 0, 0, 0], sizes = [1, 4, 1, 128], strides = [1, 1, 1, 1]} : vector<1x4x8x128xf32> to vector<1x4x1x128xf32>
    %84 = vector.extract_strided_slice %82 {offsets = [0, 0, 2, 0], sizes = [1, 4, 1, 128], strides = [1, 1, 1, 1]} : vector<1x4x8x128xf32> to vector<1x4x1x128xf32>
    %85 = vector.extract_strided_slice %82 {offsets = [0, 0, 4, 0], sizes = [1, 4, 1, 128], strides = [1, 1, 1, 1]} : vector<1x4x8x128xf32> to vector<1x4x1x128xf32>
    %86 = vector.extract_strided_slice %82 {offsets = [0, 0, 6, 0], sizes = [1, 4, 1, 128], strides = [1, 1, 1, 1]} : vector<1x4x8x128xf32> to vector<1x4x1x128xf32>
    %87 = tpu.concatenate %83, %84, %85, %86 in 2 : vector<1x4x1x128xf32>, vector<1x4x1x128xf32>, vector<1x4x1x128xf32>, vector<1x4x1x128xf32> -> vector<1x4x4x128xf32>
    %c0_128 = arith.constant 0 : index
    %c0_129 = arith.constant 0 : index
    %88 = vector.load %arg7[%c0_128, %c0_129] : memref<1x128xf32, #tpu.memory_space<vmem>>, vector<1x128xf32>
    %89 = vector.shape_cast %88 : vector<1x128xf32> to vector<1x1x1x128xf32>
    %90 = vector.broadcast %89 : vector<1x1x1x128xf32> to vector<1x4x4x128xf32>
    %91 = arith.addf %87, %90 : vector<1x4x4x128xf32>
    %cst_130 = arith.constant 0.000000e+00 : f32
    %92 = vector.broadcast %cst_130 : f32 to vector<1x4x4x128xf32>
    %93 = arith.maximumf %91, %92 : vector<1x4x4x128xf32>
    %cst_131 = arith.constant dense<0.000000e+00> : vector<1x128xf32>
    %94 = vector.multi_reduction <add>, %93, %cst_131 [1, 2] : vector<1x4x4x128xf32> to vector<1x128xf32>
    %95 = vector.shape_cast %94 : vector<1x128xf32> to vector<1x1x128xf32>
    %c0_132 = arith.constant 0 : index
    %c0_133 = arith.constant 0 : index
    %c0_134 = arith.constant 0 : index
    %96 = vector.load %arg8[%c0_132, %c0_133, %c0_134] : memref<1x1x128xf32, #tpu.memory_space<vmem>>, vector<1x1x128xf32>
    tpu.vector_store %arg8[%c0_132, %c0_133, %c0_134], %95 {strides = array<i32>} : memref<1x1x128xf32, #tpu.memory_space<vmem>>, vector<1x1x128xf32>,
    return
  }
  func.func @transform_0(%arg0: i32) -> (i32, i32, i32) {
    %c0_i32 = arith.constant 0 : i32
    %c0_i32_0 = arith.constant 0 : i32
    %c0_i32_1 = arith.constant 0 : i32
    return %arg0, %c0_i32, %c0_i32_0 : i32, i32, i32
  }
  func.func @transform_1(%arg0: i32) -> (i32, i32) {
    %c0_i32 = arith.constant 0 : i32
    %c0_i32_0 = arith.constant 0 : i32
    %c0_i32_1 = arith.constant 0 : i32
    return %c0_i32, %c0_i32_0 : i32, i32
  }
  func.func @transform_2(%arg0: i32) -> (i32, i32) {
    %c0_i32 = arith.constant 0 : i32
    %c0_i32_0 = arith.constant 0 : i32
    %c0_i32_1 = arith.constant 0 : i32
    return %c0_i32, %c0_i32_0 : i32, i32
  }
  func.func @transform_3(%arg0: i32) -> (i32, i32) {
    %c0_i32 = arith.constant 0 : i32
    %c0_i32_0 = arith.constant 0 : i32
    %c0_i32_1 = arith.constant 0 : i32
    return %c0_i32, %c0_i32_0 : i32, i32
  }
  func.func @transform_4(%arg0: i32) -> (i32, i32) {
    %c0_i32 = arith.constant 0 : i32
    %c0_i32_0 = arith.constant 0 : i32
    %c0_i32_1 = arith.constant 0 : i32
    return %c0_i32, %c0_i32_0 : i32, i32
  }
  func.func @transform_5(%arg0: i32) -> (i32, i32) {
    %c0_i32 = arith.constant 0 : i32
    %c0_i32_0 = arith.constant 0 : i32
    %c0_i32_1 = arith.constant 0 : i32
    return %c0_i32, %c0_i32_0 : i32, i32
  }
  func.func @transform_6(%arg0: i32) -> (i32, i32) {
    %c0_i32 = arith.constant 0 : i32
    %c0_i32_0 = arith.constant 0 : i32
    %c0_i32_1 = arith.constant 0 : i32
    return %c0_i32, %c0_i32_0 : i32, i32
  }
  func.func @transform_7(%arg0: i32) -> (i32, i32, i32) {
    %c0_i32 = arith.constant 0 : i32
    %c0_i32_0 = arith.constant 0 : i32
    %c0_i32_1 = arith.constant 0 : i32
    return %arg0, %c0_i32, %c0_i32_0 : i32, i32, i32
  }
}

</mosaic_0001>

<bundles_post_ra>
// kernel: tpu_custom_call.1
= control target key start
LH: loop header
LB: loop body
LE: loop exit
PB: predicated region body
PF: predicated region fallthrough
CT: control target
= control target key end

     0   :  { %12 = vsyncpa [#allocation5], 0  ;;  %s8625_s0 = inlined_call_operand.vmem [shape: bf16[2,256,36], index: 0, kind: input, shape index: {}]   ;;  %s8626_s1 = inlined_call_operand.vmem [shape: bf16[36,32], index: 1, kind: input, shape index: {}]   ;;  %s8627_s2 = inlined_call_operand.vmem [shape: f32[1,32], index: 2, kind: input, shape index: {}]   ;;  %s8628_s3 = inlined_call_operand.vmem [shape: bf16[288,64], index: 3, kind: input, shape index: {}]   ;;  %s8629_s4 = inlined_call_operand.vmem [shape: f32[1,64], index: 4, kind: input, shape index: {}]   ;;  %s8630_s5 = inlined_call_operand.vmem [shape: bf16[576,128], index: 5, kind: input, shape index: {}]   ;;  %s8631_s6 = inlined_call_operand.vmem [shape: f32[1,128], index: 6, kind: input, shape index: {}]   ;;  %s8632_s7 = inlined_call_operand.hbm [shape: f32[2,1,128], index: 7, kind: output, shape index: {}]  }
   0x1   :  { %14 = vsyncpa [#allocation5 + $0x1], 0  ;;  %s6664_s24 = smov 0   ;;  %s6666_s25 = smov 0  }
   0x2   :  { %s6668_s26 = smov 0   ;;  %s6670_s27 = smov 0  }
   0x3 LB: > { %s6685_s28 = sadd.s32 4294967295, %s6617_s27   ;;  %s5476_s29 = sadd.s32 4294967294, %s6617_s27   ;;  %s6617_s27 = sphi %s6670_s27, %s8690_s27   ;;  %s6613_s26 = sphi %s6668_s26, %s8689_s26   ;;  %s6609_s25 = sphi %s6666_s25, %s8688_s25   ;;  %s6605_s24 = sphi %s6664_s24, %s8687_s24  }
   0x4   : > { %s6689_s30 = sadd.s32 1, %s6617_s27   ;;  %s179_s8 = sadd.s32 1, %s6613_s26 }
   0x5   : > { %s176_s9 = ssub.s32 %s6617_s27, %s6689_s30  ;;  %p189_p0 = scmp.ne.s32.totalorder %s6613_s26, %s6609_s25 }
   0x6   : > { %p177_p1 = scmp.eq.s32.totalorder %s176_s9, 0  ;;  %p190_p2 = scmp.eq.s32.totalorder %s6685_s28, 1 }
   0x7   : > { %p195_p3 = scmp.ne.s32.totalorder %s6609_s25, %s6605_s24  ;;  %p196_p4 = scmp.eq.s32.totalorder %s5476_s29, 1 }
   0x8   : > { %s6700_s10 = scalar_select %p177_p1, %s6613_s26, %s179_s8  }
   0x9   : > { %p6702_p5 = por %p190_p2, %p189_p0  ;;  %p6706_p6 = por %p196_p4, %p195_p3 }
   0xa   : > { %p5479_p7 = scmp.ge.s32.totalorder %s6617_s27, 1  ;;  %p240_p8 = scmp.lt.s32.totalorder %s6617_s27, 3 }
   0xc   : > { %p241_p9 = pnand %p5479_p7, %p240_p8 }
   0xe   : > { %244 = sbr.rel (%p241_p9) target bundleno = 1163 (0x48b), region = 48 }
  0x13   : > { %v6269_v0 = vld [vmem:[%s8626_s1 + $0x10] ss:$0 sps:$4 sm:$0x33]   ;;  %vm465_vm0 = vcmask 1041408   ;;  %v6270_v1 = vld [vmem:[%s8626_s1 + $0x8] sm:$0xff]   ;;  %p271_p10 = scmp.lt.s32.totalorder %s6685_s28, 1 }
  0x14   : > { %6225 = vmatprep.subr.msk.bf16.mxu0 %vm465_vm0, %v6269_v0  ;;  %v467_v2 = vsel %vm465_vm0, %v6269_v0, 0  ;;  %v6271_v3 = vld [vmem:[%s8626_s1] sm:$0xff]   ;;  %vm416_vm1 = vcmask 293888   ;;  %vm662_vm2 = vcmask 257024   ;;  %vm665_vm3 = vcmask 253952   ;;  %s6620_s29 = smov 64  }
  0x15   : > { %6136 = vmatpush3.bf16.msra.mxu0 %v467_v2  ;;  %s272_s19 = scalar_select %p271_p10, %s6685_s28, 1  ;;  %vm672_vm4 = vsmask.f32 256  ;;  %v680_v21 = vld [vmem:[#allocation2 + $0x18] sm:$0x1]  ;;  %v8633_v22 = vmov 0  }
  0x16   : > { %6137 = vmatprep.subr.bf16.mxu0 %v6270_v1  ;;  %vm6764_vm5 = vmand %vm665_vm3, %vm672_vm4  ;;  %663 = vst.msk [vmem:[#allocation2] sm:$0xf] %vm662_vm2, %v8633_v22  ;;  %vm728_vm6 = vsmask.f32 7938  ;;  %v677_v24 = vld [vmem:[#allocation2 + $0xc] sm:$0x1] }
  0x17   : > { %s5857_s20 = sshll.u32 %s272_s19, 7  ;;  %664 = vst.msk [vmem:[#allocation2 + $0x4] sm:$0xf] %vm662_vm2, %v8633_v22  ;;  %668 = vst.msk [vmem:[#allocation2 + $0xcc] sm:$0xf] %vm662_vm2, %v8633_v22  ;;  %v681_v23 = vsel %vm6764_vm5, 0, %v680_v21 }
  0x18   : > { %s6728_s23 = scalar_lea.vmem %s8625_s0, %s5857_s20  ;;  %666 = vst.msk [vmem:[#allocation2 + $0x8] sm:$0x1] %vm665_vm3, %v8633_v22  ;;  %670 = vst.msk [vmem:[#allocation2 + $0xd4] sm:$0x1] %vm665_vm3, %v8633_v22  ;;  %v678_v25 = vsel %vm6764_vm5, 0, %v677_v24  ;;  %vm1911_vm8 = vcmask 1046528  }
  0x19   : > { %6138 = vmatpush3.bf16.msra.mxu0 %v6270_v1  ;;  %v6272_v4 = vld [vmem:[%s6728_s23] sm:$0xff]   ;;  %v6273_v5 = vld [vmem:[%s6728_s23 + $0x8] sm:$0xff]   ;;  %v6274_v6 = vld [vmem:[%s6728_s23 + $0x10] sm:$0xff]   ;;  %669 = vst.msk [vmem:[#allocation2 + $0xd0] sm:$0xf] %vm662_vm2, %v8633_v22  ;;  %s6621_s8 = smov 32  }
  0x1a   : > { %6139 = vmatprep.subr.bf16.mxu0 %v6271_v3  ;;  %6141 = vmatprep.mubr.msk.bf16.mxu0 %vm416_vm1, %v6272_v4  ;;  %v6275_v7 = vld [vmem:[%s6728_s23 + $0x18] sm:$0xff]   ;;  %v6276_v8 = vld [vmem:[%s6728_s23 + $0x20] sm:$0xff]   ;;  %v6277_v9 = vld [vmem:[%s6728_s23 + $0x28] sm:$0xff]   ;;  %682 = vst [vmem:[#allocation2 + $0x18] sm:$0x1] %v681_v23  ;;  %vm2952_vm13 = vcmask 261120  }
  0x1b   : > { %v6278_v10 = vld [vmem:[%s6728_s23 + $0x30] sm:$0xff]   ;;  %v6279_v11 = vld [vmem:[%s6728_s23 + $0x38] sm:$0xff]   ;;  %v6280_v12 = vld [vmem:[%s6728_s23 + $0x40] sm:$0xff]   ;;  %679 = vst [vmem:[#allocation2 + $0xc] sm:$0x1] %v678_v25  ;;  %s6622_s18 = smov 96  }
  0x1c   : > { %v6281_v13 = vld [vmem:[%s6728_s23 + $0x48] sm:$0xff]   ;;  %v6282_v14 = vld [vmem:[%s6728_s23 + $0x50] sm:$0xff]   ;;  %v6283_v15 = vld [vmem:[%s6728_s23 + $0x58] sm:$0xff]   ;;  %vm1638_vm9 = vsmask.f32 7424  ;;  %vm2985_vm14 = vcmask 523264  }
  0x1d   : > { %6140 = vmatpush3.bf16.msra.mxu0 %v6271_v3  ;;  %v6284_v16 = vld [vmem:[%s6728_s23 + $0x60] sm:$0xff]   ;;  %v6285_v17 = vld [vmem:[%s6728_s23 + $0x68] sm:$0xff]   ;;  %v6286_v18 = vld [vmem:[%s6728_s23 + $0x70] sm:$0xff]   ;;  %vm880_vm10 = vsmask.f32 4368  ;;  %vm3018_vm15 = vcmask 785408  }
  0x1e   : > { %v6287_v19 = vld [vmem:[%s6728_s23 + $0x78] sm:$0xff]   ;;  %vm6786_vm7 = vmand %vm665_vm3, %vm728_vm6  ;;  %v736_v27 = vld [vmem:[#allocation2 + $0x20] sm:$0x1]  ;;  %s269_s16 = sand.u32 1, %s6609_s25   ;;  %s6623_s9 = smov [#allocation4]  }
  0x1f   : > { %v737_v28 = vsel %vm6786_vm7, 0, %v736_v27  ;;  %v733_v29 = vld [vmem:[#allocation2 + $0x14] sm:$0x1]  ;;  %v674_v30 = vld [vmem:[#allocation2] sm:$0x1]  ;;  %v6296_v3 = vld [vmem:[%s8628_s3 + $0x88] sm:$0xff]  }
  0x20   : > { %6142 = vmatmul.mubr.msk.bf16.vlgmr.msra.gmra.mxu0 %vm416_vm1, %v6273_v5  ;;  %738 = vst [vmem:[#allocation2 + $0x20] sm:$0x1] %v737_v28  ;;  %v734_v31 = vsel %vm6786_vm7, 0, %v733_v29  ;;  %v675_v32 = vsel %vm6764_vm5, 0, %v674_v30  ;;  %v730_v33 = vld [vmem:[#allocation2 + $0x8] sm:$0x1]  ;;  %6173 = vmatprep.subr.bf16.mxu0 %v6296_v3  ;;  %vm6867_vm11 = vmand %vm662_vm2, %vm728_vm6 }
  0x21   : > { %6145 = vmatprep.mubr.msk.bf16.mxu0 %vm416_vm1, %v6274_v6  ;;  %735 = vst [vmem:[#allocation2 + $0x14] sm:$0x1] %v734_v31  ;;  %676 = vst [vmem:[#allocation2] sm:$0x1] %v675_v32  ;;  %v731_v34 = vsel %vm6786_vm7, 0, %v730_v33  ;;  %v6300_v4 = vld [vmem:[%s8628_s3 + $0x80] sm:$0xff]   ;;  %6174 = vmatpush3.bf16.msra.mxu0 %v6296_v3 }
  0x22   : > { %732 = vst [vmem:[#allocation2 + $0x8] sm:$0x1] %v731_v34  ;;  %v686_v35 = vld [vmem:[#allocation2 + $0x30] sm:$0x1]  ;;  %v683_v37 = vld [vmem:[#allocation2 + $0x24] sm:$0x1]  ;;  %6175 = vmatprep.subr.bf16.mxu0 %v6300_v4  ;;  %vm6888_vm12 = vmor %vm672_vm4, %vm880_vm10 }
  0x23   : > { %v687_v36 = vsel %vm6764_vm5, 0, %v686_v35  ;;  %v684_v38 = vsel %vm6764_vm5, 0, %v683_v37  ;;  %v742_v39 = vld [vmem:[#allocation2 + $0x38] sm:$0x1]  ;;  %v1318_v40 = vld [vmem:[#allocation2 + $0x4] sm:$0xf] }
  0x24   : > { %688 = vst [vmem:[#allocation2 + $0x30] sm:$0x1] %v687_v36  ;;  %685 = vst [vmem:[#allocation2 + $0x24] sm:$0x1] %v684_v38  ;;  %v743_v41 = vsel %vm6786_vm7, 0, %v742_v39  ;;  %s270_s17 = scalar_lea.vmem [#allocation4], %s269_s16 }
  0x25   : > { %v739_v42 = vld [vmem:[#allocation2 + $0x2c] sm:$0x1]  ;;  %v1365_v43 = vld [vmem:[#allocation2] sm:$0xe]  ;;  %744 = vst [vmem:[#allocation2 + $0x38] sm:$0x1] %v743_v41  ;;  %6176 = vmatpush3.bf16.msra.mxu0 %v6300_v4 }
  0x26   : > { %v740_v44 = vsel %vm6786_vm7, 0, %v739_v42  ;;  %v5582_v46 = vcombine.low %v1365_v43, %v1318_v40  ;;  %v692_v58 = vld [vmem:[#allocation2 + $0x48] sm:$0x1]  ;;  %v689_v61 = vld [vmem:[#allocation2 + $0x3c] sm:$0x1]  ;;  %s5409_s22 = scalar_lea.sflag [#allocation5], %s269_s16 }
  0x27   : > { %741 = vst [vmem:[#allocation2 + $0x2c] sm:$0x1] %v740_v44  ;;  %v693_v59 = vsel %vm6764_vm5, 0, %v692_v58  ;;  %v690_v62 = vsel %vm6764_vm5, 0, %v689_v61  ;;  %v745_v63 = vld [vmem:[#allocation2 + $0x44] sm:$0x1] }
  0x28   : > { %6146 = vmatmul.mubr.msk.bf16.gmra.mxu0 %vm416_vm1, %v6275_v7  ;;  %v1317_v47 = vld [vmem:[#allocation2] sm:$0xf]  ;;  %v1912_v48 = vrot.slane %v5582_v46, 1  ;;  %694 = vst [vmem:[#allocation2 + $0x48] sm:$0x1] %v693_v59  ;;  %v746_v0 = vsel %vm6786_vm7, 0, %v745_v63 }
  0x29   : > { %6149 = vmatprep.mubr.msk.bf16.mxu0 %vm416_vm1, %v6276_v8  ;;  %v6288_v45 = vld [vmem:[#allocation2 + $0x8] ss:$0 sps:$4 sm:$0x11]   ;;  %v6806_v50 = vcombine.low %v1317_v47, %v1318_v40  ;;  %691 = vst [vmem:[#allocation2 + $0x3c] sm:$0x1] %v690_v62  ;;  %s6561_s13 = sshll.u32 %s6623_s9, 4  ;;  %s6562_s13 = int_to_ptr.vmem [resolvable:$false] %s6561_s13 }
  0x2a   : > { %v1913_v49 = vrot.slane %v6288_v45, 1  ;;  %v1647_v51 = vshll.u32 %v6288_v45, 16  ;;  %v748_v1 = vld [vmem:[#allocation2 + $0x50] sm:$0x1]  ;;  %747 = vst [vmem:[#allocation2 + $0x44] sm:$0x1] %v746_v0 }
  0x2b   : > { %v1640_v53 = vshrl.u32 %v6806_v50, 16  ;;  %v1642_v54 = vshll.u32 %v6806_v50, 16  ;;  %v749_v2 = vsel %vm6786_vm7, 0, %v748_v1  ;;  %v698_v5 = vld [vmem:[#allocation2 + $0x60] sm:$0x1] }
  0x2c   : > { %v1914_v52 = vsel %vm1911_vm8, %v1912_v48, %v1913_v49  ;;  %v1649_v56 = vrot.slane %v1647_v51, 1  ;;  %750 = vst [vmem:[#allocation2 + $0x50] sm:$0x1] %v749_v2  ;;  %v699_v6 = vsel %vm6764_vm5, 0, %v698_v5  ;;  %v695_v7 = vld [vmem:[#allocation2 + $0x54] sm:$0x1] }
  0x2d   : > { %1960 = vrot.lane.b32.xlu1 %v1914_v52, %s6620_s29  ;;  %v1644_v55 = vrot.slane %v1642_v54, 1  ;;  %700 = vst [vmem:[#allocation2 + $0x60] sm:$0x1] %v699_v6  ;;  %v696_v8 = vsel %vm6764_vm5, 0, %v695_v7  ;;  %v710_v23 = vld [vmem:[#allocation2 + $0x90] sm:$0x1] }
  0x2e   : > { %697 = vst [vmem:[#allocation2 + $0x54] sm:$0x1] %v696_v8  ;;  %v711_v24 = vsel %vm6764_vm5, 0, %v710_v23  ;;  %v707_v25 = vld [vmem:[#allocation2 + $0x84] sm:$0x1] }
  0x2f   : > { %v1645_v57 = vor.u32 %v1644_v55, %v1640_v53  ;;  %712 = vst [vmem:[#allocation2 + $0x90] sm:$0x1] %v711_v24  ;;  %v766_v27 = vld [vmem:[#allocation2 + $0x98] sm:$0x1]  ;;  %v708_v28 = vsel %vm6764_vm5, 0, %v707_v25 }
  0x30   : > { %6150 = vmatmul.mubr.msk.bf16.gmra.mxu0 %vm416_vm1, %v6277_v9  ;;  %v754_v9 = vld [vmem:[#allocation2 + $0x68] sm:$0x1]  ;;  %v767_v29 = vsel %vm6786_vm7, 0, %v766_v27  ;;  %709 = vst [vmem:[#allocation2 + $0x84] sm:$0x1] %v708_v28 }
  0x31   : > { %6153 = vmatprep.mubr.msk.bf16.mxu0 %vm416_vm1, %v6278_v10  ;;  %v1650_v60 = vsel %vm1638_vm9, %v1645_v57, %v1649_v56  ;;  %v755_v10 = vsel %vm6786_vm7, 0, %v754_v9  ;;  %768 = vst [vmem:[#allocation2 + $0x98] sm:$0x1] %v767_v29  ;;  %v763_v30 = vld [vmem:[#allocation2 + $0x8c] sm:$0x1] }
  0x32   : > { %1831 = vrot.lane.b32.xlu0 %v1650_v60, %s6621_s8  ;;  %756 = vst [vmem:[#allocation2 + $0x68] sm:$0x1] %v755_v10  ;;  %v764_v31 = vsel %vm6786_vm7, 0, %v763_v30  ;;  %v6855_v32 = vld [vmem:[%s8627_s2] ss:$0 sm:$0xff] }
  0x33   : > { %765 = vst [vmem:[#allocation2 + $0x8c] sm:$0x1] %v764_v31  ;;  %v716_v39 = vld [vmem:[#allocation2 + $0xa8] sm:$0x1]  ;;  %v713_v48 = vld [vmem:[#allocation2 + $0x9c] sm:$0x1] }
  0x34   : > { %v717_v43 = vsel %vm6764_vm5, 0, %v716_v39  ;;  %v714_v52 = vsel %vm6764_vm5, 0, %v713_v48  ;;  %v772_v53 = vld [vmem:[#allocation2 + $0xb0] sm:$0x1]  ;;  %v1212_v59 = vld [vmem:[#allocation2 + $0x18] sm:$0xf] }
  0x35   : > { %718 = vst [vmem:[#allocation2 + $0xa8] sm:$0x1] %v717_v43  ;;  %715 = vst [vmem:[#allocation2 + $0x9c] sm:$0x1] %v714_v52  ;;  %v773_v0 = vsel %vm6786_vm7, 0, %v772_v53  ;;  %v6377_v43 = vld [vmem:[%s8628_s3 + $0x30] sm:$0xff]  }
  0x36   : > { %774 = vst [vmem:[#allocation2 + $0xb0] sm:$0x1] %v773_v0  ;;  %v1205_v5 = vld [vmem:[#allocation2 + $0xc] sm:$0xf] }
  0x38   : > { %6154 = vmatmul.mubr.msk.bf16.gmra.mxu0 %vm416_vm1, %v6279_v11  ;;  %v751_v11 = vld [vmem:[#allocation2 + $0x5c] sm:$0x1] }
  0x39   : > { %6157 = vmatprep.mubr.msk.bf16.mxu0 %vm416_vm1, %v6280_v12  ;;  %v752_v12 = vsel %vm6786_vm7, 0, %v751_v11  ;;  %v6369_v11 = vld [vmem:[%s8628_s3 + $0x78] sm:$0xff]  }
  0x3a   : > { %753 = vst [vmem:[#allocation2 + $0x5c] sm:$0x1] %v752_v12  ;;  %v6371_v12 = vld [vmem:[%s8628_s3 + $0x38] sm:$0xff]   ;;  %5917 = vmatprep.subr.bf16.mxu1 %v6369_v11 }
  0x3b   : > { %5918 = vmatpush3.bf16.msra.mxu1 %v6371_v12 }
  0x40   : > { %6158 = vmatmul.mubr.msk.bf16.gmra.mxu0 %vm416_vm1, %v6281_v13  ;;  %v704_v13 = vld [vmem:[#allocation2 + $0x78] sm:$0x1] }
  0x41   : > { %6161 = vmatprep.mubr.msk.bf16.mxu0 %vm416_vm1, %v6282_v14  ;;  %v705_v14 = vsel %vm6764_vm5, 0, %v704_v13 }
  0x42   : > { %706 = vst [vmem:[#allocation2 + $0x78] sm:$0x1] %v705_v14 }
  0x48   : > { %6162 = vmatmul.mubr.msk.bf16.gmra.mxu0 %vm416_vm1, %v6283_v15  ;;  %v701_v15 = vld [vmem:[#allocation2 + $0x6c] sm:$0x1] }
  0x49   : > { %6165 = vmatprep.mubr.msk.bf16.mxu0 %vm416_vm1, %v6284_v16  ;;  %v702_v16 = vsel %vm6764_vm5, 0, %v701_v15 }
  0x4a   : > { %703 = vst [vmem:[#allocation2 + $0x6c] sm:$0x1] %v702_v16 }
  0x50   : > { %6166 = vmatmul.mubr.msk.bf16.gmra.mxu0 %vm416_vm1, %v6285_v17  ;;  %v760_v17 = vld [vmem:[#allocation2 + $0x80] sm:$0x1] }
  0x51   : > { %6169 = vmatprep.mubr.msk.bf16.mxu0 %vm416_vm1, %v6286_v18  ;;  %v761_v18 = vsel %vm6786_vm7, 0, %v760_v17  ;;  %v6376_v17 = vld [vmem:[%s8628_s3 + $0x70] sm:$0xff]  }
  0x52   : > { %762 = vst [vmem:[#allocation2 + $0x80] sm:$0x1] %v761_v18  ;;  %5919 = vmatprep.subr.bf16.mxu1 %v6376_v17 }
  0x53   : > { %5920 = vmatpush3.bf16.msra.mxu1 %v6377_v43 }
  0x58   : > { %6170 = vmatmul.mubr.msk.bf16.gmra.mxu0 %vm416_vm1, %v6287_v19  ;;  %v757_v19 = vld [vmem:[#allocation2 + $0x74] sm:$0x1]  ;;  %vm3890_vm1 = vcmask 519168  }
  0x59   : > { %v758_v21 = vsel %vm6786_vm7, 0, %v757_v19  ;;  %v1216_v19 = vld [vmem:[#allocation2 + $0x20] sm:$0x1] }
  0x5a   : > { %759 = vst [vmem:[#allocation2 + $0x74] sm:$0x1] %v758_v21 }
  0xe0   : > { %v6143_v33 = vpop.f32.mrf.mxu0 }
  0xe1   : > { %v512_v34 = vadd.f32 %v6143_v33, %v6855_v32 }
  0xe2   : > { %v503_v35 = vpop.f32.mrf.mxu0 }
  0xe3   : > { %v632_v36 = vmax.f32 %v512_v34, 0.0  ;;  %v504_v37 = vadd.f32 %v6855_v32, %v503_v35 }
  0xe4   : > { %v6144_v38 = vpop.f32.mrf.mxu0 }
  0xe5   : > { %v5860_v40 = vpack.c.bf16 %v632_v36, %v632_v36  ;;  %v630_v41 = vmax.f32 %v504_v37, 0.0  ;;  %v515_v42 = vadd.f32 %v6144_v38, %v6855_v32 }
  0xe6   : > { %v506_v44 = vpop.f32.mrf.mxu0 }
  0xe7   : > { %v900_v45 = vshrl.u32 %v5860_v40, 16  ;;  %v5858_v46 = vpack.c.bf16 %v630_v41, %v630_v41  ;;  %v633_v47 = vmax.f32 %v515_v42, 0.0  ;;  %v507_v49 = vadd.f32 %v6855_v32, %v506_v44 }
  0xe8   : > { %v6147_v51 = vpop.f32.mrf.mxu0  ;;  %v903_v55 = vshll.u32 %v5860_v40, 16  ;;  %v1209_v40 = vld [vmem:[#allocation2 + $0x14] sm:$0x1] }
  0xe9   : > { %v902_v54 = vrot.slane %v900_v45, 7  ;;  %v883_v56 = vshrl.u32 %v5858_v46, 16  ;;  %v5861_v57 = vpack.c.bf16 %v633_v47, %v633_v47  ;;  %v886_v60 = vshll.u32 %v5858_v46, 16 }
  0xea   : > { %v631_v61 = vmax.f32 %v507_v49, 0.0  ;;  %v528_v62 = vadd.f32 %v6147_v51, %v6855_v32  ;;  %v519_v63 = vpop.f32.mrf.mxu0  ;;  %v6378_v49 = vld [vmem:[%s8628_s3 + $0x68] sm:$0xff]   ;;  %v1226_v51 = vld [vmem:[#allocation2 + $0x30] sm:$0xf] }
  0xeb   : > { %v905_v1 = vor.u32 %v903_v55, %v902_v54  ;;  %v906_v2 = vrot.slane %v902_v54, 4  ;;  %v885_v3 = vrot.slane %v883_v56, 7  ;;  %v908_v4 = vshrl.u32 %v5861_v57, 16  ;;  %5921 = vmatprep.subr.bf16.mxu1 %v6378_v49  ;;  %v1233_v49 = vld [vmem:[#allocation2 + $0x3c] sm:$0xf] }
  0xec   : > { %v911_v6 = vshll.u32 %v5861_v57, 16  ;;  %v5859_v7 = vpack.c.bf16 %v631_v61, %v631_v61  ;;  %v636_v8 = vmax.f32 %v528_v62, 0.0  ;;  %v520_v9 = vadd.f32 %v6855_v32, %v519_v63  ;;  %v6148_v10 = vpop.f32.mrf.mxu0 }
  0xed   : > { %v1213_v13 = vsel %vm6867_vm11, %v905_v1, %v1212_v59  ;;  %v888_v14 = vor.u32 %v886_v60, %v885_v3  ;;  %v889_v15 = vrot.slane %v885_v3, 4  ;;  %v910_v16 = vrot.slane %v908_v4, 7  ;;  %v1219_v4 = vld [vmem:[#allocation2 + $0x24] sm:$0xf] }
  0xee   : > { %1214 = vst [vmem:[#allocation2 + $0x18] sm:$0xf] %v1213_v13  ;;  %v891_v21 = vshrl.u32 %v5859_v7, 16  ;;  %v894_v23 = vshll.u32 %v5859_v7, 16  ;;  %v5864_v24 = vpack.c.bf16 %v636_v8, %v636_v8  ;;  %v634_v25 = vmax.f32 %v520_v9, 0.0  ;;  %v522_v27 = vpop.f32.mrf.mxu0  ;;  %v6384_v8 = vld [vmem:[%s8628_s3 + $0x60] sm:$0xff]  }
  0xef   : > { %v1206_v28 = vsel %vm6867_vm11, %v888_v14, %v1205_v5  ;;  %v913_v29 = vor.u32 %v911_v6, %v910_v16  ;;  %v915_v30 = vrot.slane %v910_v16, 4  ;;  %v531_v31 = vadd.f32 %v6148_v10, %v6855_v32  ;;  %v1230_v13 = vld [vmem:[#allocation2 + $0x38] sm:$0x1] }
  0xf0   : > { %1207 = vst [vmem:[#allocation2 + $0xc] sm:$0xf] %v1206_v28  ;;  %v893_v33 = vrot.slane %v891_v21, 7  ;;  %v934_v34 = vshrl.u32 %v5864_v24, 16  ;;  %v937_v35 = vshll.u32 %v5864_v24, 16  ;;  %v5862_v36 = vpack.c.bf16 %v634_v25, %v634_v25  ;;  %v6151_v37 = vpop.f32.mrf.mxu0 }
  0xf1   : > { %v914_v38 = vsel %vm6888_vm12, %v906_v2, %v913_v29  ;;  %v1217_v39 = vsel %vm6764_vm5, %v915_v30, %v1216_v19  ;;  %v637_v41 = vmax.f32 %v531_v31, 0.0  ;;  %v523_v42 = vadd.f32 %v6855_v32, %v522_v27  ;;  %v6382_v2 = vld [vmem:[%s8628_s3 + $0x28] sm:$0xff]  }
  0xf2   : > { %1215 = vst.msk [vmem:[#allocation2 + $0x1c] sm:$0xf] %vm662_vm2, %v914_v38  ;;  %1218 = vst [vmem:[#allocation2 + $0x20] sm:$0x1] %v1217_v39  ;;  %v896_v44 = vor.u32 %v894_v23, %v893_v33  ;;  %v898_v45 = vrot.slane %v893_v33, 4  ;;  %v936_v46 = vrot.slane %v934_v34, 7  ;;  %v535_v48 = vpop.f32.mrf.mxu0  ;;  %v544_v55 = vadd.f32 %v6151_v37, %v6855_v32  ;;  %5922 = vmatpush3.bf16.msra.mxu1 %v6382_v2 }
  0xf3   : > { %v917_v47 = vshrl.u32 %v5862_v36, 16  ;;  %v920_v52 = vshll.u32 %v5862_v36, 16  ;;  %v5865_v53 = vpack.c.bf16 %v637_v41, %v637_v41  ;;  %v635_v54 = vmax.f32 %v523_v42, 0.0  ;;  %5923 = vmatprep.subr.bf16.mxu1 %v6384_v8  ;;  %v1223_v25 = vld [vmem:[#allocation2 + $0x2c] sm:$0x1]  ;;  %v6388_v34 = vld [vmem:[%s8628_s3 + $0x20] sm:$0xff]  }
  0xf4   : > { %v897_v56 = vsel %vm6888_vm12, %v889_v15, %v896_v44  ;;  %v1210_v57 = vsel %vm6764_vm5, %v898_v45, %v1209_v40  ;;  %v939_v59 = vor.u32 %v937_v35, %v936_v46  ;;  %v940_v60 = vrot.slane %v936_v46, 4  ;;  %v6152_v1 = vpop.f32.mrf.mxu0  ;;  %v1240_v39 = vld [vmem:[#allocation2 + $0x48] sm:$0xf]  ;;  %v6389_v40 = vld [vmem:[%s8628_s3 + $0x58] sm:$0xff]  }
  0xf5   : > { %1208 = vst.msk [vmem:[#allocation2 + $0x10] sm:$0xf] %vm662_vm2, %v897_v56  ;;  %1211 = vst [vmem:[#allocation2 + $0x14] sm:$0x1] %v1210_v57  ;;  %v919_v61 = vrot.slane %v917_v47, 7  ;;  %v942_v62 = vshrl.u32 %v5865_v53, 16  ;;  %v5863_v0 = vpack.c.bf16 %v635_v54, %v635_v54  ;;  %v536_v6 = vadd.f32 %v6855_v32, %v535_v48 }
  0xf6   : > { %v945_v63 = vshll.u32 %v5865_v53, 16  ;;  %v1227_v3 = vsel %vm6867_vm11, %v939_v59, %v1226_v51  ;;  %v640_v5 = vmax.f32 %v544_v55, 0.0  ;;  %v547_v7 = vadd.f32 %v6152_v1, %v6855_v32  ;;  %v538_v31 = vpop.f32.mrf.mxu0  ;;  %v1446_v45 = vld [vmem:[#allocation2 + $0x18] sm:$0xf]  ;;  %5924 = vmatpush3.bf16.msra.mxu1 %v6388_v34  ;;  %v1244_v59 = vld [vmem:[#allocation2 + $0x50] sm:$0x1] }
  0xf7   : > { %1228 = vst [vmem:[#allocation2 + $0x30] sm:$0xf] %v1227_v3  ;;  %v922_v9 = vor.u32 %v920_v52, %v919_v61  ;;  %v923_v10 = vrot.slane %v919_v61, 4  ;;  %v944_v11 = vrot.slane %v942_v62, 7  ;;  %v925_v12 = vshrl.u32 %v5863_v0, 16  ;;  %5925 = vmatprep.subr.bf16.mxu1 %v6389_v40 }
  0xf8   : > { %v928_v14 = vshll.u32 %v5863_v0, 16  ;;  %v5868_v15 = vpack.c.bf16 %v640_v5, %v640_v5  ;;  %v638_v16 = vmax.f32 %v536_v6, 0.0  ;;  %v641_v17 = vmax.f32 %v547_v7, 0.0  ;;  %v1494_v53 = vld [vmem:[#allocation2 + $0x18] sm:$0xe] }
  0xf9   : > { %v1220_v19 = vsel %vm6867_vm11, %v922_v9, %v1219_v4  ;;  %v947_v21 = vor.u32 %v945_v63, %v944_v11  ;;  %v949_v23 = vrot.slane %v944_v11, 4  ;;  %v927_v24 = vrot.slane %v925_v12, 7  ;;  %v6925_v33 = vld [vmem:[#allocation2 + $0x20] ss:$0 sps:$4 sm:$0x11]   ;;  %v6393_v7 = vld [vmem:[%s8628_s3 + $0x18] sm:$0xff]  }
  0xfa   : > { %1221 = vst [vmem:[#allocation2 + $0x24] sm:$0xf] %v1220_v19  ;;  %v968_v27 = vshrl.u32 %v5868_v15, 16  ;;  %v971_v28 = vshll.u32 %v5868_v15, 16  ;;  %v5866_v29 = vpack.c.bf16 %v638_v16, %v638_v16  ;;  %v5869_v30 = vpack.c.bf16 %v641_v17, %v641_v17  ;;  %v1447_v46 = vld [vmem:[#allocation2 + $0x1c] sm:$0xf]  ;;  %5926 = vmatpush3.bf16.msra.mxu1 %v6393_v7 }
  0xfb   : > { %v948_v35 = vsel %vm6888_vm12, %v940_v60, %v947_v21  ;;  %v1231_v36 = vsel %vm6764_vm5, %v949_v23, %v1230_v13  ;;  %v930_v37 = vor.u32 %v928_v14, %v927_v24  ;;  %v932_v38 = vrot.slane %v927_v24, 4  ;;  %v6293_v60 = vld [vmem:[#allocation2 + $0x20] ss:$0 sps:$4 sm:$0x11]   ;;  %v1384_v1 = vld [vmem:[#allocation2 + $0x1c] sm:$0xf]  ;;  %v6967_v21 = vpop.f32.mrf.mxu0 }
  0xfc   : > { %1229 = vst.msk [vmem:[#allocation2 + $0x34] sm:$0xf] %vm662_vm2, %v948_v35  ;;  %1232 = vst [vmem:[#allocation2 + $0x38] sm:$0x1] %v1231_v36  ;;  %v970_v41 = vrot.slane %v968_v27, 7  ;;  %v951_v42 = vshrl.u32 %v5866_v29, 16  ;;  %v539_v52 = vadd.f32 %v6855_v32, %v538_v31  ;;  %v6946_v62 = vcombine.low %v1446_v45, %v1447_v46 }
  0xfd   : > { %v954_v43 = vshll.u32 %v5866_v29, 16  ;;  %v976_v44 = vshrl.u32 %v5869_v30, 16  ;;  %v931_v47 = vsel %vm6888_vm12, %v923_v10, %v930_v37  ;;  %v1224_v48 = vsel %vm6764_vm5, %v932_v38, %v1223_v25  ;;  %v1430_v2 = vld [vmem:[#allocation2 + $0x18] sm:$0xe]  ;;  %v1382_v12 = vld [vmem:[#allocation2 + $0x10] sm:$0xf] }
  0xfe   : > { %v979_v51 = vshll.u32 %v5869_v30, 16  ;;  %1222 = vst.msk [vmem:[#allocation2 + $0x28] sm:$0xf] %vm662_vm2, %v931_v47  ;;  %1225 = vst [vmem:[#allocation2 + $0x2c] sm:$0x1] %v1224_v48  ;;  %v973_v54 = vor.u32 %v971_v28, %v970_v41  ;;  %v974_v55 = vrot.slane %v970_v41, 4  ;;  %v5678_v63 = vcombine.low %v1494_v53, %v1447_v46  ;;  %2552 = vrot.lane.b32.xlu1 %v6946_v62, %s6620_s29 }
  0xff   : > { %v6944_v56 = vrot.slane %v951_v42, 7  ;;  %v978_v57 = vrot.slane %v976_v44, 7  ;;  %v639_v61 = vmax.f32 %v539_v52, 0.0  ;;  %v2905_v0 = vrot.slane %v6925_v33, 1  ;;  %v6395_v13 = vld [vmem:[%s8628_s3 + $0x50] sm:$0xff]  }
 0x100   : > { %v1241_v3 = vsel %vm6867_vm11, %v973_v54, %v1240_v39  ;;  %v6952_v6 = vld [vmem:[#allocation2 + $0x14] ss:$0 sps:$4 sm:$0x11]   ;;  %v2904_v10 = vrot.slane %v5678_v63, 1  ;;  %v2635_v11 = vshll.u32 %v6946_v62, 16  ;;  %v5631_v16 = vcombine.low %v1430_v2, %v1384_v1  ;;  %5927 = vmatprep.subr.bf16.mxu1 %v6395_v13 }
 0x101   : > { %v956_v4 = vor.u32 %v954_v43, %v6944_v56  ;;  %v981_v5 = vor.u32 %v979_v51, %v978_v57  ;;  %1242 = vst [vmem:[#allocation2 + $0x48] sm:$0xf] %v1241_v3  ;;  %v983_v8 = vrot.slane %v978_v57, 4  ;;  %v5867_v9 = vpack.c.bf16 %v639_v61, %v639_v61  ;;  %v1383_v19 = vld [vmem:[#allocation2 + $0x18] sm:$0xf]  ;;  %v6396_v43 = vld [vmem:[%s8628_s3 + $0x10] sm:$0xff]  }
 0x102   : > { %v2396_v17 = vrot.slane %v6293_v60, 1  ;;  %v2906_v27 = vsel %vm1911_vm8, %v2904_v10, %v2905_v0  ;;  %v1429_v28 = vld [vmem:[#allocation2 + $0xc] sm:$0xe]  ;;  %v957_v29 = vrot.slane %v6944_v56, 4  ;;  %v1237_v30 = vld [vmem:[#allocation2 + $0x44] sm:$0x1]  ;;  %v6975_v34 = vcombine.low %v1383_v19, %v1384_v1  ;;  %5928 = vmatpush3.bf16.msra.mxu1 %v6396_v43 }
 0x103   : > { %v1234_v14 = vsel %vm6867_vm11, %v956_v4, %v1233_v49  ;;  %v982_v15 = vsel %vm6888_vm12, %v974_v55, %v981_v5  ;;  %v1245_v23 = vsel %vm6764_vm5, %v983_v8, %v1244_v59  ;;  %v959_v24 = vshrl.u32 %v5867_v9, 16  ;;  %6177 = vmatprep.mubr.msk.bf16.mxu0 %vm2952_vm13, %v2906_v27  ;;  %v6977_v36 = vld [vmem:[#allocation2 + $0x20] ss:$0 sps:$4 sm:$0x11]   ;;  %v1381_v39 = vld [vmem:[#allocation2 + $0xc] sm:$0xf]  ;;  %v551_v49 = vpop.f32.mrf.mxu0 }
 0x104   : > { %1235 = vst [vmem:[#allocation2 + $0x3c] sm:$0xf] %v1234_v14  ;;  %1243 = vst.msk [vmem:[#allocation2 + $0x4c] sm:$0xf] %vm662_vm2, %v982_v15  ;;  %v962_v25 = vshll.u32 %v5867_v9, 16  ;;  %v2395_v31 = vrot.slane %v5631_v16, 1  ;;  %v5630_v35 = vcombine.low %v1429_v28, %v1382_v12  ;;  %2074 = vrot.lane.b32.xlu1 %v6975_v34, %s6622_s18  ;;  %v6995_v56 = vcombine.low %v1381_v39, %v1382_v12 }
 0x105   : > { %1246 = vst [vmem:[#allocation2 + $0x50] sm:$0x1] %v1245_v23  ;;  %v961_v37 = vrot.slane %v959_v24, 7  ;;  %v2393_v38 = vrot.slane %v6952_v6, 1  ;;  %v2637_v40 = vrot.slane %v2635_v11, 1  ;;  %v2633_v46 = vshrl.u32 %v6946_v62, 16  ;;  %v6156_v7 = vpop.f32.mrf.mxu0 }
 0x106   : > { %v1322_v41 = vld [vmem:[#allocation2 + $0x1c] sm:$0xf]  ;;  %v1495_v42 = vld [vmem:[#allocation2 + $0x24] sm:$0xe]  ;;  %v2397_v44 = vsel %vm1911_vm8, %v2395_v31, %v2396_v17  ;;  %v2392_v45 = vrot.slane %v5630_v35, 1  ;;  %v6399_v51 = vld [vmem:[%s8628_s3 + $0x48] sm:$0xff]   ;;  %v560_v31 = vadd.f32 %v6967_v21, %v6855_v32  ;;  %v552_v39 = vadd.f32 %v6855_v32, %v551_v49 }
 0x107   : > { %v1451_v47 = vld [vmem:[#allocation2 + $0x34] sm:$0xf]  ;;  %v1496_v48 = vld [vmem:[#allocation2 + $0x30] sm:$0xe]  ;;  %v964_v52 = vor.u32 %v962_v25, %v961_v37  ;;  %v966_v53 = vrot.slane %v961_v37, 4  ;;  %2442 = vrot.lane.b32.xlu0 %v2397_v44, %s6621_s8  ;;  %v2640_v57 = vshll.u32 %v6925_v33, 16  ;;  %5929 = vmatprep.subr.bf16.mxu1 %v6399_v51  ;;  %v2638_v0 = vor.u32 %v2637_v40, %v2633_v46  ;;  %v554_v35 = vpop.f32.mrf.mxu0 }
 0x108   : > { %v6991_v54 = vld [vmem:[#allocation2 + $0x28] sm:$0xf]  ;;  %v6993_v55 = vld [vmem:[#allocation2 + $0x2c] ss:$0 sps:$4 sm:$0x11]   ;;  %v2394_v63 = vsel %vm1911_vm8, %v2392_v45, %v2393_v38  ;;  %2072 = vrot.lane.b32.xlu1 %v6995_v56, %s6622_s18  ;;  %v1919_v5 = vrot.slane %v6977_v36, 1  ;;  %v5680_v10 = vcombine.low %v1496_v48, %v1451_v47  ;;  %v563_v51 = vadd.f32 %v6156_v7, %v6855_v32 }
 0x109   : > { %v6998_v59 = vld [vmem:[#allocation2 + $0x38] ss:$0 sps:$4 sm:$0x11]   ;;  %v1450_v60 = vld [vmem:[#allocation2 + $0x30] sm:$0xf]  ;;  %v965_v61 = vsel %vm6888_vm12, %v957_v29, %v964_v52  ;;  %v1238_v62 = vsel %vm6764_vm5, %v966_v53, %v1237_v30  ;;  %v2642_v33 = vrot.slane %v2640_v57, 1  ;;  %v5679_v6 = vcombine.low %v1495_v42, %v6991_v54 }
 0x10a   : > { %v1367_v1 = vld [vmem:[#allocation2 + $0x18] sm:$0xe]  ;;  %v1320_v2 = vld [vmem:[#allocation2 + $0x10] sm:$0xf]  ;;  %1236 = vst.msk [vmem:[#allocation2 + $0x40] sm:$0xf] %vm662_vm2, %v965_v61  ;;  %v7014_v11 = vcombine.low %v1450_v60, %v1451_v47  ;;  %v555_v52 = vadd.f32 %v6855_v32, %v554_v35 }
 0x10b   : > { %1239 = vst [vmem:[#allocation2 + $0x44] sm:$0x1] %v1238_v62  ;;  %v1321_v3 = vld [vmem:[#allocation2 + $0x18] sm:$0xf]  ;;  %v5584_v4 = vcombine.low %v1367_v1, %v1322_v41  ;;  %2440 = vrot.lane.b32.xlu0 %v2394_v63, %s6621_s8  ;;  %v2908_v9 = vrot.slane %v6993_v55, 1  ;;  %v2907_v15 = vrot.slane %v5679_v6, 1  ;;  %v2643_v19 = vsel %vm1638_vm9, %v2638_v0, %v2642_v33 }
 0x10c   : > { %v7011_v8 = vcombine.low %v1321_v3, %v1322_v41  ;;  %v1366_v12 = vld [vmem:[#allocation2 + $0xc] sm:$0xe]  ;;  %v7016_v13 = vld [vmem:[#allocation2 + $0x14] ss:$0 sps:$4 sm:$0x11]   ;;  %v2911_v16 = vrot.slane %v6998_v59, 1 }
 0x10d   : > { %v1918_v14 = vrot.slane %v5584_v4, 1  ;;  %v5583_v17 = vcombine.low %v1366_v12, %v1320_v2  ;;  %v2910_v23 = vrot.slane %v5680_v10, 1  ;;  %v1916_v24 = vrot.slane %v7016_v13, 1  ;;  %v6401_v25 = vld [vmem:[%s8628_s3 + $0x8] sm:$0xff]   ;;  %v1388_v40 = vld [vmem:[#allocation2 + $0x34] sm:$0xf] }
 0x10e   : > { %v2909_v28 = vsel %vm1911_vm8, %v2907_v15, %v2908_v9  ;;  %v1319_v30 = vld [vmem:[#allocation2 + $0xc] sm:$0xf]  ;;  %v2659_v37 = vshll.u32 %v7014_v11, 16  ;;  %v1432_v41 = vld [vmem:[#allocation2 + $0x30] sm:$0xe]  ;;  %v6406_v42 = vld [vmem:[%s8628_s3 + $0x40] sm:$0xff]   ;;  %5930 = vmatpush3.bf16.msra.mxu1 %v6401_v25 }
 0x10f   : > { %v1920_v27 = vsel %vm1911_vm8, %v1918_v14, %v1919_v5  ;;  %v1915_v29 = vrot.slane %v5583_v17, 1  ;;  %2824 = vrot.lane.b32.xlu0 %v2643_v19, %s6622_s18  ;;  %v7031_v38 = vcombine.low %v1319_v30, %v1320_v2  ;;  %6178 = vmatmul.mubr.msk.bf16.vlgmr.msra.gmra.mxu0 %vm2952_vm13, %v2909_v28  ;;  %v2912_v21 = vsel %vm1911_vm8, %v2910_v23, %v2911_v16  ;;  %v1448_v44 = vld [vmem:[#allocation2 + $0x24] sm:$0xf]  ;;  %v1387_v5 = vld [vmem:[#allocation2 + $0x30] sm:$0xf] }
 0x110   : > { %1964 = vrot.lane.b32.xlu1 %v1920_v27, %s6620_s29  ;;  %v644_v43 = vmax.f32 %v560_v31, 0.0  ;;  %v1666_v45 = vshll.u32 %v7011_v8, 16  ;;  %v1671_v46 = vshll.u32 %v6977_v36, 16  ;;  %v6407_v47 = vld [vmem:[%s8628_s3] sm:$0xff]   ;;  %6181 = vmatprep.mubr.msk.bf16.mxu0 %vm2952_vm13, %v2912_v21  ;;  %v642_v48 = vmax.f32 %v552_v39, 0.0 }
 0x111   : > { %v1664_v49 = vshrl.u32 %v7011_v8, 16  ;;  %5931 = vmatprep.subr.bf16.mxu1 %v6406_v42  ;;  %v1917_v53 = vsel %vm1911_vm8, %v1915_v29, %v1916_v24  ;;  %v6313_v36 = vld [vmem:[#allocation2 + $0x38] ss:$0 sps:$4 sm:$0x11]   ;;  %v5633_v61 = vcombine.low %v1432_v41, %v1388_v40  ;;  %v7053_v63 = vcombine.low %v1448_v44, %v6991_v54  ;;  %v1254_v6 = vld [vmem:[#allocation2 + $0x60] sm:$0xf] }
 0x112   : > { %v5872_v57 = vpack.c.bf16 %v644_v43, %v644_v43  ;;  %v1668_v60 = vrot.slane %v1666_v45, 1  ;;  %v5870_v62 = vpack.c.bf16 %v642_v48, %v642_v48  ;;  %v645_v0 = vmax.f32 %v563_v51, 0.0  ;;  %5932 = vmatpush3.bf16.msra.mxu1 %v6407_v47  ;;  %v1497_v14 = vld [vmem:[#allocation2 + $0x3c] sm:$0xe]  ;;  %v1247_v17 = vld [vmem:[#allocation2 + $0x54] sm:$0xf] }
 0x113   : > { %2556 = vrot.lane.b32.xlu0 %v7014_v11, %s6620_s29  ;;  %v643_v1 = vmax.f32 %v555_v52, 0.0  ;;  %v1673_v4 = vrot.slane %v1671_v46, 1  ;;  %v7055_v15 = vld [vmem:[#allocation2 + $0x44] ss:$0 sps:$4 sm:$0x11]   ;;  %v2401_v19 = vrot.slane %v5633_v61, 1  ;;  %v7063_v39 = vcombine.low %v1387_v5, %v1388_v40 }
 0x114   : > { %1962 = vrot.lane.b32.xlu1 %v1917_v53, %s6620_s29  ;;  %v1002_v2 = vshrl.u32 %v5872_v57, 16  ;;  %v1005_v33 = vshll.u32 %v5872_v57, 16  ;;  %v1669_v3 = vor.u32 %v1668_v60, %v1664_v49  ;;  %v985_v7 = vshrl.u32 %v5870_v62, 16  ;;  %v7061_v29 = vld [vmem:[#allocation2 + $0x40] sm:$0xf] }
 0x115   : > { %v988_v9 = vshll.u32 %v5870_v62, 16  ;;  %v5873_v10 = vpack.c.bf16 %v645_v0, %v645_v0  ;;  %v5871_v12 = vpack.c.bf16 %v643_v1, %v643_v1  ;;  %v2402_v23 = vrot.slane %v6313_v36, 1  ;;  %v7065_v41 = vld [vmem:[#allocation2 + $0x28] sm:$0xf]  ;;  %v1431_v42 = vld [vmem:[#allocation2 + $0x24] sm:$0xe] }
 0x116   : > { %v1004_v16 = vrot.slane %v1002_v2, 7  ;;  %v1674_v54 = vsel %vm1638_vm9, %v1669_v3, %v1673_v4  ;;  %v987_v24 = vrot.slane %v985_v7, 7  ;;  %v6318_v46 = vld [vmem:[#allocation2 + $0x2c] ss:$0 sps:$4 sm:$0x11]   ;;  %v5681_v51 = vcombine.low %v1497_v14, %v7061_v29 }
 0x117   : > { %2554 = vrot.lane.b32.xlu0 %v7053_v63, %s6620_s29  ;;  %v1010_v25 = vshrl.u32 %v5873_v10, 16  ;;  %v1013_v27 = vshll.u32 %v5873_v10, 16  ;;  %v993_v28 = vshrl.u32 %v5871_v12, 16  ;;  %v996_v35 = vshll.u32 %v5871_v12, 16  ;;  %v1258_v48 = vld [vmem:[#allocation2 + $0x68] sm:$0x1] }
 0x118   : > { %1835 = vrot.lane.b32.xlu1 %v1674_v54, %s6621_s8  ;;  %v1007_v30 = vor.u32 %v1005_v33, %v1004_v16  ;;  %v1008_v31 = vrot.slane %v1004_v16, 4  ;;  %v990_v21 = vor.u32 %v988_v9, %v987_v24  ;;  %v991_v43 = vrot.slane %v987_v24, 4  ;;  %v1251_v36 = vld [vmem:[#allocation2 + $0x5c] sm:$0x1]  ;;  %v1498_v5 = vld [vmem:[#allocation2 + $0x48] sm:$0xe] }
 0x119   : > { %v1012_v44 = vrot.slane %v1010_v25, 7  ;;  %v995_v45 = vrot.slane %v993_v28, 7  ;;  %v2403_v49 = vsel %vm1911_vm8, %v2401_v19, %v2402_v23  ;;  %v2914_v52 = vrot.slane %v7055_v15, 1  ;;  %v7078_v1 = vld [vmem:[#allocation2 + $0x50] ss:$0 sps:$4 sm:$0x11]  }
 0x11a   : > { %v1255_v47 = vsel %vm6867_vm11, %v1007_v30, %v1254_v6  ;;  %v1248_v40 = vsel %vm6867_vm11, %v990_v21, %v1247_v17  ;;  %v2913_v62 = vrot.slane %v5681_v51, 1  ;;  %v5632_v0 = vcombine.low %v1431_v42, %v7065_v41  ;;  %v6159_v6 = vpop.f32.mrf.mxu0  ;;  %v1455_v12 = vld [vmem:[#allocation2 + $0x4c] sm:$0xf]  ;;  %v1454_v19 = vld [vmem:[#allocation2 + $0x48] sm:$0xf] }
 0x11b   : > { %1256 = vst [vmem:[#allocation2 + $0x60] sm:$0xf] %v1255_v47  ;;  %v1015_v53 = vor.u32 %v1013_v27, %v1012_v44  ;;  %v1017_v57 = vrot.slane %v1012_v44, 4  ;;  %v998_v60 = vor.u32 %v996_v35, %v995_v45  ;;  %2446 = vrot.lane.b32.xlu0 %v2403_v49, %s6621_s8  ;;  %1249 = vst [vmem:[#allocation2 + $0x54] sm:$0xf] %v1248_v40  ;;  %v1000_v61 = vrot.slane %v995_v45, 4 }
 0x11c   : > { %2078 = vrot.lane.b32.xlu1 %v7063_v39, %s6622_s18  ;;  %v2399_v4 = vrot.slane %v6318_v46, 1  ;;  %v2915_v9 = vsel %vm1911_vm8, %v2913_v62, %v2914_v52  ;;  %v2398_v10 = vrot.slane %v5632_v0, 1  ;;  %v1654_v14 = vshll.u32 %v7031_v38, 16  ;;  %v1326_v28 = vld [vmem:[#allocation2 + $0x34] sm:$0xf] }
 0x11d   : > { %v1016_v2 = vsel %vm6888_vm12, %v1008_v31, %v1015_v53  ;;  %v1259_v33 = vsel %vm6764_vm5, %v1017_v57, %v1258_v48  ;;  %v999_v3 = vsel %vm6888_vm12, %v991_v43, %v998_v60  ;;  %v1252_v7 = vsel %vm6764_vm5, %v1000_v61, %v1251_v36  ;;  %6182 = vmatmul.mubr.msk.bf16.gmra.mxu0 %vm2952_vm13, %v2915_v9  ;;  %v1369_v30 = vld [vmem:[#allocation2 + $0x30] sm:$0xe]  ;;  %v1324_v47 = vld [vmem:[#allocation2 + $0x28] sm:$0xf]  ;;  %v1368_v48 = vld [vmem:[#allocation2 + $0x24] sm:$0xe] }
 0x11e   : > { %1257 = vst.msk [vmem:[#allocation2 + $0x64] sm:$0xf] %vm662_vm2, %v1016_v2  ;;  %1260 = vst [vmem:[#allocation2 + $0x68] sm:$0x1] %v1259_v33  ;;  %v1659_v16 = vshll.u32 %v7016_v13, 16  ;;  %v2657_v17 = vshrl.u32 %v7014_v11, 16  ;;  %v2400_v23 = vsel %vm1911_vm8, %v2398_v10, %v2399_v4  ;;  %v5682_v25 = vcombine.low %v1498_v5, %v1455_v12 }
 0x11f   : > { %1250 = vst.msk [vmem:[#allocation2 + $0x58] sm:$0xf] %vm662_vm2, %v999_v3  ;;  %1253 = vst [vmem:[#allocation2 + $0x5c] sm:$0x1] %v1252_v7  ;;  %v2661_v54 = vrot.slane %v2659_v37, 1  ;;  %v2664_v24 = vshll.u32 %v6998_v59, 16  ;;  %2444 = vrot.lane.b32.xlu0 %v2400_v23, %s6621_s8  ;;  %v567_v37 = vpop.f32.mrf.mxu0  ;;  %v5586_v46 = vcombine.low %v1369_v30, %v1326_v28  ;;  %v7107_v40 = vcombine.low %v1454_v19, %v1455_v12 }
 0x120   : > { %v2917_v27 = vrot.slane %v7078_v1, 1  ;;  %v2647_v31 = vshll.u32 %v7053_v63, 16  ;;  %v1652_v13 = vshrl.u32 %v7031_v38, 16  ;;  %v1656_v35 = vrot.slane %v1654_v14, 1  ;;  %v1325_v44 = vld [vmem:[#allocation2 + $0x30] sm:$0xf] }
 0x121   : > { %v2662_v42 = vor.u32 %v2661_v54, %v2657_v17  ;;  %v7103_v11 = vld [vmem:[#allocation2 + $0x38] ss:$0 sps:$4 sm:$0x11]   ;;  %v2666_v21 = vrot.slane %v2664_v24, 1  ;;  %v2916_v43 = vrot.slane %v5682_v25, 1  ;;  %v1661_v45 = vrot.slane %v1659_v16, 1  ;;  %v6160_v62 = vpop.f32.mrf.mxu0 }
 0x122   : > { %v1657_v59 = vor.u32 %v1656_v35, %v1652_v13  ;;  %v1385_v52 = vld [vmem:[#allocation2 + $0x24] sm:$0xf]  ;;  %v7112_v57 = vcombine.low %v1325_v44, %v1326_v28  ;;  %v1924_v60 = vrot.slane %v5586_v46, 1  ;;  %v1925_v36 = vrot.slane %v7103_v11, 1  ;;  %v1434_v7 = vld [vmem:[#allocation2 + $0x48] sm:$0xe] }
 0x123   : > { %v2667_v49 = vsel %vm1638_vm9, %v2662_v42, %v2666_v21  ;;  %v2918_v51 = vsel %vm1911_vm8, %v2916_v43, %v2917_v27  ;;  %v7115_v61 = vld [vmem:[#allocation2 + $0x2c] ss:$0 sps:$4 sm:$0x11]   ;;  %v2645_v0 = vshrl.u32 %v7053_v63, 16  ;;  %v2649_v2 = vrot.slane %v2647_v31, 1  ;;  %v570_v54 = vpop.f32.mrf.mxu0 }
 0x124   : > { %v1662_v53 = vsel %vm1638_vm9, %v1657_v59, %v1661_v45  ;;  %2828 = vrot.lane.b32.xlu0 %v2667_v49, %s6622_s18  ;;  %6185 = vmatprep.mubr.msk.bf16.mxu0 %vm2952_vm13, %v2918_v51  ;;  %v2652_v33 = vshll.u32 %v6993_v55, 16  ;;  %v5585_v3 = vcombine.low %v1368_v48, %v1324_v47  ;;  %v576_v4 = vadd.f32 %v6159_v6, %v6855_v32  ;;  %v6331_v16 = vld [vmem:[#allocation2 + $0x50] ss:$0 sps:$4 sm:$0x11]   ;;  %v1323_v25 = vld [vmem:[#allocation2 + $0x24] sm:$0xf] }
 0x125   : > { %1833 = vrot.lane.b32.xlu1 %v1662_v53, %s6621_s8  ;;  %v568_v5 = vadd.f32 %v6855_v32, %v567_v37  ;;  %v7123_v9 = vcombine.low %v1385_v52, %v7065_v41  ;;  %v2683_v10 = vshll.u32 %v7107_v40, 16  ;;  %v2650_v12 = vor.u32 %v2649_v2, %v2645_v0  ;;  %v1392_v13 = vld [vmem:[#allocation2 + $0x4c] sm:$0xf]  ;;  %v1452_v35 = vld [vmem:[#allocation2 + $0x3c] sm:$0xf] }
 0x126   : > { %v2654_v14 = vrot.slane %v2652_v33, 1  ;;  %v1926_v63 = vsel %vm1911_vm8, %v1924_v60, %v1925_v36  ;;  %v648_v55 = vmax.f32 %v576_v4, 0.0  ;;  %v1690_v6 = vshll.u32 %v7112_v57, 16  ;;  %v1499_v44 = vld [vmem:[#allocation2 + $0x54] sm:$0xe] }
 0x127   : > { %v646_v17 = vmax.f32 %v568_v5, 0.0  ;;  %v1921_v19 = vrot.slane %v5585_v3, 1  ;;  %v1922_v23 = vrot.slane %v7115_v61, 1  ;;  %v1688_v24 = vshrl.u32 %v7112_v57, 16  ;;  %v7139_v49 = vld [vmem:[#allocation2 + $0x58] sm:$0xf] }
 0x128   : > { %2560 = vrot.lane.b32.xlu0 %v7107_v40, %s6620_s29  ;;  %v2655_v41 = vsel %vm1638_vm9, %v2650_v12, %v2654_v14  ;;  %v5876_v27 = vpack.c.bf16 %v648_v55, %v648_v55  ;;  %v1695_v30 = vshll.u32 %v7103_v11, 16  ;;  %v579_v31 = vadd.f32 %v6160_v62, %v6855_v32  ;;  %v1268_v51 = vld [vmem:[#allocation2 + $0x78] sm:$0xf]  ;;  %v1261_v0 = vld [vmem:[#allocation2 + $0x6c] sm:$0xf] }
 0x129   : > { %2076 = vrot.lane.b32.xlu1 %v7123_v9, %s6622_s18  ;;  %v5874_v28 = vpack.c.bf16 %v646_v17, %v646_v17  ;;  %v1692_v42 = vrot.slane %v1690_v6, 1  ;;  %v571_v37 = vadd.f32 %v6855_v32, %v570_v54  ;;  %v5635_v21 = vcombine.low %v1434_v7, %v1392_v13  ;;  %v1391_v5 = vld [vmem:[#allocation2 + $0x48] sm:$0xf]  ;;  %v7148_v7 = vld [vmem:[#allocation2 + $0x5c] ss:$0 sps:$4 sm:$0x11]  }
 0x12a   : > { %v2408_v43 = vrot.slane %v6331_v16, 1  ;;  %v1036_v59 = vshrl.u32 %v5876_v27, 16  ;;  %v1039_v45 = vshll.u32 %v5876_v27, 16  ;;  %v7142_v11 = vcombine.low %v1323_v25, %v1324_v47  ;;  %v6336_v55 = vld [vmem:[#allocation2 + $0x44] ss:$0 sps:$4 sm:$0x11]  }
 0x12b   : > { %v1019_v46 = vshrl.u32 %v5874_v28, 16  ;;  %v1022_v48 = vshll.u32 %v5874_v28, 16  ;;  %v649_v52 = vmax.f32 %v579_v31, 0.0  ;;  %v647_v53 = vmax.f32 %v571_v37, 0.0  ;;  %v1272_v28 = vld [vmem:[#allocation2 + $0x80] sm:$0x1] }
 0x12c   : > { %2826 = vrot.lane.b32.xlu0 %v2655_v41, %s6622_s18  ;;  %v2407_v60 = vrot.slane %v5635_v21, 1  ;;  %v1923_v32 = vsel %vm1911_vm8, %v1921_v19, %v1922_v23  ;;  %v1038_v36 = vrot.slane %v1036_v59, 7  ;;  %v7146_v2 = vcombine.low %v1452_v35, %v7061_v29  ;;  %v1433_v41 = vld [vmem:[#allocation2 + $0x3c] sm:$0xe]  ;;  %v1265_v21 = vld [vmem:[#allocation2 + $0x74] sm:$0x1] }
 0x12d   : > { %1968 = vrot.lane.b32.xlu1 %v1926_v63, %s6620_s29  ;;  %v1021_v62 = vrot.slane %v1019_v46, 7  ;;  %v1697_v33 = vrot.slane %v1695_v30, 1  ;;  %v5877_v3 = vpack.c.bf16 %v649_v52, %v649_v52  ;;  %v5875_v4 = vpack.c.bf16 %v647_v53, %v647_v53  ;;  %v6163_v53 = vpop.f32.mrf.mxu0  ;;  %v6546_v26 = vld [vmem:[#allocation2 + $0x50] ss:$0 sps:$4 sm:$0x11]  }
 0x12e   : > { %v5683_v47 = vcombine.low %v1499_v44, %v7139_v49  ;;  %v1041_v12 = vor.u32 %v1039_v45, %v1038_v36  ;;  %v1693_v16 = vor.u32 %v1692_v42, %v1688_v24  ;;  %v2409_v63 = vsel %vm1911_vm8, %v2407_v60, %v2408_v43  ;;  %v7160_v42 = vld [vmem:[#allocation2 + $0x40] sm:$0xf]  ;;  %v7167_v45 = vld [vmem:[#allocation2 + $0x68] ss:$0 sps:$4 sm:$0x11]  }
 0x12f   : > { %v1024_v14 = vor.u32 %v1022_v48, %v1021_v62  ;;  %v1044_v29 = vshrl.u32 %v5877_v3, 16  ;;  %v1047_v17 = vshll.u32 %v5877_v3, 16  ;;  %v1027_v6 = vshrl.u32 %v5875_v4, 16 }
 0x130   : > { %2558 = vrot.lane.b32.xlu0 %v7146_v2, %s6620_s29  ;;  %v1030_v54 = vshll.u32 %v5875_v4, 16  ;;  %v1042_v19 = vrot.slane %v1038_v36, 4  ;;  %v1269_v23 = vsel %vm6867_vm11, %v1041_v12, %v1268_v51  ;;  %v1025_v25 = vrot.slane %v1021_v62, 4  ;;  %v1459_v62 = vld [vmem:[#allocation2 + $0x64] sm:$0xf] }
 0x131   : > { %1966 = vrot.lane.b32.xlu1 %v1923_v32, %s6620_s29  ;;  %v1262_v27 = vsel %vm6867_vm11, %v1024_v14, %v1261_v0  ;;  %1270 = vst [vmem:[#allocation2 + $0x78] sm:$0xf] %v1269_v23  ;;  %v1046_v24 = vrot.slane %v1044_v29, 7  ;;  %v1029_v30 = vrot.slane %v1027_v6, 7  ;;  %v2919_v31 = vrot.slane %v5683_v47, 1  ;;  %v583_v23 = vpop.f32.mrf.mxu0 }
 0x132   : > { %1263 = vst [vmem:[#allocation2 + $0x6c] sm:$0xf] %v1262_v27  ;;  %v2920_v35 = vrot.slane %v7148_v7, 1  ;;  %v1698_v37 = vsel %vm1638_vm9, %v1693_v16, %v1697_v33  ;;  %v7164_v43 = vcombine.low %v1391_v5, %v1392_v13  ;;  %v5634_v44 = vcombine.low %v1433_v41, %v7160_v42  ;;  %v1500_v0 = vld [vmem:[#allocation2 + $0x60] sm:$0xe] }
 0x133   : > { %v2405_v59 = vrot.slane %v6336_v55, 1  ;;  %v1049_v46 = vor.u32 %v1047_v17, %v1046_v24  ;;  %v1051_v48 = vrot.slane %v1046_v24, 4  ;;  %v1032_v51 = vor.u32 %v1030_v54, %v1029_v30  ;;  %v1458_v47 = vld [vmem:[#allocation2 + $0x60] sm:$0xf]  ;;  %v1329_v12 = vld [vmem:[#allocation2 + $0x48] sm:$0xf] }
 0x134   : > { %2450 = vrot.lane.b32.xlu0 %v2409_v63, %s6621_s8  ;;  %v1034_v52 = vrot.slane %v1029_v30, 4  ;;  %v2921_v60 = vsel %vm1911_vm8, %v2919_v31, %v2920_v35  ;;  %v2404_v32 = vrot.slane %v5634_v44, 1  ;;  %v1678_v36 = vshll.u32 %v7142_v11, 16  ;;  %v1330_v14 = vld [vmem:[#allocation2 + $0x4c] sm:$0xf] }
 0x135   : > { %1839 = vrot.lane.b32.xlu1 %v1698_v37, %s6621_s8  ;;  %v1683_v13 = vshll.u32 %v7115_v61, 16  ;;  %v1050_v33 = vsel %vm6888_vm12, %v1042_v19, %v1049_v46  ;;  %v1273_v3 = vsel %vm6764_vm5, %v1051_v48, %v1272_v28  ;;  %v1033_v4 = vsel %vm6888_vm12, %v1025_v25, %v1032_v51  ;;  %6186 = vmatmul.mubr.msk.bf16.gmra.mxu0 %vm2952_vm13, %v2921_v60  ;;  %v1371_v29 = vld [vmem:[#allocation2 + $0x48] sm:$0xe]  ;;  %v6343_v19 = vld [vmem:[#allocation2 + $0x50] ss:$0 sps:$4 sm:$0x11]  }
 0x136   : > { %v1266_v5 = vsel %vm6764_vm5, %v1034_v52, %v1265_v21  ;;  %1271 = vst.msk [vmem:[#allocation2 + $0x7c] sm:$0xf] %vm662_vm2, %v1050_v33  ;;  %1274 = vst [vmem:[#allocation2 + $0x80] sm:$0x1] %v1273_v3  ;;  %v2406_v61 = vsel %vm1911_vm8, %v2404_v32, %v2405_v59  ;;  %v1676_v16 = vshrl.u32 %v7142_v11, 16  ;;  %v1680_v63 = vrot.slane %v1678_v36, 1  ;;  %v6164_v52 = vpop.f32.mrf.mxu0 }
 0x137   : > { %1264 = vst.msk [vmem:[#allocation2 + $0x70] sm:$0xf] %vm662_vm2, %v1033_v4  ;;  %1267 = vst [vmem:[#allocation2 + $0x74] sm:$0x1] %v1266_v5  ;;  %v2681_v55 = vshrl.u32 %v7107_v40, 16  ;;  %v2685_v17 = vrot.slane %v2683_v10, 1  ;;  %v5684_v54 = vcombine.low %v1500_v0, %v1459_v62  ;;  %v5588_v35 = vcombine.low %v1371_v29, %v1330_v14 }
 0x138   : > { %2448 = vrot.lane.b32.xlu0 %v2406_v61, %s6621_s8  ;;  %v2688_v6 = vshll.u32 %v7078_v1, 16  ;;  %v2923_v41 = vrot.slane %v7167_v45, 1  ;;  %v2671_v25 = vshll.u32 %v7146_v2, 16  ;;  %v1681_v27 = vor.u32 %v1680_v63, %v1676_v16  ;;  %v1389_v21 = vld [vmem:[#allocation2 + $0x3c] sm:$0xf]  ;;  %v586_v61 = vpop.f32.mrf.mxu0 }
 0x139   : > { %2082 = vrot.lane.b32.xlu1 %v7164_v43, %s6622_s18  ;;  %v1685_v28 = vrot.slane %v1683_v13, 1  ;;  %v2686_v24 = vor.u32 %v2685_v17, %v2681_v55  ;;  %v2922_v31 = vrot.slane %v5684_v54, 1  ;;  %v7196_v40 = vcombine.low %v1458_v47, %v1459_v62  ;;  %v1370_v1 = vld [vmem:[#allocation2 + $0x3c] sm:$0xe]  ;;  %v1328_v51 = vld [vmem:[#allocation2 + $0x40] sm:$0xf] }
 0x13a   : > { %v2690_v30 = vrot.slane %v2688_v6, 1  ;;  %v7198_v10 = vcombine.low %v1329_v12, %v1330_v14  ;;  %v1930_v46 = vrot.slane %v5588_v35, 1  ;;  %v1931_v48 = vrot.slane %v6343_v19, 1  ;;  %v7207_v13 = vld [vmem:[#allocation2 + $0x44] ss:$0 sps:$4 sm:$0x11]  }
 0x13b   : > { %v1686_v37 = vsel %vm1638_vm9, %v1681_v27, %v1685_v28  ;;  %v2924_v59 = vsel %vm1911_vm8, %v2922_v31, %v2923_v41  ;;  %v2669_v60 = vshrl.u32 %v7146_v2, 16  ;;  %v2673_v32 = vrot.slane %v2671_v25, 1  ;;  %v7215_v4 = vld [vmem:[%s8627_s2] ss:$0 sm:$0xff]  ;;  %v1436_v29 = vld [vmem:[#allocation2 + $0x60] sm:$0xe] }
 0x13c   : > { %v2691_v44 = vsel %vm1638_vm9, %v2686_v24, %v2690_v30  ;;  %6189 = vmatprep.mubr.msk.bf16.mxu0 %vm2952_vm13, %v2924_v59  ;;  %v2676_v36 = vshll.u32 %v7055_v15, 16  ;;  %v7210_v62 = vcombine.low %v1389_v21, %v7160_v42  ;;  %v5587_v0 = vcombine.low %v1370_v1, %v1328_v51  ;;  %v6349_v47 = vld [vmem:[#allocation2 + $0x68] ss:$0 sps:$4 sm:$0x11]   ;;  %v1456_v54 = vld [vmem:[#allocation2 + $0x54] sm:$0xf] }
 0x13d   : > { %1837 = vrot.lane.b32.xlu1 %v1686_v37, %s6621_s8  ;;  %2832 = vrot.lane.b32.xlu0 %v2691_v44, %s6622_s18  ;;  %v2674_v33 = vor.u32 %v2673_v32, %v2669_v60  ;;  %v592_v5 = vadd.f32 %v7215_v4, %v6163_v53  ;;  %v584_v2 = vadd.f32 %v7215_v4, %v583_v23  ;;  %v2707_v15 = vshll.u32 %v7196_v40, 16  ;;  %v1396_v30 = vld [vmem:[#allocation2 + $0x64] sm:$0xf]  ;;  %v1501_v1 = vld [vmem:[#allocation2 + $0x6c] sm:$0xe] }
 0x13e   : > { %v2678_v3 = vrot.slane %v2676_v36, 1  ;;  %v1932_v42 = vsel %vm1911_vm8, %v1930_v46, %v1931_v48  ;;  %v1712_v12 = vshrl.u32 %v7198_v10, 16  ;;  %v1714_v14 = vshll.u32 %v7198_v10, 16  ;;  %v7232_v21 = vld [vmem:[#allocation2 + $0x70] sm:$0xf] }
 0x13f   : > { %v1928_v53 = vrot.slane %v7207_v13, 1  ;;  %v652_v16 = vmax.f32 %v592_v5, 0.0  ;;  %v650_v63 = vmax.f32 %v584_v2, 0.0  ;;  %v1719_v55 = vshll.u32 %v6343_v19, 16  ;;  %v1327_v44 = vld [vmem:[#allocation2 + $0x3c] sm:$0xf] }
 0x140   : > { %v2679_v17 = vsel %vm1638_vm9, %v2674_v33, %v2678_v3  ;;  %v1927_v6 = vrot.slane %v5587_v0, 1  ;;  %v1716_v41 = vrot.slane %v1714_v14, 1  ;;  %v595_v23 = vadd.f32 %v7215_v4, %v6164_v52  ;;  %v1282_v60 = vld [vmem:[#allocation2 + $0x90] sm:$0xf] }
 0x141   : > { %2080 = vrot.lane.b32.xlu1 %v7210_v62, %s6622_s18  ;;  %2564 = vrot.lane.b32.xlu0 %v7196_v40, %s6620_s29  ;;  %v5880_v25 = vpack.c.bf16 %v652_v16, %v652_v16  ;;  %v5878_v27 = vpack.c.bf16 %v650_v63, %v650_v63  ;;  %v1721_v28 = vrot.slane %v1719_v55, 1  ;;  %v587_v24 = vadd.f32 %v7215_v4, %v586_v61  ;;  %v1395_v63 = vld [vmem:[#allocation2 + $0x60] sm:$0xf] }
 0x142   : > { %v1717_v31 = vor.u32 %v1716_v41, %v1712_v12  ;;  %v653_v35 = vmax.f32 %v595_v23, 0.0  ;;  %v5637_v37 = vcombine.low %v1436_v29, %v1396_v30  ;;  %v2414_v19 = vrot.slane %v6349_v47, 1  ;;  %v1275_v47 = vld [vmem:[#allocation2 + $0x84] sm:$0xf] }
 0x143   : > { %v1070_v59 = vshrl.u32 %v5880_v25, 16  ;;  %v1073_v46 = vshll.u32 %v5880_v25, 16  ;;  %v1053_v48 = vshrl.u32 %v5878_v27, 16  ;;  %v1056_v52 = vshll.u32 %v5878_v27, 16 }
 0x144   : > { %v7236_v32 = vcombine.low %v1456_v54, %v7139_v49  ;;  %v5881_v36 = vpack.c.bf16 %v653_v35, %v653_v35  ;;  %v651_v0 = vmax.f32 %v587_v24, 0.0  ;;  %v2413_v33 = vrot.slane %v5637_v37, 1  ;;  %v7243_v49 = vld [vmem:[#allocation2 + $0x74] ss:$0 sps:$4 sm:$0x11]  }
 0x145   : > { %1972 = vrot.lane.b32.xlu1 %v1932_v42, %s6620_s29  ;;  %2830 = vrot.lane.b32.xlu0 %v2679_v17, %s6622_s18  ;;  %v1929_v3 = vsel %vm1911_vm8, %v1927_v6, %v1928_v53  ;;  %v1072_v5 = vrot.slane %v1070_v59, 7  ;;  %v1055_v2 = vrot.slane %v1053_v48, 7  ;;  %v5685_v42 = vcombine.low %v1501_v1, %v7232_v21  ;;  %v1435_v6 = vld [vmem:[#allocation2 + $0x54] sm:$0xe]  ;;  %v1286_v37 = vld [vmem:[#allocation2 + $0x98] sm:$0x1] }
 0x146   : > { %v7240_v12 = vcombine.low %v1327_v44, %v1328_v51  ;;  %v1078_v14 = vshrl.u32 %v5881_v36, 16  ;;  %v1081_v61 = vshll.u32 %v5881_v36, 16  ;;  %v5879_v16 = vpack.c.bf16 %v651_v0, %v651_v0  ;;  %v6354_v51 = vld [vmem:[#allocation2 + $0x5c] ss:$0 sps:$4 sm:$0x11]  }
 0x147   : > { %v1075_v55 = vor.u32 %v1073_v46, %v1072_v5  ;;  %v1058_v29 = vor.u32 %v1056_v52, %v1055_v2  ;;  %v1722_v53 = vsel %vm1638_vm9, %v1717_v31, %v1721_v28  ;;  %v2415_v17 = vsel %vm1911_vm8, %v2413_v33, %v2414_v19  ;;  %v7255_v59 = vld [vmem:[#allocation2 + $0x58] sm:$0xf]  ;;  %v1279_v46 = vld [vmem:[#allocation2 + $0x8c] sm:$0x1] }
 0x148   : > { %v1076_v54 = vrot.slane %v1072_v5, 4  ;;  %v1080_v41 = vrot.slane %v1078_v14, 7  ;;  %v1061_v23 = vshrl.u32 %v5879_v16, 16  ;;  %v1064_v25 = vshll.u32 %v5879_v16, 16  ;;  %v1502_v16 = vld [vmem:[#allocation2 + $0x78] sm:$0xe] }
 0x149   : > { %1970 = vrot.lane.b32.xlu1 %v1929_v3, %s6620_s29  ;;  %2562 = vrot.lane.b32.xlu0 %v7236_v32, %s6620_s29  ;;  %v1283_v27 = vsel %vm6867_vm11, %v1075_v55, %v1282_v60  ;;  %v1059_v24 = vrot.slane %v1055_v2, 4  ;;  %v1276_v35 = vsel %vm6867_vm11, %v1058_v29, %v1275_v47  ;;  %v2925_v1 = vrot.slane %v5685_v42, 1  ;;  %v7266_v2 = vld [vmem:[#allocation2 + $0x80] ss:$0 sps:$4 sm:$0x11]   ;;  %v6167_v47 = vpop.f32.mrf.mxu0 }
 0x14a   : > { %1284 = vst [vmem:[#allocation2 + $0x90] sm:$0xf] %v1283_v27  ;;  %1277 = vst [vmem:[#allocation2 + $0x84] sm:$0xf] %v1276_v35  ;;  %v1083_v28 = vor.u32 %v1081_v61, %v1080_v41  ;;  %v1085_v31 = vrot.slane %v1080_v41, 4  ;;  %v1063_v19 = vrot.slane %v1061_v23, 7  ;;  %v7258_v48 = vcombine.low %v1395_v63, %v1396_v30 }
 0x14b   : > { %v2926_v44 = vrot.slane %v7243_v49, 1  ;;  %v5636_v52 = vcombine.low %v1435_v6, %v7255_v59  ;;  %v2411_v60 = vrot.slane %v6354_v51, 1  ;;  %v1700_v36 = vshrl.u32 %v7240_v12, 16  ;;  %v1373_v6 = vld [vmem:[#allocation2 + $0x60] sm:$0xe] }
 0x14c   : > { %v1084_v0 = vsel %vm6888_vm12, %v1076_v54, %v1083_v28  ;;  %v1287_v33 = vsel %vm6764_vm5, %v1085_v31, %v1286_v37  ;;  %v1066_v3 = vor.u32 %v1064_v25, %v1063_v19  ;;  %v1068_v5 = vrot.slane %v1063_v19, 4  ;;  %v6361_v23 = vld [vmem:[#allocation2 + $0x68] ss:$0 sps:$4 sm:$0x11]   ;;  %v1333_v28 = vld [vmem:[#allocation2 + $0x60] sm:$0xf] }
 0x14d   : > { %1843 = vrot.lane.b32.xlu1 %v1722_v53, %s6621_s8  ;;  %2454 = vrot.lane.b32.xlu0 %v2415_v17, %s6621_s8  ;;  %1285 = vst.msk [vmem:[#allocation2 + $0x94] sm:$0xf] %vm662_vm2, %v1084_v0  ;;  %1288 = vst [vmem:[#allocation2 + $0x98] sm:$0x1] %v1287_v33  ;;  %v2927_v30 = vsel %vm1911_vm8, %v2925_v1, %v2926_v44  ;;  %v2410_v42 = vrot.slane %v5636_v52, 1  ;;  %v1702_v14 = vshll.u32 %v7240_v12, 16 }
 0x14e   : > { %v1707_v61 = vshll.u32 %v7207_v13, 16  ;;  %v1067_v63 = vsel %vm6888_vm12, %v1059_v24, %v1066_v3  ;;  %v1280_v55 = vsel %vm6764_vm5, %v1068_v5, %v1279_v46  ;;  %6190 = vmatmul.mubr.msk.bf16.gmra.mxu0 %vm2952_vm13, %v2927_v30  ;;  %v2705_v29 = vshrl.u32 %v7196_v40, 16  ;;  %v1463_v17 = vld [vmem:[#allocation2 + $0x7c] sm:$0xf]  ;;  %v599_v40 = vpop.f32.mrf.mxu0  ;;  %v1393_v1 = vld [vmem:[#allocation2 + $0x54] sm:$0xf] }
 0x14f   : > { %v2709_v53 = vrot.slane %v2707_v15, 1  ;;  %1278 = vst.msk [vmem:[#allocation2 + $0x88] sm:$0xf] %vm662_vm2, %v1067_v63  ;;  %1281 = vst [vmem:[#allocation2 + $0x8c] sm:$0x1] %v1280_v55  ;;  %v2412_v13 = vsel %vm1911_vm8, %v2410_v42, %v2411_v60  ;;  %v1704_v51 = vrot.slane %v1702_v14, 1  ;;  %v5686_v27 = vcombine.low %v1502_v16, %v1463_v17 }
 0x150   : > { %v1709_v54 = vrot.slane %v1707_v61, 1  ;;  %v2712_v41 = vshll.u32 %v7167_v45, 16  ;;  %v2929_v24 = vrot.slane %v7266_v2, 1  ;;  %v2695_v15 = vshll.u32 %v7236_v32, 16  ;;  %v1334_v31 = vld [vmem:[#allocation2 + $0x64] sm:$0xf]  ;;  %v6168_v61 = vpop.f32.mrf.mxu0 }
 0x151   : > { %2086 = vrot.lane.b32.xlu1 %v7258_v48, %s6622_s18  ;;  %2452 = vrot.lane.b32.xlu0 %v2412_v13, %s6621_s8  ;;  %v2710_v25 = vor.u32 %v2709_v53, %v2705_v29  ;;  %v1705_v35 = vor.u32 %v1704_v51, %v1700_v36  ;;  %v2928_v19 = vrot.slane %v5686_v27, 1  ;;  %v1462_v44 = vld [vmem:[#allocation2 + $0x78] sm:$0xf]  ;;  %v5590_v46 = vcombine.low %v1373_v6, %v1334_v31  ;;  %v1372_v52 = vld [vmem:[#allocation2 + $0x54] sm:$0xe] }
 0x152   : > { %v2714_v37 = vrot.slane %v2712_v41, 1  ;;  %v1937_v0 = vrot.slane %v6361_v23, 1  ;;  %v1331_v33 = vld [vmem:[#allocation2 + $0x54] sm:$0xf]  ;;  %v1332_v3 = vld [vmem:[#allocation2 + $0x58] sm:$0xf]  ;;  %v7293_v5 = vcombine.low %v1333_v28, %v1334_v31  ;;  %v7301_v29 = vcombine.low %v1393_v1, %v7255_v59  ;;  %v602_v27 = vpop.f32.mrf.mxu0 }
 0x153   : > { %v1710_v45 = vsel %vm1638_vm9, %v1705_v35, %v1709_v54  ;;  %v2930_v36 = vsel %vm1911_vm8, %v2928_v19, %v2929_v24  ;;  %v1936_v30 = vrot.slane %v5590_v46, 1  ;;  %v2693_v42 = vshrl.u32 %v7236_v32, 16  ;;  %v7296_v14 = vld [vmem:[#allocation2 + $0x5c] ss:$0 sps:$4 sm:$0x11]  }
 0x154   : > { %v2715_v60 = vsel %vm1638_vm9, %v2710_v25, %v2714_v37  ;;  %8657 = vst [vmem:[#allocation7_spill] sm:$0xff] %v7293_v5  ;;  %6193 = vmatprep.mubr.msk.bf16.mxu0 %vm2952_vm13, %v2930_v36  ;;  %v2697_v16 = vrot.slane %v2695_v15, 1  ;;  %v2700_v63 = vshll.u32 %v7148_v7, 16  ;;  %v5589_v55 = vcombine.low %v1372_v52, %v1332_v3  ;;  %v769_v25 = vld [vmem:[#allocation2 + $0xa4] sm:$0x1] }
 0x155   : > { %1841 = vrot.lane.b32.xlu1 %v1710_v45, %s6621_s8  ;;  %2836 = vrot.lane.b32.xlu0 %v2715_v60, %s6622_s18  ;;  %v7303_v53 = vcombine.low %v1462_v44, %v1463_v17  ;;  %v608_v6 = vadd.f32 %v7215_v4, %v6167_v47  ;;  %v600_v13 = vadd.f32 %v7215_v4, %v599_v40  ;;  %v1934_v7 = vrot.slane %v7296_v14, 1  ;;  %v1438_v24 = vld [vmem:[#allocation2 + $0x78] sm:$0xe]  ;;  %v1460_v35 = vld [vmem:[#allocation2 + $0x6c] sm:$0xf] }
 0x156   : > { %v1938_v32 = vsel %vm1911_vm8, %v1936_v30, %v1937_v0  ;;  %v2698_v51 = vor.u32 %v2697_v16, %v2693_v42  ;;  %v2702_v54 = vrot.slane %v2700_v63, 1  ;;  %v7308_v41 = vcombine.low %v1331_v33, %v1332_v3  ;;  %v1400_v46 = vld [vmem:[#allocation2 + $0x7c] sm:$0xf]  ;;  %v6367_v52 = vld [vmem:[#allocation2 + $0x80] ss:$0 sps:$4 sm:$0x11]  }
 0x157   : > { %v656_v59 = vmax.f32 %v608_v6, 0.0  ;;  %v654_v17 = vmax.f32 %v600_v13, 0.0  ;;  %v1738_v47 = vshll.u32 %v7293_v5, 16  ;;  %v1933_v15 = vrot.slane %v5589_v55, 1  ;;  %v1503_v3 = vld [vmem:[#allocation2 + $0x84] sm:$0xe] }
 0x158   : > { %8658 = vst [vmem:[#allocation8_spill] sm:$0xff] %v7308_v41  ;;  %v2703_v40 = vsel %vm1638_vm9, %v2698_v51, %v2702_v54  ;;  %v1736_v37 = vshrl.u32 %v7293_v5, 16  ;;  %v1743_v1 = vshll.u32 %v6361_v23, 16  ;;  %v611_v44 = vadd.f32 %v7215_v4, %v6168_v61  ;;  %v7324_v61 = vld [vmem:[#allocation2 + $0x88] sm:$0xf] }
 0x159   : > { %2084 = vrot.lane.b32.xlu1 %v7301_v29, %s6622_s18  ;;  %2568 = vrot.lane.b32.xlu0 %v7303_v53, %s6620_s29  ;;  %v5884_v28 = vpack.c.bf16 %v656_v59, %v656_v59  ;;  %v5882_v31 = vpack.c.bf16 %v654_v17, %v654_v17  ;;  %v1740_v19 = vrot.slane %v1738_v47, 1  ;;  %v603_v60 = vadd.f32 %v7215_v4, %v602_v27  ;;  %v1296_v16 = vld [vmem:[#allocation2 + $0xa8] sm:$0xf] }
 0x15a   : > { %v1745_v45 = vrot.slane %v1743_v1, 1  ;;  %v770_v0 = vsel %vm6786_vm7, 0, %v769_v25  ;;  %v5639_v33 = vcombine.low %v1438_v24, %v1400_v46  ;;  %v7327_v63 = vcombine.low %v1460_v35, %v7232_v21  ;;  %v1289_v25 = vld [vmem:[#allocation2 + $0x9c] sm:$0xf] }
 0x15b   : > { %v1104_v23 = vshrl.u32 %v5884_v28, 16  ;;  %v1107_v36 = vshll.u32 %v5884_v28, 16  ;;  %v1087_v30 = vshrl.u32 %v5882_v31, 16  ;;  %v1090_v42 = vshll.u32 %v5882_v31, 16  ;;  %771 = vst [vmem:[#allocation2 + $0xa4] sm:$0x1] %v770_v0 }
 0x15c   : > { %v1741_v55 = vor.u32 %v1740_v19, %v1736_v37  ;;  %v657_v6 = vmax.f32 %v611_v44, 0.0  ;;  %v655_v13 = vmax.f32 %v603_v60, 0.0  ;;  %v1935_v51 = vsel %vm1911_vm8, %v1933_v15, %v1934_v7  ;;  %v1399_v15 = vld [vmem:[#allocation2 + $0x78] sm:$0xf] }
 0x15d   : > { %1976 = vrot.lane.b32.xlu1 %v1938_v32, %s6620_s29  ;;  %2834 = vrot.lane.b32.xlu0 %v2703_v40, %s6622_s18  ;;  %v1106_v54 = vrot.slane %v1104_v23, 7  ;;  %v1089_v32 = vrot.slane %v1087_v30, 7  ;;  %v2419_v59 = vrot.slane %v5639_v33, 1  ;;  %v2420_v27 = vrot.slane %v6367_v52, 1  ;;  %v1437_v52 = vld [vmem:[#allocation2 + $0x6c] sm:$0xe] }
 0x15e   : > { %v5885_v17 = vpack.c.bf16 %v657_v6, %v657_v6  ;;  %v5883_v47 = vpack.c.bf16 %v655_v13, %v655_v13  ;;  %v5687_v24 = vcombine.low %v1503_v3, %v7324_v61  ;;  %v6374_v40 = vld [vmem:[#allocation2 + $0x74] ss:$0 sps:$4 sm:$0x11]   ;;  %v2731_v1 = vshll.u32 %v7303_v53, 16  ;;  %v1300_v23 = vld [vmem:[#allocation2 + $0xb0] sm:$0x1] }
 0x15f   : > { %v1109_v21 = vor.u32 %v1107_v36, %v1106_v54  ;;  %v1092_v35 = vor.u32 %v1090_v42, %v1089_v32  ;;  %v1746_v7 = vsel %vm1638_vm9, %v1741_v55, %v1745_v45  ;;  %v7336_v37 = vld [vmem:[#allocation2 + $0x8c] ss:$0 sps:$4 sm:$0x11]   ;;  %v1110_v60 = vrot.slane %v1106_v54, 4  ;;  %v7343_v55 = vld [vmem:[#allocation2 + $0x70] sm:$0xf] }
 0x160   : > { %v1112_v28 = vshrl.u32 %v5885_v17, 16  ;;  %v1115_v31 = vshll.u32 %v5885_v17, 16  ;;  %v1095_v19 = vshrl.u32 %v5883_v47, 16  ;;  %v1098_v44 = vshll.u32 %v5883_v47, 16 }
 0x161   : > { %1974 = vrot.lane.b32.xlu1 %v1935_v51, %s6620_s29  ;;  %2566 = vrot.lane.b32.xlu0 %v7327_v63, %s6620_s29  ;;  %v1297_v0 = vsel %vm6867_vm11, %v1109_v21, %v1296_v16  ;;  %v1093_v33 = vrot.slane %v1089_v32, 4  ;;  %v1290_v3 = vsel %vm6867_vm11, %v1092_v35, %v1289_v25  ;;  %v2421_v30 = vsel %vm1911_vm8, %v2419_v59, %v2420_v27  ;;  %v7351_v59 = vld [vmem:[#allocation2 + $0x98] ss:$0 sps:$4 sm:$0x11]  }
 0x162   : > { %1298 = vst [vmem:[#allocation2 + $0xa8] sm:$0xf] %v1297_v0  ;;  %1291 = vst [vmem:[#allocation2 + $0x9c] sm:$0xf] %v1290_v3  ;;  %v1114_v45 = vrot.slane %v1112_v28, 7  ;;  %v1097_v36 = vrot.slane %v1095_v19, 7  ;;  %v7347_v16 = vcombine.low %v1399_v15, %v1400_v46  ;;  %v5638_v51 = vcombine.low %v1437_v52, %v7343_v55 }
 0x163   : > { %v2931_v42 = vrot.slane %v5687_v24, 1  ;;  %v1293_v6 = vld [vmem:[#allocation2 + $0xa4] sm:$0x1]  ;;  %v2932_v13 = vrot.slane %v7336_v37, 1  ;;  %v2417_v54 = vrot.slane %v6374_v40, 1  ;;  %v1724_v21 = vshrl.u32 %v7308_v41, 16 }
 0x164   : > { %8659 = vst [vmem:[#allocation9_spill] sm:$0xff] %v7347_v16  ;;  %v1117_v32 = vor.u32 %v1115_v31, %v1114_v45  ;;  %v1119_v25 = vrot.slane %v1114_v45, 4  ;;  %v1100_v17 = vor.u32 %v1098_v44, %v1097_v36  ;;  %v1102_v47 = vrot.slane %v1097_v36, 4  ;;  %v1504_v46 = vld [vmem:[#allocation2 + $0x90] sm:$0xe]  ;;  %v7375_v36 = vpop.permute.xlu1 %1960 }
 0x165   : > { %1847 = vrot.lane.b32.xlu1 %v1746_v7, %s6621_s8  ;;  %2458 = vrot.lane.b32.xlu0 %v2421_v30, %s6621_s8  ;;  %v2933_v27 = vsel %vm1911_vm8, %v2931_v42, %v2932_v13  ;;  %v2416_v24 = vrot.slane %v5638_v51, 1  ;;  %v1726_v35 = vshll.u32 %v7308_v41, 16  ;;  %v1731_v44 = vshll.u32 %v7296_v14, 16  ;;  %v1337_v45 = vld [vmem:[#allocation2 + $0x78] sm:$0xf] }
 0x166   : > { %v1118_v7 = vsel %vm6888_vm12, %v1110_v60, %v1117_v32  ;;  %v1301_v40 = vsel %vm6764_vm5, %v1119_v25, %v1300_v23  ;;  %v1101_v15 = vsel %vm6888_vm12, %v1093_v33, %v1100_v17  ;;  %v1294_v28 = vsel %vm6764_vm5, %v1102_v47, %v1293_v6  ;;  %6194 = vmatmul.mubr.msk.bf16.gmra.mxu0 %vm2952_vm13, %v2933_v27  ;;  %v1467_v60 = vld [vmem:[#allocation2 + $0x94] sm:$0xf]  ;;  %v1338_v13 = vld [vmem:[#allocation2 + $0x7c] sm:$0xf]  ;;  %v1375_v14 = vld [vmem:[#allocation2 + $0x78] sm:$0xe]  ;;  %v6171_v27 = vpop.f32.mrf.mxu0 }
 0x167   : > { %1299 = vst.msk [vmem:[#allocation2 + $0xac] sm:$0xf] %vm662_vm2, %v1118_v7  ;;  %1302 = vst [vmem:[#allocation2 + $0xb0] sm:$0x1] %v1301_v40  ;;  %v2418_v31 = vsel %vm1911_vm8, %v2416_v24, %v2417_v54  ;;  %v1728_v19 = vrot.slane %v1726_v35, 1  ;;  %v2729_v52 = vshrl.u32 %v7303_v53, 16  ;;  %v5688_v3 = vcombine.low %v1504_v46, %v1467_v60 }
 0x168   : > { %1292 = vst.msk [vmem:[#allocation2 + $0xa0] sm:$0xf] %vm662_vm2, %v1101_v15  ;;  %1295 = vst [vmem:[#allocation2 + $0xa4] sm:$0x1] %v1294_v28  ;;  %v2733_v0 = vrot.slane %v2731_v1, 1  ;;  %v2736_v33 = vshll.u32 %v7266_v2, 16  ;;  %v5592_v46 = vcombine.low %v1375_v14, %v1338_v13  ;;  %v7389_v15 = vcombine.low %v1337_v45, %v1338_v13 }
 0x169   : > { %2090 = vrot.lane.b32.xlu1 %v7347_v16, %s6622_s18  ;;  %2456 = vrot.lane.b32.xlu0 %v2418_v31, %s6621_s8  ;;  %v2935_v23 = vrot.slane %v7351_v59, 1  ;;  %v2719_v30 = vshll.u32 %v7327_v63, 16  ;;  %v1729_v42 = vor.u32 %v1728_v19, %v1724_v21  ;;  %v1733_v6 = vrot.slane %v1731_v44, 1  ;;  %v7378_v32 = vld [vmem:[#allocation2 + $0x80] ss:$0 sps:$4 sm:$0x11]  }
 0x16a   : > { %v2734_v51 = vor.u32 %v2733_v0, %v2729_v52  ;;  %v2738_v53 = vrot.slane %v2736_v33, 1  ;;  %v2934_v54 = vrot.slane %v5688_v3, 1  ;;  %v2155_v25 = vshll.u32 %v6995_v56, 16  ;;  %v1397_v47 = vld [vmem:[#allocation2 + $0x6c] sm:$0xf]  ;;  %8660 = vst [vmem:[#allocation10_spill] sm:$0xff] %v7389_v15 }
 0x16b   : > { %v1734_v17 = vsel %vm1638_vm9, %v1729_v42, %v1733_v6  ;;  %v1466_v35 = vld [vmem:[#allocation2 + $0x90] sm:$0xf]  ;;  %v1374_v7 = vld [vmem:[#allocation2 + $0x6c] sm:$0xe]  ;;  %v722_v40 = vld [vmem:[#allocation2 + $0xc0] sm:$0x1]  ;;  %v7396_v52 = vcombine.low %v1397_v47, %v7343_v55 }
 0x16c   : > { %v2739_v24 = vsel %vm1638_vm9, %v2734_v51, %v2738_v53  ;;  %v2936_v21 = vsel %vm1911_vm8, %v2934_v54, %v2935_v23  ;;  %v2717_v28 = vshrl.u32 %v7327_v63, 16  ;;  %v2721_v31 = vrot.slane %v2719_v30, 1  ;;  %v7393_v44 = vld [vmem:[#allocation2 + $0x74] ss:$0 sps:$4 sm:$0x11]   ;;  %v7399_v23 = vpop.permute.xlu0 %1831  ;;  %v615_v30 = vpop.f32.mrf.mxu0 }
 0x16d   : > { %1845 = vrot.lane.b32.xlu1 %v1734_v17, %s6621_s8  ;;  %2840 = vrot.lane.b32.xlu0 %v2739_v24, %s6622_s18  ;;  %v2724_v19 = vshll.u32 %v7243_v49, 16  ;;  %v1942_v0 = vrot.slane %v5592_v46, 1  ;;  %v1943_v33 = vrot.slane %v7378_v32, 1  ;;  %v1336_v3 = vld [vmem:[#allocation2 + $0x70] sm:$0xf]  ;;  %v7403_v45 = vrot.slane %v2155_v25, 1 }
 0x16e   : > { %6197 = vmatprep.mubr.msk.bf16.mxu0 %vm2952_vm13, %v2936_v21  ;;  %v7405_v6 = vcombine.low %v1466_v35, %v1467_v60  ;;  %v5591_v63 = vcombine.low %v1374_v7, %v1336_v3  ;;  %v624_v49 = vadd.f32 %v7215_v4, %v6171_v27  ;;  %v2722_v55 = vor.u32 %v2721_v31, %v2717_v28  ;;  %v719_v51 = vld [vmem:[#allocation2 + $0xb4] sm:$0x1]  ;;  %v778_v54 = vld [vmem:[#allocation2 + $0xc8] sm:$0x1]  ;;  %v1440_v25 = vld [vmem:[#allocation2 + $0x90] sm:$0xe]  ;;  %v6172_v31 = vpop.f32.mrf.mxu0 }
 0x16f   : > { %v2726_v13 = vrot.slane %v2724_v19, 1  ;;  %v723_v14 = vsel %vm6764_vm5, 0, %v722_v40  ;;  %v1762_v60 = vshll.u32 %v7389_v15, 16  ;;  %v1944_v17 = vsel %vm1911_vm8, %v1942_v0, %v1943_v33  ;;  %v1335_v21 = vld [vmem:[#allocation2 + $0x6c] sm:$0xf] }
 0x170   : > { %v7401_v42 = vpop.permute.xlu1 %2552  ;;  %v660_v53 = vmax.f32 %v624_v49, 0.0  ;;  %724 = vst [vmem:[#allocation2 + $0xc0] sm:$0x1] %v723_v14  ;;  %v1940_v47 = vrot.slane %v7393_v44, 1  ;;  %v1760_v27 = vshrl.u32 %v7389_v15, 16  ;;  %v1767_v24 = vshll.u32 %v7378_v32, 16 }
 0x171   : > { %2088 = vrot.lane.b32.xlu1 %v7396_v52, %s6622_s18  ;;  %2572 = vrot.lane.b32.xlu0 %v7405_v6, %s6620_s29  ;;  %v1939_v35 = vrot.slane %v5591_v63, 1  ;;  %v1764_v7 = vrot.slane %v1762_v60, 1  ;;  %v616_v40 = vadd.f32 %v7215_v4, %v615_v30  ;;  %v6397_v19 = vld [vmem:[#allocation2 + $0x98] ss:$0 sps:$4 sm:$0x11]   ;;  %v2727_v0 = vsel %vm1638_vm9, %v2722_v55, %v2726_v13 }
 0x172   : > { %v5888_v46 = vpack.c.bf16 %v660_v53, %v660_v53  ;;  %v1464_v33 = vld [vmem:[#allocation2 + $0x84] sm:$0xf]  ;;  %v720_v32 = vsel %vm6764_vm5, 0, %v719_v51  ;;  %v627_v63 = vadd.f32 %v7215_v4, %v6172_v31  ;;  %v1769_v60 = vrot.slane %v1767_v24, 1  ;;  %v1404_v1 = vld [vmem:[#allocation2 + $0x94] sm:$0xf] }
 0x173   : > { %v658_v22 = vmax.f32 %v616_v40, 0.0  ;;  %721 = vst [vmem:[#allocation2 + $0xb4] sm:$0x1] %v720_v32  ;;  %v1765_v49 = vor.u32 %v1764_v7, %v1760_v27  ;;  %v779_v55 = vsel %vm6786_vm7, 0, %v778_v54  ;;  %v5641_v13 = vcombine.low %v1440_v25, %v1404_v1  ;;  %v1403_v54 = vld [vmem:[#allocation2 + $0x90] sm:$0xf]  ;;  %v618_v25 = vpop.f32.mrf.mxu0 }
 0x174   : > { %v1138_v30 = vshrl.u32 %v5888_v46, 16  ;;  %v1141_v53 = vshll.u32 %v5888_v46, 16  ;;  %v1941_v2 = vsel %vm1911_vm8, %v1939_v35, %v1940_v47  ;;  %v7435_v51 = vcombine.low %v1464_v33, %v7324_v61  ;;  %780 = vst [vmem:[#allocation2 + $0xc8] sm:$0x1] %v779_v55 }
 0x175   : > { %1980 = vrot.lane.b32.xlu1 %v1944_v17, %s6620_s29  ;;  %2838 = vrot.lane.b32.xlu0 %v2727_v0, %s6622_s18  ;;  %v661_v17 = vmax.f32 %v627_v63, 0.0  ;;  %v5886_v31 = vpack.c.bf16 %v658_v22, %v658_v22  ;;  %v7439_v24 = vcombine.low %v1335_v21, %v1336_v3  ;;  %v2425_v7 = vrot.slane %v5641_v13, 1  ;;  %v775_v21 = vld [vmem:[#allocation2 + $0xbc] sm:$0x1] }
 0x176   : > { %v7420_v28 = vpop.permute.xlu1 %2074  ;;  %v1140_v15 = vrot.slane %v1138_v30, 7  ;;  %v2426_v40 = vrot.slane %v6397_v19, 1  ;;  %v7445_v61 = vsel %vm2952_vm13, %v6806_v50, %v7399_v23  ;;  %v1770_v33 = vsel %vm1638_vm9, %v1765_v49, %v1769_v60  ;;  %v7450_v30 = vld [vmem:[#allocation2 + $0xa0] sm:$0xf] }
 0x177   : > { %8661 = vst [vmem:[#allocation11_spill] sm:$0xff] %v7439_v24  ;;  %v1310_v27 = vld [vmem:[#allocation2 + $0xc0] sm:$0xf]  ;;  %v5889_v46 = vpack.c.bf16 %v661_v17, %v661_v17  ;;  %v1121_v3 = vshrl.u32 %v5886_v31, 16  ;;  %v1124_v47 = vshll.u32 %v5886_v31, 16  ;;  %v619_v55 = vadd.f32 %v7215_v4, %v618_v25 }
 0x178   : > { %v1143_v22 = vor.u32 %v1141_v53, %v1140_v15  ;;  %v1144_v35 = vrot.slane %v1140_v15, 4  ;;  %v1439_v17 = vld [vmem:[#allocation2 + $0x84] sm:$0xe]  ;;  %v2427_v53 = vsel %vm1911_vm8, %v2425_v7, %v2426_v40  ;;  %v7458_v13 = vld [vmem:[#allocation2 + $0xa4] ss:$0 sps:$4 sm:$0x11]   ;;  %v7473_v25 = vcombine.low %v1403_v54, %v1404_v1 }
 0x179   : > { %v7425_v14 = vpop.permute.xlu0 %2442  ;;  %1978 = vrot.lane.b32.xlu1 %v1941_v2, %s6620_s29  ;;  %2570 = vrot.lane.b32.xlu0 %v7435_v51, %s6620_s29  ;;  %v1505_v2 = vld [vmem:[#allocation2 + $0x9c] sm:$0xe]  ;;  %v1146_v19 = vshrl.u32 %v5889_v46, 16  ;;  %v1149_v63 = vshll.u32 %v5889_v46, 16  ;;  %v7454_v23 = vrot.slane %v1121_v3, 7  ;;  %v776_v60 = vsel %vm6786_vm7, 0, %v775_v21 }
 0x17a   : > { %v7437_v0 = vpop.permute.xlu1 %2072  ;;  %v1311_v50 = vsel %vm6867_vm11, %v1143_v22, %v1310_v27  ;;  %v1303_v15 = vld [vmem:[#allocation2 + $0xb4] sm:$0xf]  ;;  %v8662_v27 = vshrl.u32 %v6995_v56, 16  ;;  %8663 = vst [vmem:[#allocation12_spill] sm:$0xff] %v7473_v25  ;;  %777 = vst [vmem:[#allocation2 + $0xbc] sm:$0x1] %v776_v60  ;;  %v2987_v18 = vsel %vm2985_vm14, %v7445_v61, %v7375_v36 }
 0x17b   : > { %1312 = vst [vmem:[#allocation2 + $0xc0] sm:$0xf] %v1311_v50  ;;  %v1148_v49 = vrot.slane %v1146_v19, 7  ;;  %v6541_v31 = vld [vmem:[#allocation2 + $0x14] ss:$0 sps:$4 sm:$0x11]   ;;  %v1126_v4 = vor.u32 %v1124_v47, %v7454_v23 }
 0x17c   : > { %v2160_v46 = vshll.u32 %v6541_v31, 16  ;;  %v2158_v22 = vor.u32 %v7403_v45, %v8662_v27  ;;  %v1127_v40 = vrot.slane %v7454_v23, 4  ;;  %v7475_v21 = vld [vmem:[#allocation2 + $0x8c] ss:$0 sps:$4 sm:$0x11]   ;;  %v5689_v31 = vcombine.low %v1505_v2, %v7450_v30 }
 0x17d   : > { %v2441_v32 = vpop.permute.xlu0 %2440  ;;  %1851 = vrot.lane.b32.xlu1 %v1770_v33, %s6621_s8  ;;  %2462 = vrot.lane.b32.xlu0 %v2427_v53, %s6621_s8  ;;  %v659_v33 = vmax.f32 %v619_v55, 0.0  ;;  %v1151_v19 = vor.u32 %v1149_v63, %v1148_v49  ;;  %v1153_v56 = vrot.slane %v1148_v49, 4  ;;  %v1314_v50 = vld [vmem:[#allocation2 + $0xc8] sm:$0x1]  ;;  %v1304_v47 = vsel %vm6867_vm11, %v1126_v4, %v1303_v15 }
 0x17e   : > { %v2162_v45 = vrot.slane %v2160_v46, 1  ;;  %v7478_v27 = vld [vmem:[#allocation2 + $0x88] sm:$0xf]  ;;  %v2938_v53 = vrot.slane %v7458_v13, 1  ;;  %1305 = vst [vmem:[#allocation2 + $0xb4] sm:$0xf] %v1304_v47 }
 0x17f   : > { %v5887_v23 = vpack.c.bf16 %v659_v33, %v659_v33  ;;  %v5640_v1 = vcombine.low %v1439_v17, %v7478_v27  ;;  %v1152_v54 = vsel %vm6888_vm12, %v1144_v35, %v1151_v19  ;;  %v1315_v63 = vsel %vm6764_vm5, %v1153_v56, %v1314_v50 }
 0x180   : > { %v2163_v2 = vsel %vm1638_vm9, %v2158_v22, %v2162_v45  ;;  %v2937_v55 = vrot.slane %v5689_v31, 1  ;;  %1313 = vst.msk [vmem:[#allocation2 + $0xc4] sm:$0xf] %vm662_vm2, %v1152_v54  ;;  %1316 = vst [vmem:[#allocation2 + $0xc8] sm:$0x1] %v1315_v63  ;;  %v2423_v4 = vrot.slane %v7475_v21, 1 }
 0x181   : > { %v7466_v3 = vpop.permute.xlu0 %2824  ;;  %2094 = vrot.lane.b32.xlu1 %v7473_v25, %s6622_s18  ;;  %v1129_v15 = vshrl.u32 %v5887_v23, 16  ;;  %v1132_v17 = vshll.u32 %v5887_v23, 16  ;;  %v3069_v49 = vsel %vm2952_vm13, %v2163_v2, %v2441_v32  ;;  %v2422_v60 = vrot.slane %v5640_v1, 1  ;;  %v1506_v31 = vld [vmem:[#allocation2 + $0xa8] sm:$0xe] }
 0x182   : > { %v7468_v7 = vpop.permute.xlu1 %1964  ;;  %v2939_v46 = vsel %vm1911_vm8, %v2937_v55, %v2938_v53  ;;  %v1748_v33 = vshrl.u32 %v7439_v24, 16  ;;  %v1750_v22 = vshll.u32 %v7439_v24, 16  ;;  %v1755_v56 = vshll.u32 %v7393_v44, 16  ;;  %v1307_v47 = vld [vmem:[#allocation2 + $0xbc] sm:$0x1] }
 0x183   : > { %v1131_v19 = vrot.slane %v1129_v15, 7  ;;  %6198 = vmatmul.mubr.msk.bf16.gmra.mxu0 %vm2952_vm13, %v2939_v46  ;;  %v2753_v50 = vshrl.u32 %v7405_v6, 16  ;;  %v8664_v32 = vshll.u32 %v7405_v6, 16  ;;  %v2424_v23 = vsel %vm1911_vm8, %v2422_v60, %v2423_v4  ;;  %v7511_v15 = vld [vmem:[#allocation2 + $0xb0] ss:$0 sps:$4 sm:$0x11]  }
 0x184   : > { %v1752_v53 = vrot.slane %v1750_v22, 1  ;;  %v2760_v1 = vshll.u32 %v7351_v59, 16  ;;  %2460 = vrot.lane.b32.xlu0 %v2424_v23, %s6621_s8  ;;  %v1757_v44 = vrot.slane %v1755_v56, 1  ;;  %v3116_v60 = vsel %vm2985_vm14, %v3069_v49, %v7401_v42  ;;  %v1401_v4 = vld [vmem:[#allocation2 + $0x84] sm:$0xf] }
 0x185   : > { %v7491_v58 = vpop.permute.xlu0 %2556  ;;  %v2757_v45 = vrot.slane %v8664_v32, 1  ;;  %v1134_v63 = vor.u32 %v1132_v17, %v1131_v19  ;;  %v1136_v2 = vrot.slane %v1131_v19, 4  ;;  %v1341_v22 = vld [vmem:[#allocation2 + $0x90] sm:$0xf]  ;;  %v2743_v32 = vshll.u32 %v7435_v51, 16 }
 0x186   : > { %v7495_v35 = vpop.permute.xlu1 %1962  ;;  %v1753_v6 = vor.u32 %v1752_v53, %v1748_v33  ;;  %v2762_v46 = vrot.slane %v2760_v1, 1  ;;  %v1377_v59 = vld [vmem:[#allocation2 + $0x90] sm:$0xe]  ;;  %v3148_v56 = vsel %vm3018_vm15, %v3116_v60, %v7466_v3  ;;  %v1471_v33 = vld [vmem:[#allocation2 + $0xac] sm:$0xf]  ;;  %v2165_v53 = vshrl.u32 %v6975_v34, 16 }
 0x187   : > { %v2758_v55 = vor.u32 %v2757_v45, %v2753_v50  ;;  %v1135_v17 = vsel %vm6888_vm12, %v1127_v40, %v1134_v63  ;;  %v1308_v19 = vsel %vm6764_vm5, %v1136_v2, %v1307_v47  ;;  %v7522_v50 = vld [vmem:[#allocation2 + $0x98] ss:$0 sps:$4 sm:$0x11]   ;;  %3419 = vmatprep.mubr.bf16.mxu1 %v3148_v56  ;;  %v5690_v40 = vcombine.low %v1506_v31, %v1471_v33  ;;  %v1470_v47 = vld [vmem:[#allocation2 + $0xa8] sm:$0xf]  ;;  %vm8089_vm12 = vmand %vm3890_vm1, %vm728_vm6 }
 0x188   : > { %1306 = vst.msk [vmem:[#allocation2 + $0xb8] sm:$0xf] %vm662_vm2, %v1135_v17  ;;  %1309 = vst [vmem:[#allocation2 + $0xbc] sm:$0x1] %v1308_v19  ;;  %v1758_v42 = vsel %vm1638_vm9, %v1753_v6, %v1757_v44  ;;  %v1342_v3 = vld [vmem:[#allocation2 + $0x94] sm:$0xf]  ;;  %v3020_v1 = vsel %vm3018_vm15, %v2987_v18, %v7437_v0  ;;  %v7545_v60 = vcombine.low %v1470_v47, %v1471_v33 }
 0x189   : > { %v7508_v54 = vpop.permute.xlu0 %2554  ;;  %v2763_v49 = vsel %vm1638_vm9, %v2758_v55, %v2762_v46  ;;  %1849 = vrot.lane.b32.xlu1 %v1758_v42, %s6621_s8  ;;  %v2941_v63 = vrot.slane %v7511_v15, 1  ;;  %v1339_v2 = vld [vmem:[#allocation2 + $0x84] sm:$0xf]  ;;  %v8665_v44 = vshll.u32 %v6975_v34, 16  ;;  %3420 = vmatmul.mubr.bf16.vlgmr.msra.gmra.mxu1 %v3020_v1  ;;  %v2940_v61 = vrot.slane %v5690_v40, 1 }
 0x18a   : > { %v7524_v45 = vpop.permute.xlu1 %1835  ;;  %2844 = vrot.lane.b32.xlu0 %v2763_v49, %s6622_s18  ;;  %v5594_v31 = vcombine.low %v1377_v59, %v1342_v3  ;;  %v1340_v55 = vld [vmem:[#allocation2 + $0x88] sm:$0xf]  ;;  %v1376_v6 = vld [vmem:[#allocation2 + $0x84] sm:$0xe]  ;;  %v7543_v46 = vcombine.low %v1401_v4, %v7478_v27  ;;  %v7547_v17 = vcombine.low %v1341_v22, %v1342_v3  ;;  %v1949_v0 = vrot.slane %v7522_v50, 1 }
 0x18b   : > { %v2169_v36 = vrot.slane %v8665_v44, 1  ;;  %v7550_v19 = vld [vmem:[#allocation2 + $0x8c] ss:$0 sps:$4 sm:$0x11]   ;;  %v2942_v56 = vsel %vm1911_vm8, %v2940_v61, %v2941_v63  ;;  %v2741_v42 = vshrl.u32 %v7435_v51, 16  ;;  %v2745_v49 = vrot.slane %v2743_v32, 1 }
 0x18c   : > { %8666 = vst [vmem:[#allocation13_spill] sm:$0xff] %v7547_v17  ;;  %v1948_v34 = vrot.slane %v5594_v31, 1  ;;  %v6542_v59 = vld [vmem:[#allocation2 + $0x20] ss:$0 sps:$4 sm:$0x11]   ;;  %6201 = vmatprep.mubr.msk.bf16.mxu0 %vm2952_vm13, %v2942_v56  ;;  %v2748_v27 = vshll.u32 %v7336_v37, 16  ;;  %v5593_v4 = vcombine.low %v1376_v6, %v1340_v55  ;;  %v7563_v32 = vcombine.low %v1339_v2, %v1340_v55 }
 0x18d   : > { %v7532_v23 = vpop.permute.xlu0 %2446  ;;  %v2172_v18 = vshll.u32 %v6542_v59, 16  ;;  %2092 = vrot.lane.b32.xlu1 %v7543_v46, %s6622_s18  ;;  %v1468_v33 = vld [vmem:[#allocation2 + $0x9c] sm:$0xf]  ;;  %v2179_v40 = vshll.u32 %v7123_v9, 16  ;;  %v2170_v47 = vor.u32 %v2169_v36, %v2165_v53  ;;  %v2746_v51 = vor.u32 %v2745_v49, %v2741_v42  ;;  %v1508_v16 = vld [vmem:[#allocation2 + $0xc0] sm:$0xe] }
 0x18e   : > { %v7558_v22 = vpop.permute.xlu1 %2078  ;;  %2576 = vrot.lane.b32.xlu0 %v7545_v60, %s6620_s29  ;;  %8667 = vst [vmem:[#allocation14_spill] sm:$0xff] %v7563_v32  ;;  %v1441_v1 = vld [vmem:[#allocation2 + $0x9c] sm:$0xe]  ;;  %v1950_v63 = vsel %vm1911_vm8, %v1948_v34, %v1949_v0  ;;  %v2750_v44 = vrot.slane %v2748_v27, 1  ;;  %v1945_v37 = vrot.slane %v5593_v4, 1  ;;  %v1946_v61 = vrot.slane %v7550_v19, 1 }
 0x18f   : > { %v7569_v31 = vld [vmem:[#allocation2 + $0xa4] ss:$0 sps:$4 sm:$0x11]   ;;  %v7572_v6 = vcombine.low %v1468_v33, %v7450_v30  ;;  %v1784_v53 = vshrl.u32 %v7547_v17, 16  ;;  %v1786_v36 = vshll.u32 %v7547_v17, 16  ;;  %v1791_v2 = vshll.u32 %v7522_v50, 16 }
 0x190   : > { %v2177_v55 = vshrl.u32 %v7123_v9, 16  ;;  %v2174_v56 = vrot.slane %v2172_v18, 1  ;;  %v2751_v0 = vsel %vm1638_vm9, %v2746_v51, %v2750_v44  ;;  %v7580_v34 = vld [vmem:[#allocation2 + $0xa0] sm:$0xf]  ;;  %v2181_v42 = vrot.slane %v2179_v40, 1 }
 0x191   : > { %v7565_v3 = vpop.permute.xlu0 %2444  ;;  %1984 = vrot.lane.b32.xlu1 %v1950_v63, %s6620_s29  ;;  %v2779_v49 = vshll.u32 %v7545_v60, 16  ;;  %v1788_v30 = vrot.slane %v1786_v36, 1  ;;  %v5642_v59 = vcombine.low %v1441_v1, %v7580_v34  ;;  %v1947_v9 = vsel %vm1911_vm8, %v1945_v37, %v1946_v61  ;;  %v7591_v51 = vld [vmem:[#allocation2 + $0xb8] sm:$0xf]  ;;  %v1507_v40 = vld [vmem:[#allocation2 + $0xb4] sm:$0xe] }
 0x192   : > { %2842 = vrot.lane.b32.xlu0 %v2751_v0, %s6622_s18  ;;  %v2175_v50 = vsel %vm1638_vm9, %v2170_v47, %v2174_v56  ;;  %v1772_v4 = vshrl.u32 %v7563_v32, 16  ;;  %v1774_v33 = vshll.u32 %v7563_v32, 16  ;;  %v2767_v63 = vshll.u32 %v7572_v6, 16  ;;  %v7595_v0 = vld [vmem:[#allocation2 + $0xbc] ss:$0 sps:$4 sm:$0x11]  }
 0x193   : > { %v1789_v44 = vor.u32 %v1788_v30, %v1784_v53  ;;  %v1793_v36 = vrot.slane %v1791_v2, 1  ;;  %v2429_v1 = vrot.slane %v7569_v31, 1  ;;  %v2428_v47 = vrot.slane %v5642_v59, 1  ;;  %v6543_v25 = vld [vmem:[#allocation2 + $0x2c] ss:$0 sps:$4 sm:$0x11]  }
 0x194   : > { %v1776_v37 = vrot.slane %v1774_v33, 1  ;;  %v1779_v61 = vshll.u32 %v7550_v19, 16  ;;  %v2777_v56 = vshrl.u32 %v7545_v60, 16  ;;  %v3072_v17 = vsel %vm2952_vm13, %v2175_v50, %v7425_v14 }
 0x195   : > { %1982 = vrot.lane.b32.xlu1 %v1947_v9, %s6620_s29  ;;  %v2781_v53 = vrot.slane %v2779_v49, 1  ;;  %v2784_v2 = vshll.u32 %v7511_v15, 16  ;;  %v2182_v32 = vor.u32 %v2181_v42, %v2177_v55  ;;  %v2184_v9 = vshll.u32 %v6543_v25, 16  ;;  %v1378_v49 = vld [vmem:[#allocation2 + $0x9c] sm:$0xe] }
 0x196   : > { %v7585_v27 = vpop.permute.xlu0 %2828  ;;  %2574 = vrot.lane.b32.xlu0 %v7572_v6, %s6620_s29  ;;  %v1777_v59 = vor.u32 %v1776_v37, %v1772_v4  ;;  %v1781_v33 = vrot.slane %v1779_v61, 1  ;;  %v1794_v60 = vsel %vm1638_vm9, %v1789_v44, %v1793_v36  ;;  %v2430_v19 = vsel %vm1911_vm8, %v2428_v47, %v2429_v1  ;;  %v7615_v4 = vld [vmem:[#allocation2 + $0xc8] ss:$0 sps:$4 sm:$0x11]   ;;  %v1343_v47 = vld [vmem:[#allocation2 + $0x9c] sm:$0xf] }
 0x197   : > { %v1834_v18 = vpop.permute.xlu1 %1833  ;;  %v5691_v14 = vcombine.low %v1507_v40, %v7591_v51  ;;  %v2944_v50 = vrot.slane %v7595_v0, 1  ;;  %v2782_v15 = vor.u32 %v2781_v53, %v2777_v56  ;;  %v2786_v55 = vrot.slane %v2784_v2, 1  ;;  %v1405_v40 = vld [vmem:[#allocation2 + $0x9c] sm:$0xf]  ;;  %v1442_v61 = vld [vmem:[#allocation2 + $0xa8] sm:$0xe] }
 0x198   : > { %v2765_v25 = vshrl.u32 %v7572_v6, 16  ;;  %v2769_v42 = vrot.slane %v2767_v63, 1  ;;  %v3118_v44 = vsel %vm2985_vm14, %v3072_v17, %v7508_v54  ;;  %v2772_v1 = vshll.u32 %v7458_v13, 16  ;;  %v1344_v2 = vld [vmem:[#allocation2 + $0xa0] sm:$0xf] }
 0x199   : > { %1855 = vrot.lane.b32.xlu1 %v1794_v60, %s6621_s8  ;;  %v2943_v36 = vrot.slane %v5691_v14, 1  ;;  %v2186_v60 = vrot.slane %v2184_v9, 1  ;;  %v2956_v56 = vsel %vm2952_vm13, %v7031_v38, %v1834_v18  ;;  %v1782_v6 = vsel %vm1638_vm9, %v1777_v59, %v1781_v33  ;;  %v7626_v54 = vld [vmem:[#allocation2 + $0xc4] sm:$0xf]  ;;  %v1408_v9 = vld [vmem:[#allocation2 + $0xac] sm:$0xf] }
 0x19a   : > { %v7605_v30 = vpop.permute.xlu0 %2560  ;;  %2464 = vrot.lane.b32.xlu0 %v2430_v19, %s6621_s8  ;;  %v2770_v53 = vor.u32 %v2769_v42, %v2765_v25  ;;  %v2774_v19 = vrot.slane %v2772_v1, 1  ;;  %v7629_v14 = vld [vmem:[#allocation2 + $0xa4] ss:$0 sps:$4 sm:$0x11]   ;;  %v5595_v13 = vcombine.low %v1378_v49, %v1344_v2  ;;  %v5692_v5 = vcombine.low %v1508_v16, %v7626_v54 }
 0x19b   : > { %v7607_v24 = vpop.permute.xlu1 %2076  ;;  %v2945_v17 = vsel %vm1911_vm8, %v2943_v36, %v2944_v50  ;;  %v2187_v41 = vsel %vm1638_vm9, %v2182_v32, %v2186_v60  ;;  %v2787_v38 = vsel %vm1638_vm9, %v2782_v15, %v2786_v55  ;;  %v2947_v18 = vrot.slane %v7615_v4, 1  ;;  %v7637_v59 = vld [vmem:[#allocation2 + $0xb0] ss:$0 sps:$4 sm:$0x11]  }
 0x19c   : > { %6202 = vmatmul.mubr.msk.bf16.gmra.mxu0 %vm2952_vm13, %v2945_v17  ;;  %v5643_v33 = vcombine.low %v1442_v61, %v1408_v9  ;;  %v3075_v50 = vsel %vm2952_vm13, %v2187_v41, %v7565_v3  ;;  %v7642_v16 = vcombine.low %v1343_v47, %v1344_v2  ;;  %v2946_v49 = vrot.slane %v5692_v5, 1  ;;  %v1472_v3 = vld [vmem:[#allocation2 + $0xb4] sm:$0xf]  ;;  %v1345_v61 = vld [vmem:[#allocation2 + $0xa8] sm:$0xf] }
 0x19d   : > { %1853 = vrot.lane.b32.xlu1 %v1782_v6, %s6621_s8  ;;  %v2191_v15 = vshll.u32 %v7063_v39, 16  ;;  %v7649_v55 = vcombine.low %v1405_v40, %v7580_v34  ;;  %v2989_v41 = vsel %vm2985_vm14, %v2956_v56, %v7495_v35  ;;  %v2775_v36 = vsel %vm1638_vm9, %v2770_v53, %v2774_v19  ;;  %v1443_v47 = vld [vmem:[#allocation2 + $0xb4] sm:$0xe]  ;;  %v7674_v17 = vld [vmem:[#allocation2 + $0xb8] sm:$0xf] }
 0x19e   : > { %v2827_v37 = vpop.permute.xlu0 %2826  ;;  %2848 = vrot.lane.b32.xlu0 %v2787_v38, %s6622_s18  ;;  %8668 = vst [vmem:[#allocation15_spill] sm:$0xff] %v7642_v16  ;;  %v1951_v1 = vrot.slane %v5595_v13, 1  ;;  %v1952_v5 = vrot.slane %v7629_v14, 1  ;;  %v2431_v34 = vrot.slane %v5643_v33, 1  ;;  %v2432_v40 = vrot.slane %v7637_v59, 1 }
 0x19f   : > { %v7624_v63 = vpop.permute.xlu1 %1968  ;;  %v3151_v32 = vsel %vm3018_vm15, %v3118_v44, %v2827_v37  ;;  %v2948_v44 = vsel %vm1911_vm8, %v2946_v49, %v2947_v18  ;;  %v3023_v35 = vsel %vm3018_vm15, %v2989_v41, %v7420_v28  ;;  %v3120_v37 = vsel %vm2985_vm14, %v3075_v50, %v7491_v58  ;;  %v7676_v28 = vld [vmem:[#allocation2 + $0xac] sm:$0xf]  ;;  %v1407_v58 = vld [vmem:[#allocation2 + $0xa8] sm:$0xf] }
 0x1a0   : > { %3427 = vmatprep.mubr.bf16.mxu1 %v3151_v32  ;;  %6205 = vmatprep.mubr.msk.bf16.mxu0 %vm2952_vm13, %v2948_v44  ;;  %v2203_v60 = vshll.u32 %v7210_v62, 16  ;;  %v3154_v56 = vsel %vm3018_vm15, %v3120_v37, %v7585_v27  ;;  %v5659_v6 = vcombine.low %v1472_v3, %v7591_v51  ;;  %v1798_v53 = vshll.u32 %v7642_v16, 16  ;;  %v7681_v38 = vld [vmem:[#allocation2 + $0xbc] ss:$0 sps:$4 sm:$0x11]  }
 0x1a1   : > { %2096 = vrot.lane.b32.xlu1 %v7649_v55, %s6622_s18  ;;  %3428 = vmatmul.mubr.bf16.gmra.mxu1 %v3023_v35  ;;  %v1803_v13 = vshll.u32 %v7629_v14, 16  ;;  %v5644_v27 = vcombine.low %v1443_v47, %v7674_v17  ;;  %v2189_v51 = vshrl.u32 %v7063_v39, 16  ;;  %v1953_v18 = vsel %vm1911_vm8, %v1951_v1, %v1952_v5  ;;  %v7687_v49 = vld [vmem:[#allocation2 + $0xb0] ss:$0 sps:$4 sm:$0x11]  }
 0x1a2   : > { %v7645_v25 = vpop.permute.xlu0 %2558  ;;  %2846 = vrot.lane.b32.xlu0 %v2775_v36, %s6622_s18  ;;  %3433 = vmatprep.mubr.bf16.mxu1 %v3154_v56  ;;  %v1796_v33 = vshrl.u32 %v7642_v16, 16  ;;  %v1800_v50 = vrot.slane %v1798_v53, 1  ;;  %v2958_v32 = vsel %vm2952_vm13, %v7011_v8, %v7524_v45  ;;  %v2433_v14 = vsel %vm1911_vm8, %v2431_v34, %v2432_v40  ;;  %v1474_v35 = vld [vmem:[#allocation2 + $0xc0] sm:$0xf] }
 0x1a3   : > { %v7651_v42 = vpop.permute.xlu1 %1966  ;;  %v2791_v41 = vshll.u32 %v5659_v6, 16  ;;  %v7695_v3 = vcombine.low %v1345_v61, %v7676_v28  ;;  %v2193_v39 = vrot.slane %v2191_v15, 1  ;;  %v2201_v36 = vshrl.u32 %v7210_v62, 16 }
 0x1a4   : > { %v2205_v1 = vrot.slane %v2203_v60, 1  ;;  %v7699_v5 = vcombine.low %v1407_v58, %v1408_v9  ;;  %v1805_v44 = vrot.slane %v1803_v13, 1  ;;  %v2434_v8 = vrot.slane %v5644_v27, 1  ;;  %v1379_v58 = vld [vmem:[#allocation2 + $0xa8] sm:$0xe] }
 0x1a5   : > { %1986 = vrot.lane.b32.xlu1 %v1953_v18, %s6620_s29  ;;  %8669 = vst [vmem:[#allocation16_spill] sm:$0xff] %v7695_v3  ;;  %v2435_v45 = vrot.slane %v7681_v38, 1  ;;  %v1810_v34 = vshll.u32 %v7695_v3, 16  ;;  %v1801_v37 = vor.u32 %v1800_v50, %v1796_v33  ;;  %v1808_v15 = vshrl.u32 %v7695_v3, 16 }
 0x1a6   : > { %v7672_v2 = vpop.permute.xlu0 %2450  ;;  %2466 = vrot.lane.b32.xlu0 %v2433_v14, %s6621_s8  ;;  %v1815_v62 = vshll.u32 %v7687_v49, 16  ;;  %v2991_v9 = vsel %vm2985_vm14, %v2958_v32, %v7468_v7  ;;  %v2789_v56 = vshrl.u32 %v5659_v6, 16  ;;  %v2793_v53 = vrot.slane %v2791_v41, 1  ;;  %v6544_v13 = vld [vmem:[#allocation2 + $0x38] ss:$0 sps:$4 sm:$0x11]  }
 0x1a7   : > { %v7678_v19 = vpop.permute.xlu1 %1839  ;;  %v1812_v61 = vrot.slane %v1810_v34, 1  ;;  %v3026_v60 = vsel %vm3018_vm15, %v2991_v9, %v7607_v24  ;;  %v2196_v27 = vshll.u32 %v6544_v13, 16  ;;  %v6545_v18 = vld [vmem:[#allocation2 + $0x44] ss:$0 sps:$4 sm:$0x11]   ;;  %v2796_v50 = vshll.u32 %v7595_v0, 16 }
 0x1a8   : > { %v2208_v33 = vshll.u32 %v6545_v18, 16  ;;  %v7718_v7 = vcombine.low %v1474_v35, %v7626_v54  ;;  %v2215_v32 = vshll.u32 %v7164_v43, 16  ;;  %v2227_v14 = vshll.u32 %v7301_v29, 16 }
 0x1a9   : > { %2098 = vrot.lane.b32.xlu1 %v7699_v5, %s6622_s18  ;;  %3434 = vmatmul.mubr.bf16.gmra.mxu1 %v3026_v60  ;;  %v1806_v41 = vsel %vm1638_vm9, %v1801_v37, %v1805_v44  ;;  %v1813_v34 = vor.u32 %v1812_v61, %v1808_v15  ;;  %v1817_v9 = vrot.slane %v1815_v62, 1  ;;  %v5596_v13 = vcombine.low %v1379_v58, %v7676_v28 }
 0x1aa   : > { %v7705_v40 = vpop.permute.xlu0 %2448  ;;  %2578 = vrot.lane.b32.xlu0 %v5659_v6, %s6620_s29  ;;  %v2436_v0 = vsel %vm1911_vm8, %v2434_v8, %v2435_v45  ;;  %v2794_v60 = vor.u32 %v2793_v53, %v2789_v56  ;;  %v2798_v54 = vrot.slane %v2796_v50, 1  ;;  %v2803_v35 = vshll.u32 %v7718_v7, 16  ;;  %v1347_v45 = vld [vmem:[#allocation2 + $0xb4] sm:$0xf]  ;;  %v1348_v53 = vld [vmem:[#allocation2 + $0xb8] sm:$0xf] }
 0x1ab   : > { %v7701_v47 = vpop.permute.xlu1 %2082  ;;  %v2194_v18 = vor.u32 %v2193_v39, %v2189_v51  ;;  %v2198_v3 = vrot.slane %v2196_v27, 1  ;;  %v2206_v16 = vor.u32 %v2205_v1, %v2201_v36  ;;  %v2210_v44 = vrot.slane %v2208_v33, 1  ;;  %v1380_v56 = vld [vmem:[#allocation2 + $0xb4] sm:$0xe] }
 0x1ac   : > { %v2213_v37 = vshrl.u32 %v7164_v43, 16  ;;  %v7731_v15 = vrot.slane %v2215_v32, 1  ;;  %v1955_v62 = vrot.slane %v7687_v49, 1  ;;  %v1818_v61 = vsel %vm1638_vm9, %v1813_v34, %v1817_v9  ;;  %v7766_v9 = vld [vmem:[#allocation2 + $0xbc] ss:$0 sps:$4 sm:$0x11]  }
 0x1ad   : > { %1857 = vrot.lane.b32.xlu1 %v1806_v41, %s6621_s8  ;;  %v1954_v51 = vrot.slane %v5596_v13, 1  ;;  %vm3892_vm2 = vcmask 516096   ;;  %v2799_v36 = vsel %vm1638_vm9, %v2794_v60, %v2798_v54  ;;  %v2801_v1 = vshrl.u32 %v7718_v7, 16 }
 0x1ae   : > { %2468 = vrot.lane.b32.xlu0 %v2436_v0, %s6621_s8  ;;  %v2808_v49 = vshll.u32 %v7615_v4, 16  ;;  %v8670_v58 = vmov 0   ;;  %v2225_v27 = vshrl.u32 %v7301_v29, 16  ;;  %v7754_v33 = vrot.slane %v2227_v14, 1  ;;  %v1409_v0 = vld [vmem:[#allocation2 + $0xb4] sm:$0xf]  ;;  %vm7779_vm3 = vmand %vm3892_vm2, %vm672_vm4 }
 0x1af   : > { %v1838_v24 = vpop.permute.xlu1 %1837  ;;  %v7724_v6 = vpop.permute.xlu0 %2832  ;;  %3891 = vst.msk [vmem:[#allocation3] sm:$0xf] %vm3890_vm1, %v8670_v58  ;;  %3895 = vst.msk [vmem:[#allocation3 + $0x48] sm:$0xf] %vm3890_vm1, %v8670_v58  ;;  %v2199_v50 = vsel %vm1638_vm9, %v2194_v18, %v2198_v3  ;;  %v2211_v4 = vsel %vm1638_vm9, %v2206_v16, %v2210_v44  ;;  %v2273_v32 = vshrl.u32 %v7543_v46, 16  ;;  %v1956_v13 = vsel %vm1911_vm8, %v1954_v51, %v1955_v62 }
 0x1b0   : > { %v2960_v28 = vsel %vm2952_vm13, %v7142_v11, %v1838_v24  ;;  %v2805_v11 = vrot.slane %v2803_v35, 1  ;;  %3893 = vst.msk [vmem:[#allocation3 + $0x4] sm:$0x1] %vm3892_vm2, %v8670_v58  ;;  %3896 = vst.msk [vmem:[#allocation3 + $0x4c] sm:$0x1] %vm3892_vm2, %v8670_v58  ;;  %v3078_v24 = vsel %vm2952_vm13, %v2199_v50, %v7532_v23  ;;  %v3081_v41 = vsel %vm2952_vm13, %v2211_v4, %v7705_v40 }
 0x1b1   : > { %1859 = vrot.lane.b32.xlu1 %v1818_v61, %s6621_s8  ;;  %v2993_v14 = vsel %vm2985_vm14, %v2960_v28, %v7651_v42  ;;  %v725_v3 = vld [vmem:[#allocation2 + $0xcc] sm:$0x1]  ;;  %v3122_v16 = vsel %vm2985_vm14, %v3078_v24, %v7645_v25  ;;  %v7773_v60 = vcombine.low %v1347_v45, %v1348_v53  ;;  %v5597_v23 = vcombine.low %v1380_v56, %v1348_v53  ;;  %vm7789_vm10 = vmand %vm3892_vm2, %vm728_vm6  ;;  %v1411_v62 = vld [vmem:[#allocation2 + $0xc0] sm:$0xf] }
 0x1b2   : > { %2850 = vrot.lane.b32.xlu0 %v2799_v36, %s6622_s18  ;;  %v2275_v40 = vshll.u32 %v7543_v46, 16  ;;  %v2806_v35 = vor.u32 %v2805_v11, %v2801_v1  ;;  %v2810_v18 = vrot.slane %v2808_v49, 1  ;;  %v2299_v44 = vshll.u32 %v7649_v55, 16  ;;  %v7793_v45 = vld [vmem:[#allocation2 + $0xc4] sm:$0xf] }
 0x1b3   : > { %v7736_v8 = vpop.permute.xlu1 %2080  ;;  %v7739_v39 = vpop.permute.xlu0 %2564  ;;  %v3029_v61 = vsel %vm3018_vm15, %v2993_v14, %v7558_v22  ;;  %v3124_v51 = vsel %vm2985_vm14, %v3081_v41, %v7605_v30  ;;  %v726_v56 = vsel %vm6764_vm5, 0, %v725_v3  ;;  %v7803_v36 = vcombine.low %v1409_v0, %v7674_v17  ;;  %v781_v22 = vld [vmem:[#allocation2 + $0xd4] sm:$0x1]  ;;  %v6533_v42 = vld [vmem:[%s8630_s5 + $0x100] sm:$0xff]  }
 0x1b4   : > { %v1958_v1 = vrot.slane %v7766_v9, 1  ;;  %v3160_v49 = vsel %vm3018_vm15, %v3124_v51, %v7724_v6  ;;  %727 = vst [vmem:[#allocation2 + $0xcc] sm:$0x1] %v726_v56  ;;  %v1957_v53 = vrot.slane %v5597_v23, 1  ;;  %v1822_v50 = vshll.u32 %v7773_v60, 16 }
 0x1b5   : > { %1988 = vrot.lane.b32.xlu1 %v1956_v13, %s6620_s29  ;;  %v2811_v17 = vsel %vm1638_vm9, %v2806_v35, %v2810_v18  ;;  %v7821_v24 = vcombine.low %v1411_v62, %v7793_v45  ;;  %v2277_v41 = vrot.slane %v2275_v40, 1  ;;  %v2297_v14 = vshrl.u32 %v7649_v55, 16  ;;  %v1509_v40 = vld [vmem:[#allocation2 + $0xcc] sm:$0xe] }
 0x1b6   : > { %2580 = vrot.lane.b32.xlu0 %v7718_v7, %s6620_s29  ;;  %v2311_v7 = vshll.u32 %v7699_v5, 16  ;;  %v3899_v30 = vld [vmem:[#allocation3] sm:$0x1]  ;;  %v2962_v3 = vsel %vm2952_vm13, %v7112_v57, %v7678_v19  ;;  %v2301_v13 = vrot.slane %v2299_v44, 1  ;;  %v2309_v0 = vshrl.u32 %v7699_v5, 16 }
 0x1b7   : > { %v7764_v34 = vpop.permute.xlu1 %1972  ;;  %v2831_v54 = vpop.permute.xlu0 %2830  ;;  %v3930_v58 = vld [vmem:[#allocation3 + $0x4] sm:$0x1]  ;;  %v3900_v4 = vsel %vm7779_vm3, 0, %v3899_v30  ;;  %v2323_v23 = vshll.u32 %v7803_v36, 16  ;;  %v1827_v55 = vshll.u32 %v7766_v9, 16  ;;  %v1959_v57 = vsel %vm1911_vm8, %v1957_v53, %v1958_v1 }
 0x1b8   : > { %v3157_v25 = vsel %vm3018_vm15, %v3122_v16, %v2831_v54  ;;  %v3931_v6 = vsel %vm7789_vm10, 0, %v3930_v58  ;;  %3901 = vst [vmem:[#allocation3] sm:$0x1] %v3900_v4  ;;  %v782_v16 = vsel %vm6786_vm7, 0, %v781_v22  ;;  %v2313_v35 = vrot.slane %v2311_v7, 1 }
 0x1b9   : > { %3441 = vmatprep.mubr.bf16.mxu1 %v3157_v25  ;;  %2100 = vrot.lane.b32.xlu1 %v7803_v36, %s6622_s18  ;;  %3932 = vst [vmem:[#allocation3 + $0x4] sm:$0x1] %v3931_v6  ;;  %783 = vst [vmem:[#allocation2 + $0xd4] sm:$0x1] %v782_v16  ;;  %v1820_v19 = vshrl.u32 %v7773_v60, 16  ;;  %v1824_v18 = vrot.slane %v1822_v50, 1  ;;  %v2995_v9 = vsel %vm2985_vm14, %v2962_v3, %v7624_v63 }
 0x1ba   : > { %3442 = vmatmul.mubr.bf16.gmra.mxu1 %v3029_v61  ;;  %2852 = vrot.lane.b32.xlu0 %v2811_v17, %s6622_s18  ;;  %v2220_v44 = vshll.u32 %v6546_v26, 16  ;;  %v2321_v5 = vshrl.u32 %v7803_v36, 16  ;;  %v2335_v62 = vshll.u32 %v7821_v24, 16  ;;  %v1477_v61 = vld [vmem:[#allocation2 + $0xd0] sm:$0xf]  ;;  %v3032_v56 = vsel %vm3018_vm15, %v2995_v9, %v7736_v8 }
 0x1bb   : > { %v7806_v11 = vpop.permute.xlu1 %1970  ;;  %v7810_v20 = vpop.permute.xlu0 %2562  ;;  %3447 = vmatprep.mubr.bf16.mxu1 %v3160_v49  ;;  %v5693_v51 = vcombine.low %v1509_v40, %v1477_v61  ;;  %v2278_v7 = vor.u32 %v2277_v41, %v2273_v32  ;;  %v2280_v1 = vshll.u32 %v7475_v21, 16  ;;  %v2325_v49 = vrot.slane %v2323_v23, 1  ;;  %v1476_v63 = vld [vmem:[#allocation2 + $0xcc] sm:$0xf]  ;;  %v1444_v23 = vld [vmem:[#allocation2 + $0xc0] sm:$0xe] }
 0x1bc   : > { %v2333_v36 = vshrl.u32 %v7821_v24, 16  ;;  %v1829_v22 = vrot.slane %v1827_v55, 1  ;;  %v2304_v30 = vshll.u32 %v7569_v31, 16  ;;  %v1825_v58 = vor.u32 %v1824_v18, %v1820_v19  ;;  %v6547_v21 = vld [vmem:[#allocation2 + $0x5c] ss:$0 sps:$4 sm:$0x11]  }
 0x1bd   : > { %1990 = vrot.lane.b32.xlu1 %v1959_v57, %s6620_s29  ;;  %v2282_v50 = vrot.slane %v2280_v1, 1  ;;  %v2302_v17 = vor.u32 %v2301_v13, %v2297_v14  ;;  %v2316_v8 = vshll.u32 %v7637_v59, 16  ;;  %v2337_v32 = vrot.slane %v2335_v62, 1  ;;  %v6446_v26 = vld [vmem:[#allocation2 + $0xc8] ss:$0 sps:$4 sm:$0x11]  }
 0x1be   : > { %v2232_v6 = vshll.u32 %v6547_v21, 16  ;;  %v2314_v3 = vor.u32 %v2313_v35, %v2309_v0  ;;  %v2949_v55 = vrot.slane %v5693_v51, 1  ;;  %v2306_v40 = vrot.slane %v2304_v30, 1 }
 0x1bf   : > { %v7832_v54 = vpop.permute.xlu1 %1843  ;;  %v7837_v25 = vpop.permute.xlu0 %2454  ;;  %v4123_v4 = vld [vmem:[#allocation3] sm:$0xf]  ;;  %v7857_v31 = vsel %vm1638_vm9, %v2278_v7, %v2282_v50  ;;  %v7859_v14 = vcombine.low %v1476_v63, %v1477_v61  ;;  %v2318_v13 = vrot.slane %v2316_v8, 1  ;;  %v2326_v57 = vor.u32 %v2325_v49, %v2321_v5 }
 0x1c0   : > { %v4131_v46 = vld [vmem:[#allocation3 + $0x4] sm:$0x1]  ;;  %v6449_v59 = vld [vmem:[#allocation2 + $0xd4] ss:$0 sps:$4 sm:$0x11]   ;;  %v2328_v19 = vshll.u32 %v7681_v38, 16  ;;  %v1830_v62 = vsel %vm1638_vm9, %v1825_v58, %v1829_v22  ;;  %v7864_v0 = vsel %vm1638_vm9, %v2302_v17, %v2306_v40  ;;  %v5645_v35 = vcombine.low %v1444_v23, %v7793_v45 }
 0x1c1   : > { %2102 = vrot.lane.b32.xlu1 %v7821_v24, %s6622_s18  ;;  %v5737_v16 = vcombine.low %v4123_v4, %v4131_v46  ;;  %v7869_v51 = vsel %vm1638_vm9, %v2314_v3, %v2318_v13  ;;  %v2218_v38 = vor.u32 %v7731_v15, %v2213_v37  ;;  %v2222_v7 = vrot.slane %v2220_v44, 1 }
 0x1c2   : > { %3448 = vmatmul.mubr.bf16.gmra.mxu1 %v3032_v56  ;;  %v2330_v5 = vrot.slane %v2328_v19, 1  ;;  %v2950_v56 = vrot.slane %v6449_v59, 1  ;;  %v2230_v49 = vor.u32 %v7754_v33, %v2225_v27  ;;  %v2815_v45 = vshll.u32 %v7859_v14, 16 }
 0x1c3   : > { %v7850_v53 = vpop.permute.xlu1 %2086  ;;  %v2453_v41 = vpop.permute.xlu0 %2452  ;;  %v4237_v18 = vshrl.u32 %v5737_v16, 16  ;;  %v4239_v24 = vshll.u32 %v5737_v16, 16  ;;  %v2234_v22 = vrot.slane %v2232_v6, 1  ;;  %v2338_v43 = vor.u32 %v2337_v32, %v2333_v36 }
 0x1c4   : > { %v7879_v30 = vsel %vm1638_vm9, %v2326_v57, %v2330_v5  ;;  %v2951_v58 = vsel %vm1911_vm8, %v2949_v55, %v2950_v56  ;;  %v2340_v50 = vshll.u32 %v6446_v26, 16  ;;  %v2437_v37 = vrot.slane %v5645_v35, 1 }
 0x1c5   : > { %1861 = vrot.lane.b32.xlu1 %v1830_v62, %s6621_s8  ;;  %v4241_v1 = vrot.slane %v4239_v24, 1  ;;  %6206 = vmatmul.mubr.msk.bf16.gmra.mxu0 %vm2952_vm13, %v2951_v58  ;;  %v2438_v15 = vrot.slane %v6446_v26, 1  ;;  %v2223_v33 = vsel %vm1638_vm9, %v2218_v38, %v2222_v7  ;;  %v2235_v8 = vsel %vm1638_vm9, %v2230_v49, %v2234_v22  ;;  %v6549_v58 = vld [vmem:[#allocation2 + $0x74] ss:$0 sps:$4 sm:$0x11]  }
 0x1c6   : > { %v2342_v17 = vrot.slane %v2340_v50, 1  ;;  %v2813_v4 = vshrl.u32 %v7859_v14, 16  ;;  %v2817_v46 = vrot.slane %v2815_v45, 1  ;;  %v2820_v36 = vshll.u32 %v6449_v59, 16  ;;  %v3933_v50 = vld [vmem:[#allocation3 + $0xc] sm:$0x1] }
 0x1c7   : > { %v1842_v9 = vpop.permute.xlu1 %1841  ;;  %v2837_v61 = vpop.permute.xlu0 %2836  ;;  %v4242_v63 = vor.u32 %v4241_v1, %v4237_v18  ;;  %v3084_v21 = vsel %vm2952_vm13, %v2223_v33, %v7672_v2  ;;  %v2439_v23 = vsel %vm1911_vm8, %v2437_v37, %v2438_v15  ;;  %v2966_v26 = vsel %vm2952_vm13, %v7198_v10, %v7832_v54  ;;  %v6548_v45 = vld [vmem:[#allocation2 + $0x68] ss:$0 sps:$4 sm:$0x11]  }
 0x1c8   : > { %v2964_v29 = vsel %vm2952_vm13, %v7240_v12, %v1842_v9  ;;  %v3087_v12 = vsel %vm2952_vm13, %v2235_v8, %v2453_v41  ;;  %v7897_v3 = vsel %vm1638_vm9, %v2338_v43, %v2342_v17  ;;  %v3126_v16 = vsel %vm2985_vm14, %v3084_v21, %v7810_v20  ;;  %v3902_v43 = vld [vmem:[#allocation3 + $0x8] sm:$0x1] }
 0x1c9   : > { %4292 = vrot.lane.b32.xlu0 %v4242_v63, %s6620_s29  ;;  %v2997_v6 = vsel %vm2985_vm14, %v2964_v29, %v7806_v11  ;;  %v2818_v41 = vor.u32 %v2817_v46, %v2813_v4  ;;  %v2822_v13 = vrot.slane %v2820_v36, 1  ;;  %v3128_v20 = vsel %vm2985_vm14, %v3087_v12, %v7739_v39  ;;  %v8675_v46 = vld [vmem:[#allocation8_spill] sm:$0xff] }
 0x1ca   : > { %v3035_v11 = vsel %vm3018_vm15, %v2997_v6, %v7701_v47  ;;  %v3166_v57 = vsel %vm3018_vm15, %v3128_v20, %v2837_v61  ;;  %v2999_v39 = vsel %vm2985_vm14, %v2966_v26, %v7764_v34  ;;  %v2239_v61 = vshll.u32 %v7258_v48, 16  ;;  %v8676_v26 = vld [vmem:[#allocation7_spill] sm:$0xff] }
 0x1cb   : > { %v2085_v44 = vpop.permute.xlu1 %2084  ;;  %v7885_v27 = vpop.permute.xlu0 %2568  ;;  %v2823_v62 = vsel %vm1638_vm9, %v2818_v41, %v2822_v13  ;;  %v2237_v38 = vshrl.u32 %v7258_v48, 16  ;;  %v2249_v1 = vshrl.u32 %v7396_v52, 16  ;;  %v2244_v22 = vshll.u32 %v6548_v45, 16 }
 0x1cc   : > { %v3038_v9 = vsel %vm3018_vm15, %v2999_v39, %v2085_v44  ;;  %v2241_v7 = vrot.slane %v2239_v61, 1  ;;  %v2256_v63 = vshll.u32 %v6549_v58, 16  ;;  %v3903_v29 = vsel %vm7779_vm3, 0, %v3902_v43  ;;  %v3905_v58 = vld [vmem:[#allocation3 + $0x10] sm:$0x1] }
 0x1cd   : > { %2470 = vrot.lane.b32.xlu0 %v2439_v23, %s6621_s8  ;;  %v3934_v48 = vsel %vm7789_vm10, 0, %v3933_v50  ;;  %3904 = vst [vmem:[#allocation3 + $0x8] sm:$0x1] %v3903_v29  ;;  %v2246_v33 = vrot.slane %v2244_v22, 1  ;;  %vm3805_vm4 = vcmask 1040384   ;;  %vm3822_vm5 = vcmask 1042432  }
 0x1ce   : > { %3935 = vst [vmem:[#allocation3 + $0xc] sm:$0x1] %v3934_v48  ;;  %v2258_v8 = vrot.slane %v2256_v63, 1  ;;  %v3936_v63 = vld [vmem:[#allocation3 + $0x14] sm:$0x1]  ;;  %vm3831_vm7 = vcmask 1043456  }
 0x1cf   : > { %v6179_v32 = vpop.f32.mrf.mxu0  ;;  %v7902_v55 = vpop.permute.xlu1 %1976  ;;  %v8678_v48 = vld [vmem:[#allocation11_spill] sm:$0xff]  ;;  %vm3849_vm11 = vcmask 1045504   ;;  %s5854_s8 = sshll.u32 %s6685_s28, 4  ;;  %s6563_s28 = scalar_lea.vmem %s6562_s13, 32 }
 0x1d0   : > { %v2835_v40 = vpop.permute.xlu0 %2834  ;;  %s5419_s21 = scalar_lea.hbm %s8632_s7, %s5854_s8 }
 0x1d1   : > { %v3163_v2 = vsel %vm3018_vm15, %v3126_v16, %v2835_v40  ;;  %v7906_v59 = vpop.f32.mrf.mxu0  ;;  %2582 = vrot.lane.b32.xlu0 %v7859_v14, %s6620_s29  ;;  %v2251_v14 = vshll.u32 %v7396_v52, 16  ;;  %v2242_v52 = vor.u32 %v2241_v7, %v2237_v38 }
 0x1d2   : > { %3455 = vmatprep.mubr.bf16.mxu1 %v3163_v2 }
 0x1d3   : > { %3456 = vmatmul.mubr.bf16.gmra.mxu1 %v3035_v11  ;;  %v6180_v19 = vpop.f32.mrf.mxu0  ;;  %v1975_v18 = vpop.permute.xlu1 %1974  ;;  %v2253_v49 = vrot.slane %v2251_v14, 1  ;;  %v2247_v21 = vsel %vm1638_vm9, %v2242_v52, %v2246_v33 }
 0x1d4   : > { %v2567_v24 = vpop.permute.xlu0 %2566  ;;  %3461 = vmatprep.mubr.bf16.mxu1 %v3166_v57  ;;  %v3090_v6 = vsel %vm2952_vm13, %v2247_v21, %v7837_v25 }
 0x1d5   : > { %2854 = vrot.lane.b32.xlu0 %v2823_v62, %s6622_s18  ;;  %v7927_v5 = vpop.f32.mrf.mxu0  ;;  %v2254_v17 = vor.u32 %v2253_v49, %v2249_v1  ;;  %v3130_v2 = vsel %vm2985_vm14, %v3090_v6, %v2567_v24  ;;  %s5421_s18 = sshll.u32 %s270_s17, 4  ;;  %s5422_s18 = int_to_ptr.vmem [resolvable:$true] %s5421_s18 }
 0x1d6   : > { %s6557_s23 = scalar_lea.vmem %s5422_s18, 16  ;;  %p6564_p0 = scmp.lt.s32.totalorder %s5422_s18, %s6562_s13 }
 0x1d7   : > { %v1848_v47 = vpop.permute.xlu1 %1847  ;;  %v2259_v12 = vsel %vm1638_vm9, %v2254_v17, %v2258_v8  ;;  %p6558_p11 = scmp.ne.s32.totalorder %s5422_s18, %s6557_s23  ;;  %p6565_p1 = scmp.lt.s32.totalorder %s6563_s28, %s6557_s23 }
 0x1d8   : > { %v7919_v35 = vpop.permute.xlu0 %2458 }
 0x1d9   : > { %p6559_p12 = pnand %p6558_p11, %p6702_p5  ;;  %p6566_p2 = por %p6565_p1, %p6564_p0 }
 0x1db   : > { %3462 = vmatmul.mubr.bf16.gmra.mxu1 %v3038_v9  ;;  %v7929_v10 = vpop.permute.xlu1 %2090  ;;  %p6560_p13 = pneg %p6559_p12 }
 0x1dc   : > { %v2457_v54 = vpop.permute.xlu0 %2456 }
 0x1dd   : > { %v6183_v56 = vpop.f32.mrf.mxu0  ;;  %v3093_v16 = vsel %vm2952_vm13, %v2259_v12, %v2457_v54  ;;  %v8677_v54 = vld [vmem:[#allocation9_spill] sm:$0xff]  ;;  %v8679_v12 = vld [vmem:[#allocation12_spill] sm:$0xff]  ;;  %p6567_p3 = pnand %p6566_p2, %p6560_p13 }
 0x1de   : > { %v3132_v20 = vsel %vm2985_vm14, %v3093_v16, %v7885_v27  ;;  %v2263_v56 = vshll.u32 %v8677_v54, 16  ;;  %v2261_v7 = vshrl.u32 %v8677_v54, 16  ;;  %v2287_v6 = vshll.u32 %v8679_v12, 16 }
 0x1df   : > { %v7933_v34 = vpop.f32.mrf.mxu0  ;;  %v1846_v37 = vpop.permute.xlu1 %1845 }
 0x1e0   : > { %v2841_v44 = vpop.permute.xlu0 %2840  ;;  %v2968_v36 = vsel %vm2952_vm13, %v8675_v46, %v1846_v37  ;;  %v2265_v1 = vrot.slane %v2263_v56, 1  ;;  %v3906_v37 = vsel %vm7779_vm3, 0, %v3905_v58 }
 0x1e1   : > { %v6184_v15 = vpop.f32.mrf.mxu0  ;;  %v3001_v40 = vsel %vm2985_vm14, %v2968_v36, %v1975_v18  ;;  %v3172_v25 = vsel %vm3018_vm15, %v3132_v20, %v2841_v44  ;;  %v2970_v18 = vsel %vm2952_vm13, %v8676_v26, %v1848_v47  ;;  %3907 = vst [vmem:[#allocation3 + $0x10] sm:$0x1] %v3906_v37  ;;  %v6551_v20 = vld [vmem:[#allocation2 + $0x98] ss:$0 sps:$4 sm:$0x11]  }
 0x1e2   : > { %v3041_v11 = vsel %vm3018_vm15, %v3001_v40, %v7850_v53  ;;  %v3003_v62 = vsel %vm2985_vm14, %v2970_v18, %v7902_v55  ;;  %v6550_v55 = vld [vmem:[#allocation2 + $0x80] ss:$0 sps:$4 sm:$0x11]   ;;  %v2266_v43 = vor.u32 %v2265_v1, %v2261_v7  ;;  %v3937_v15 = vsel %vm7789_vm10, 0, %v3936_v63 }
 0x1e3   : > { %v2089_v4 = vpop.permute.xlu1 %2088  ;;  %v7960_v39 = vpop.f32.mrf.mxu0  ;;  %v2268_v49 = vshll.u32 %v6550_v55, 16  ;;  %3938 = vst [vmem:[#allocation3 + $0x14] sm:$0x1] %v3937_v15 }
 0x1e4   : > { %v2573_v32 = vpop.permute.xlu0 %2572  ;;  %v3044_v53 = vsel %vm3018_vm15, %v3003_v62, %v2089_v4 }
 0x1e5   : > { %v2270_v50 = vrot.slane %v2268_v49, 1 }
 0x1e7   : > { %v7946_v23 = vpop.permute.xlu1 %1980  ;;  %v2271_v33 = vsel %vm1638_vm9, %v2266_v43, %v2270_v50 }
 0x1e8   : > { %v2839_v41 = vpop.permute.xlu0 %2838  ;;  %v3096_v17 = vsel %vm2952_vm13, %v2271_v33, %v7919_v35 }
 0x1e9   : > { %v3169_v13 = vsel %vm3018_vm15, %v3130_v2, %v2839_v41 }
 0x1ea   : > { %3469 = vmatprep.mubr.bf16.mxu1 %v3169_v13  ;;  %v2285_v13 = vshrl.u32 %v8679_v12, 16 }
 0x1eb   : > { %v1979_v57 = vpop.permute.xlu1 %1978  ;;  %3470 = vmatmul.mubr.bf16.gmra.mxu1 %v3041_v11  ;;  %v2289_v11 = vrot.slane %v2287_v6, 1 }
 0x1ec   : > { %v2571_v19 = vpop.permute.xlu0 %2570  ;;  %3475 = vmatprep.mubr.bf16.mxu1 %v3172_v25  ;;  %v8680_v25 = vld [vmem:[#allocation10_spill] sm:$0xff] }
 0x1ed   : > { %v3134_v36 = vsel %vm2985_vm14, %v3096_v17, %v2571_v19  ;;  %v2290_v62 = vor.u32 %v2289_v11, %v2285_v13  ;;  %v8682_v17 = vld [vmem:[#allocation13_spill] sm:$0xff] }
 0x1ef   : > { %v1852_v24 = vpop.permute.xlu1 %1851 }
 0x1f0   : > { %v7962_v9 = vpop.permute.xlu0 %2462  ;;  %v2974_v19 = vsel %vm2952_vm13, %v8680_v25, %v1852_v24 }
 0x1f3   : > { %3476 = vmatmul.mubr.bf16.gmra.mxu1 %v3044_v53  ;;  %v7965_v61 = vpop.permute.xlu1 %2094  ;;  %v3007_v53 = vsel %vm2985_vm14, %v2974_v19, %v7946_v23 }
 0x1f5   : > { %v6187_v27 = vpop.f32.mrf.mxu0 }
 0x1f6   : > { %v2461_v38 = vpop.permute.xlu0 %2460 }
 0x1f7   : > { %v7967_v14 = vpop.f32.mrf.mxu0  ;;  %v3099_v8 = vsel %vm2952_vm13, %v7857_v31, %v2461_v38 }
 0x1f8   : > { %v3136_v2 = vsel %vm2985_vm14, %v3099_v8, %v2573_v32 }
 0x1f9   : > { %v6188_v47 = vpop.f32.mrf.mxu0 }
 0x1fa   : > { %v8681_v47 = vld [vmem:[#allocation14_spill] sm:$0xff] }
 0x1fb   : > { %v1850_v45 = vpop.permute.xlu1 %1849  ;;  %v7993_v26 = vpop.f32.mrf.mxu0 }
 0x1fc   : > { %v2845_v22 = vpop.permute.xlu0 %2844  ;;  %v2972_v44 = vsel %vm2952_vm13, %v8678_v48, %v1850_v45  ;;  %v3908_v45 = vld [vmem:[#allocation3 + $0x18] sm:$0x1] }
 0x1fd   : > { %v3005_v46 = vsel %vm2985_vm14, %v2972_v44, %v1979_v57  ;;  %v3178_v31 = vsel %vm3018_vm15, %v3136_v2, %v2845_v22  ;;  %v2292_v57 = vshll.u32 %v6551_v20, 16  ;;  %v3939_v22 = vld [vmem:[#allocation3 + $0x1c] sm:$0x1]  ;;  %v3909_v43 = vsel %vm7779_vm3, 0, %v3908_v45 }
 0x1fe   : > { %v3047_v40 = vsel %vm3018_vm15, %v3005_v46, %v7929_v10  ;;  %v3940_v50 = vsel %vm7789_vm10, 0, %v3939_v22  ;;  %3910 = vst [vmem:[#allocation3 + $0x18] sm:$0x1] %v3909_v43 }
 0x1ff   : > { %v2093_v29 = vpop.permute.xlu1 %2092  ;;  %v2294_v32 = vrot.slane %v2292_v57, 1  ;;  %3941 = vst [vmem:[#allocation3 + $0x1c] sm:$0x1] %v3940_v50 }
 0x200   : > { %v2577_v52 = vpop.permute.xlu0 %2576  ;;  %v3050_v54 = vsel %vm3018_vm15, %v3007_v53, %v2093_v29  ;;  %v8684_v53 = vld [vmem:[#allocation16_spill] sm:$0xff] }
 0x201   : > { %v2295_v1 = vsel %vm1638_vm9, %v2290_v62, %v2294_v32  ;;  %v3911_v62 = vld [vmem:[#allocation3 + $0x20] sm:$0x1]  ;;  %v3942_v32 = vld [vmem:[#allocation3 + $0x24] sm:$0x1]  ;;  %vm3840_vm9 = vcmask 1044480  }
 0x202   : > { %v3102_v49 = vsel %vm2952_vm13, %v2295_v1, %v7962_v9 }
 0x203   : > { %v1985_v4 = vpop.permute.xlu1 %1984 }
 0x204   : > { %v2843_v21 = vpop.permute.xlu0 %2842 }
 0x205   : > { %v3175_v16 = vsel %vm3018_vm15, %v3134_v36, %v2843_v21 }
 0x206   : > { %3483 = vmatprep.mubr.bf16.mxu1 %v3175_v16 }
 0x207   : > { %v1983_v35 = vpop.permute.xlu1 %1982  ;;  %3484 = vmatmul.mubr.bf16.gmra.mxu1 %v3047_v40 }
 0x208   : > { %v2575_v41 = vpop.permute.xlu0 %2574  ;;  %3489 = vmatprep.mubr.bf16.mxu1 %v3178_v31 }
 0x209   : > { %v3138_v37 = vsel %vm2985_vm14, %v3102_v49, %v2575_v41 }
 0x20b   : > { %v1856_v18 = vpop.permute.xlu1 %1855 }
 0x20c   : > { %v2465_v10 = vpop.permute.xlu0 %2464  ;;  %v2978_v8 = vsel %vm2952_vm13, %v8682_v17, %v1856_v18 }
 0x20d   : > { %v3105_v23 = vsel %vm2952_vm13, %v7864_v0, %v2465_v10  ;;  %v3011_v21 = vsel %vm2985_vm14, %v2978_v8, %v1985_v4 }
 0x20e   : > { %v6191_v27 = vpop.f32.mrf.mxu0  ;;  %v3140_v29 = vsel %vm2985_vm14, %v3105_v23, %v2577_v52 }
 0x20f   : > { %v1854_v56 = vpop.permute.xlu1 %1853  ;;  %3490 = vmatmul.mubr.bf16.gmra.mxu1 %v3050_v54 }
 0x210   : > { %v7998_v38 = vpop.f32.mrf.mxu0  ;;  %v2976_v7 = vsel %vm2952_vm13, %v8681_v47, %v1854_v56  ;;  %v2849_v24 = vpop.permute.xlu0 %2848  ;;  %v3912_v47 = vsel %vm7779_vm3, 0, %v3911_v62 }
 0x211   : > { %v3009_v63 = vsel %vm2985_vm14, %v2976_v7, %v1983_v35  ;;  %v3184_v44 = vsel %vm3018_vm15, %v3140_v29, %v2849_v24  ;;  %v3943_v7 = vsel %vm7789_vm10, 0, %v3942_v32  ;;  %3913 = vst [vmem:[#allocation3 + $0x20] sm:$0x1] %v3912_v47 }
 0x212   : > { %v6192_v55 = vpop.f32.mrf.mxu0  ;;  %v3053_v0 = vsel %vm3018_vm15, %v3009_v63, %v7965_v61  ;;  %v8683_v61 = vld [vmem:[#allocation15_spill] sm:$0xff]  ;;  %3944 = vst [vmem:[#allocation3 + $0x24] sm:$0x1] %v3943_v7 }
 0x213   : > { %v2097_v58 = vpop.permute.xlu1 %2096 }
 0x214   : > { %v2847_v15 = vpop.permute.xlu0 %2846  ;;  %v3056_v12 = vsel %vm3018_vm15, %v3011_v21, %v2097_v58  ;;  %v8027_v31 = vpop.f32.mrf.mxu0 }
 0x215   : > { %v3181_v9 = vsel %vm3018_vm15, %v3138_v37, %v2847_v15  ;;  %v3914_v15 = vld [vmem:[#allocation3 + $0x28] sm:$0x1] }
 0x216   : > { %3497 = vmatprep.mubr.bf16.mxu1 %v3181_v9  ;;  %v3945_v9 = vld [vmem:[#allocation3 + $0x2c] sm:$0x1] }
 0x217   : > { %v1987_v48 = vpop.permute.xlu1 %1986  ;;  %3498 = vmatmul.mubr.bf16.gmra.mxu1 %v3053_v0  ;;  %v3915_v0 = vsel %vm7779_vm3, 0, %v3914_v15  ;;  %v3946_v29 = vsel %vm7789_vm10, 0, %v3945_v9 }
 0x218   : > { %v2467_v33 = vpop.permute.xlu0 %2466  ;;  %3503 = vmatprep.mubr.bf16.mxu1 %v3184_v44  ;;  %3916 = vst [vmem:[#allocation3 + $0x28] sm:$0x1] %v3915_v0  ;;  %3947 = vst [vmem:[#allocation3 + $0x2c] sm:$0x1] %v3946_v29 }
 0x219   : > { %v3108_v40 = vsel %vm2952_vm13, %v7869_v51, %v2467_v33 }
 0x21b   : > { %v2099_v46 = vpop.permute.xlu1 %2098 }
 0x21c   : > { %v2579_v36 = vpop.permute.xlu0 %2578 }
 0x21d   : > { %v3142_v41 = vsel %vm2985_vm14, %v3108_v40, %v2579_v36 }
 0x21f   : > { %v1858_v6 = vpop.permute.xlu1 %1857  ;;  %3504 = vmatmul.mubr.bf16.gmra.mxu1 %v3056_v12 }
 0x220   : > { %v2980_v52 = vsel %vm2952_vm13, %v8683_v61, %v1858_v6  ;;  %v2469_v16 = vpop.permute.xlu0 %2468 }
 0x221   : > { %v3013_v35 = vsel %vm2985_vm14, %v2980_v52, %v1987_v48  ;;  %v3111_v18 = vsel %vm2952_vm13, %v7879_v30, %v2469_v16 }
 0x222   : > { %v3059_v11 = vsel %vm3018_vm15, %v3013_v35, %v2099_v46 }
 0x223   : > { %v1860_v2 = vpop.permute.xlu1 %1859 }
 0x224   : > { %v2851_v13 = vpop.permute.xlu0 %2850  ;;  %v2982_v27 = vsel %vm2952_vm13, %v8684_v53, %v1860_v2 }
 0x225   : > { %v3187_v4 = vsel %vm3018_vm15, %v3142_v41, %v2851_v13 }
 0x226   : > { %3511 = vmatprep.mubr.bf16.mxu1 %v3187_v4  ;;  %v6195_v20 = vpop.f32.mrf.mxu0 }
 0x227   : > { %v1989_v57 = vpop.permute.xlu1 %1988  ;;  %3512 = vmatmul.mubr.bf16.gmra.mxu1 %v3059_v11 }
 0x228   : > { %v2581_v25 = vpop.permute.xlu0 %2580  ;;  %v8032_v19 = vpop.f32.mrf.mxu0  ;;  %v3015_v24 = vsel %vm2985_vm14, %v2982_v27, %v1989_v57 }
 0x229   : > { %v3144_v54 = vsel %vm2985_vm14, %v3111_v18, %v2581_v25  ;;  %v8074_v18 = vld [vmem:[%s8629_s4] ss:$0 sm:$0xff] }
 0x22a   : > { %v6196_v51 = vpop.f32.mrf.mxu0 }
 0x22b   : > { %v2101_v10 = vpop.permute.xlu1 %2100 }
 0x22c   : > { %v2853_v56 = vpop.permute.xlu0 %2852  ;;  %v3062_v30 = vsel %vm3018_vm15, %v3015_v24, %v2101_v10  ;;  %v8048_v23 = vpop.f32.mrf.mxu0 }
 0x22d   : > { %v3190_v1 = vsel %vm3018_vm15, %v3144_v54, %v2853_v56 }
 0x22e   : > { %3517 = vmatprep.mubr.bf16.mxu1 %v3190_v1  ;;  %v3917_v1 = vld [vmem:[#allocation3 + $0x30] sm:$0x1] }
 0x22f   : > { %3518 = vmatmul.mubr.bf16.gmra.mxu1 %v3062_v30  ;;  %v1991_v55 = vpop.permute.xlu1 %1990  ;;  %v3948_v30 = vld [vmem:[#allocation3 + $0x34] sm:$0x1] }
 0x233   : > { %v2103_v49 = vpop.permute.xlu1 %2102 }
 0x237   : > { %v1862_v58 = vpop.permute.xlu1 %1861 }
 0x238   : > { %v2984_v43 = vsel %vm2952_vm13, %v7773_v60, %v1862_v58  ;;  %v3949_v58 = vsel %vm7789_vm10, 0, %v3948_v30 }
 0x239   : > { %v3017_v44 = vsel %vm2985_vm14, %v2984_v43, %v1991_v55  ;;  %v4075_v43 = vld [vmem:[#allocation3 + $0x8] sm:$0xf]  ;;  %3950 = vst [vmem:[#allocation3 + $0x34] sm:$0x1] %v3949_v58 }
 0x23a   : > { %v3065_v46 = vsel %vm3018_vm15, %v3017_v44, %v2103_v49 }
 0x23b   : > { %v8046_v45 = vpop.permute.xlu0 %4292 }
 0x23f   : > { %v2471_v22 = vpop.permute.xlu0 %2470 }
 0x240   : > { %v3114_v48 = vsel %vm2952_vm13, %v7897_v3, %v2471_v22  ;;  %v3918_v22 = vsel %vm7779_vm3, 0, %v3917_v1 }
 0x241   : > { %3919 = vst [vmem:[#allocation3 + $0x30] sm:$0x1] %v3918_v22 }
 0x243   : > { %v6199_v63 = vpop.f32.mrf.mxu0  ;;  %v2583_v50 = vpop.permute.xlu0 %2582 }
 0x244   : > { %v3146_v60 = vsel %vm2985_vm14, %v3114_v48, %v2583_v50  ;;  %v4078_v50 = vld [vmem:[#allocation3 + $0xc] sm:$0x1] }
 0x245   : > { %v8052_v37 = vpop.f32.mrf.mxu0 }
 0x247   : > { %v6200_v33 = vpop.f32.mrf.mxu0  ;;  %v2855_v17 = vpop.permute.xlu0 %2854 }
 0x248   : > { %v3193_v8 = vsel %vm3018_vm15, %v3146_v60, %v2855_v17 }
 0x249   : > { %3525 = vmatprep.mubr.bf16.mxu1 %v3193_v8  ;;  %v5933_v36 = vpop.f32.mrf.mxu1  ;;  %v8078_v62 = vpop.f32.mrf.mxu0 }
 0x24a   : > { %3526 = vmatmul.mubr.bf16.gmra.mxu1 %v3065_v46 }
 0x24b   : > { %v5934_v21 = vpop.f32.mrf.mxu1 }
 0x24c   : > { %v5935_v12 = vadd.f32 %v5934_v21, %v5933_v36 }
 0x24d   : > { %v5936_v6 = vpop.f32.mrf.mxu1 }
 0x24e   : > { %v3567_v3 = vadd.f32 %v5935_v12, %v7906_v59 }
 0x24f   : > { %v5937_v61 = vpop.f32.mrf.mxu1 }
 0x250   : > { %v3685_v52 = vrot.slane %v3567_v3, 1  ;;  %v3701_v16 = vrot.slane %v3567_v3, 2  ;;  %v5938_v40 = vadd.f32 %v5937_v61, %v5936_v6  ;;  %v3717_v2 = vrot.slane %v3567_v3, 3 }
 0x252   : > { %v3806_v35 = vsel %vm3805_vm4, %v3567_v3, %v3685_v52  ;;  %v3570_v41 = vadd.f32 %v5938_v40, %v7927_v5 }
 0x253   : > { %v3814_v13 = vsel %vm465_vm0, %v3806_v35, %v3701_v16 }
 0x254   : > { %v3823_v4 = vsel %vm3822_vm5, %v3814_v13, %v3717_v2  ;;  %v3741_v11 = vrot.slane %v3570_v41, 4  ;;  %v3757_v20 = vrot.slane %v3570_v41, 5  ;;  %v3773_v59 = vrot.slane %v3570_v41, 6 }
 0x255   : > { %v3789_v25 = vrot.slane %v3570_v41, 7 }
 0x256   : > { %v3832_v57 = vsel %vm3831_vm7, %v3823_v4, %v3741_v11 }
 0x257   : > { %v3841_v51 = vsel %vm3840_vm9, %v3832_v57, %v3757_v20  ;;  %v3951_v57 = vld [vmem:[#allocation3 + $0x3c] sm:$0x1] }
 0x258   : > { %v3850_v5 = vsel %vm3849_vm11, %v3841_v51, %v3773_v59  ;;  %v3920_v59 = vld [vmem:[#allocation3 + $0x38] sm:$0x1] }
 0x259   : > { %v3859_v10 = vsel %vm1911_vm8, %v3850_v5, %v3789_v25 }
 0x25a   : > { %v3874_v32 = vadd.f32 %v8074_v18, %v3859_v10  ;;  %v3921_v10 = vsel %vm7779_vm3, 0, %v3920_v59 }
 0x25b   : > { %3922 = vst [vmem:[#allocation3 + $0x38] sm:$0x1] %v3921_v10 }
 0x25c   : > { %v3882_v53 = vmax.f32 %v3874_v32, 0.0  ;;  %v6203_v27 = vpop.f32.mrf.mxu0 }
 0x25e   : > { %v5890_v54 = vpack.c.bf16 %v3882_v53, %v3882_v53  ;;  %v8081_v56 = vpop.f32.mrf.mxu0 }
 0x260   : > { %v3993_v47 = vshrl.u32 %v5890_v54, 16  ;;  %v6204_v7 = vpop.f32.mrf.mxu0  ;;  %v3996_v49 = vshll.u32 %v5890_v54, 16 }
 0x261   : > { %v5939_v24 = vpop.f32.mrf.mxu1 }
 0x262   : > { %v3995_v55 = vrot.slane %v3993_v47, 7  ;;  %v8139_v59 = vpop.f32.mrf.mxu0 }
 0x263   : > { %v5940_v15 = vpop.f32.mrf.mxu1 }
 0x264   : > { %v3998_v9 = vor.u32 %v3996_v49, %v3995_v55  ;;  %v3999_v0 = vrot.slane %v3995_v55, 4 }
 0x265   : > { %v5942_v29 = vpop.f32.mrf.mxu1 }
 0x266   : > { %v4076_v48 = vsel %vm8089_vm12, %v3998_v9, %v4075_v43  ;;  %v4079_v44 = vsel %vm7779_vm3, %v3999_v0, %v4078_v50  ;;  %v6474_v29 = vld [vmem:[%s8630_s5 + $0x78] sm:$0xff]  }
 0x267   : > { %4077 = vst [vmem:[#allocation3 + $0x8] sm:$0xf] %v4076_v48  ;;  %4080 = vst [vmem:[#allocation3 + $0xc] sm:$0x1] %v4079_v44  ;;  %v5943_v33 = vpop.f32.mrf.mxu1  ;;  %v6475_v48 = vld [vmem:[%s8630_s5 + $0x38] sm:$0xff]   ;;  %6047 = vmatprep.subr.bf16.mxu0 %v6474_v29 }
 0x268   : > { %6048 = vmatpush3.bf16.msra.mxu0 %v6475_v48 }
 0x269   : > { %v5945_v60 = vpop.f32.mrf.mxu1 }
 0x26b   : > { %v5946_v17 = vpop.f32.mrf.mxu1 }
 0x26c   : > { %v5947_v8 = vadd.f32 %v5946_v17, %v5945_v60  ;;  %v6476_v60 = vld [vmem:[%s8630_s5 + $0x70] sm:$0xff]  }
 0x26d   : > { %v5948_v46 = vpop.f32.mrf.mxu1  ;;  %6049 = vmatprep.subr.bf16.mxu0 %v6476_v60 }
 0x26e   : > { %v3581_v36 = vadd.f32 %v5947_v8, %v7933_v34  ;;  %v4147_v21 = vld [vmem:[#allocation3 + $0x8] sm:$0xf]  ;;  %v4155_v12 = vld [vmem:[#allocation3 + $0xc] sm:$0x1] }
 0x26f   : > { %v4163_v6 = vld [vmem:[#allocation3 + $0x8] sm:$0xe]  ;;  %v5753_v3 = vcombine.low %v4147_v21, %v4147_v21  ;;  %v5949_v61 = vpop.f32.mrf.mxu1  ;;  %v8098_v52 = vcombine.low %v4147_v21, %v4155_v12  ;;  %v8102_v2 = vld [vmem:[#allocation3 + $0xc] sm:$0x1]  ;;  %v3923_v21 = vld [vmem:[#allocation3 + $0x40] sm:$0x1] }
 0x270   : > { %v5769_v16 = vcombine.low %v4163_v6, %v4155_v12  ;;  %v8100_v40 = vld [vmem:[#allocation3 + $0x8] sm:$0xf]  ;;  %v3686_v35 = vrot.slane %v3581_v36, 1  ;;  %v3702_v41 = vrot.slane %v3581_v36, 2  ;;  %v5950_v13 = vadd.f32 %v5949_v61, %v5948_v46  ;;  %v6477_v46 = vld [vmem:[%s8630_s5 + $0x30] sm:$0xff]  }
 0x271   : > { %4364 = vrot.lane.b32.xlu0 %v5753_v3, %s6620_s29  ;;  %v5738_v34 = vcombine.low %v8100_v40, %v8102_v2  ;;  %v3718_v4 = vrot.slane %v3581_v36, 3  ;;  %v3954_v12 = vld [vmem:[#allocation3 + $0x44] sm:$0x1]  ;;  %6050 = vmatpush3.bf16.msra.mxu0 %v6477_v46 }
 0x272   : > { %v3807_v11 = vsel %vm3805_vm4, %v3581_v36, %v3686_v35  ;;  %v3584_v20 = vadd.f32 %v5950_v13, %v7960_v39  ;;  %v4484_v51 = vrot.slane %v5769_v16, 1  ;;  %v3952_v39 = vsel %vm7789_vm10, 0, %v3951_v57  ;;  %v4084_v13 = vld [vmem:[#allocation3 + $0x14] sm:$0x1] }
 0x273   : > { %v3815_v25 = vsel %vm465_vm0, %v3807_v11, %v3702_v41  ;;  %v4246_v5 = vshll.u32 %v5738_v34, 16  ;;  %v4244_v54 = vshrl.u32 %v5738_v34, 16  ;;  %3953 = vst [vmem:[#allocation3 + $0x3c] sm:$0x1] %v3952_v39  ;;  %v3924_v16 = vsel %vm7779_vm3, 0, %v3923_v21 }
 0x274   : > { %v3824_v32 = vsel %vm3822_vm5, %v3815_v25, %v3718_v4  ;;  %v3742_v53 = vrot.slane %v3584_v20, 4  ;;  %v3758_v27 = vrot.slane %v3584_v20, 5  ;;  %v3774_v7 = vrot.slane %v3584_v20, 6  ;;  %v4081_v41 = vld [vmem:[#allocation3 + $0x10] sm:$0xf] }
 0x275   : > { %4492 = vrot.lane.b32.xlu0 %v4484_v51, %s6620_s29  ;;  %v4248_v47 = vrot.slane %v4246_v5, 1  ;;  %v3790_v30 = vrot.slane %v3584_v20, 7  ;;  %v3955_v35 = vsel %vm7789_vm10, 0, %v3954_v12  ;;  %3925 = vst [vmem:[#allocation3 + $0x40] sm:$0x1] %v3924_v16 }
 0x276   : > { %v3833_v24 = vsel %vm3831_vm7, %v3824_v32, %v3742_v53  ;;  %3956 = vst [vmem:[#allocation3 + $0x44] sm:$0x1] %v3955_v35 }
 0x277   : > { %v3842_v55 = vsel %vm3840_vm9, %v3833_v24, %v3758_v27  ;;  %v4249_v49 = vor.u32 %v4248_v47, %v4244_v54 }
 0x278   : > { %v3851_v22 = vsel %vm3849_vm11, %v3842_v55, %v3774_v7 }
 0x279   : > { %v3860_v43 = vsel %vm1911_vm8, %v3851_v22, %v3790_v30  ;;  %4294 = vrot.lane.b32.xlu1 %v4249_v49, %s6620_s29 }
 0x27a   : > { %v5951_v1 = vpop.f32.mrf.mxu1  ;;  %v3875_v50 = vadd.f32 %v8074_v18, %v3860_v43 }
 0x27c   : > { %v5952_v58 = vpop.f32.mrf.mxu1  ;;  %v3883_v9 = vmax.f32 %v3875_v50, 0.0  ;;  %v6481_v50 = vld [vmem:[%s8630_s5 + $0x60] sm:$0xff]  }
 0x27d   : > { %v6479_v58 = vld [vmem:[%s8630_s5 + $0x28] sm:$0xff]  }
 0x27e   : > { %v5954_v15 = vpop.f32.mrf.mxu1  ;;  %v5891_v44 = vpack.c.bf16 %v3883_v9, %v3883_v9 }
 0x27f   : > { %v6482_v15 = vld [vmem:[%s8630_s5 + $0x20] sm:$0xff]  }
 0x280   : > { %v5955_v0 = vpop.f32.mrf.mxu1  ;;  %v4001_v17 = vshrl.u32 %v5891_v44, 16  ;;  %v4004_v3 = vshll.u32 %v5891_v44, 16 }
 0x282   : > { %v5957_v33 = vpop.f32.mrf.mxu1  ;;  %v4003_v6 = vrot.slane %v4001_v17, 7 }
 0x284   : > { %v5958_v8 = vpop.f32.mrf.mxu1  ;;  %v4006_v4 = vor.u32 %v4004_v3, %v4003_v6  ;;  %v4007_v11 = vrot.slane %v4003_v6, 4  ;;  %v6484_v3 = vld [vmem:[%s8630_s5 + $0x58] sm:$0xff]  }
 0x285   : > { %v5959_v36 = vadd.f32 %v5958_v8, %v5957_v33  ;;  %v6207_v27 = vpop.f32.mrf.mxu0 }
 0x286   : > { %v5960_v61 = vpop.f32.mrf.mxu1  ;;  %v4082_v5 = vsel %vm8089_vm12, %v4006_v4, %v4081_v41  ;;  %v4085_v10 = vsel %vm7779_vm3, %v4007_v11, %v4084_v13  ;;  %v6488_v41 = vld [vmem:[%s8630_s5 + $0xf8] sm:$0xff]   ;;  %v6501_v27 = vld [vmem:[%s8630_s5 + $0xb0] sm:$0xff]  }
 0x287   : > { %v3595_v34 = vadd.f32 %v5959_v36, %v7967_v14  ;;  %4083 = vst [vmem:[#allocation3 + $0x10] sm:$0xf] %v4082_v5  ;;  %4086 = vst [vmem:[#allocation3 + $0x14] sm:$0x1] %v4085_v10  ;;  %v8149_v24 = vpop.f32.mrf.mxu0  ;;  %v6489_v13 = vld [vmem:[%s8630_s5 + $0xb8] sm:$0xff]   ;;  %6087 = vmatprep.subr.bf16.mxu1 %v6488_v41 }
 0x288   : > { %v5961_v20 = vpop.f32.mrf.mxu1  ;;  %6088 = vmatpush3.bf16.msra.mxu1 %v6489_v13  ;;  %v6511_v41 = vld [vmem:[%s8630_s5 + $0xd8] sm:$0xff]  }
 0x289   : > { %v3687_v57 = vrot.slane %v3595_v34, 1  ;;  %v3703_v25 = vrot.slane %v3595_v34, 2  ;;  %v5962_v51 = vadd.f32 %v5961_v20, %v5960_v61  ;;  %v3719_v14 = vrot.slane %v3595_v34, 3  ;;  %v6208_v55 = vpop.f32.mrf.mxu0 }
 0x28a   : > { %v6487_v55 = vld [vmem:[%s8630_s5 + $0x10] sm:$0xff]  }
 0x28b   : > { %v3808_v32 = vsel %vm3805_vm4, %v3595_v34, %v3687_v57  ;;  %v3598_v53 = vadd.f32 %v5962_v51, %v7993_v26  ;;  %v6478_v26 = vld [vmem:[%s8630_s5 + $0x68] sm:$0xff]   ;;  %v6500_v51 = vld [vmem:[%s8630_s5 + $0xf0] sm:$0xff]  }
 0x28c   : > { %v3816_v54 = vsel %vm465_vm0, %v3808_v32, %v3703_v25  ;;  %6051 = vmatprep.subr.bf16.mxu0 %v6478_v26  ;;  %v6485_v25 = vld [vmem:[%s8630_s5 + $0x18] sm:$0xff]   ;;  %6089 = vmatprep.subr.bf16.mxu1 %v6500_v51 }
 0x28d   : > { %v3825_v47 = vsel %vm3822_vm5, %v3816_v54, %v3719_v14  ;;  %v3743_v39 = vrot.slane %v3598_v53, 4  ;;  %v3759_v7 = vrot.slane %v3598_v53, 5  ;;  %v3775_v1 = vrot.slane %v3598_v53, 6  ;;  %6052 = vmatpush3.bf16.msra.mxu0 %v6479_v58  ;;  %v6486_v14 = vld [vmem:[%s8630_s5 + $0x50] sm:$0xff]   ;;  %v6490_v58 = vld [vmem:[%s8630_s5 + $0x48] sm:$0xff]   ;;  %6090 = vmatpush3.bf16.msra.mxu1 %v6501_v27 }
 0x28e   : > { %v3791_v49 = vrot.slane %v3598_v53, 7  ;;  %v4148_v0 = vld [vmem:[#allocation3 + $0x10] sm:$0xf]  ;;  %v4156_v29 = vld [vmem:[#allocation3 + $0x14] sm:$0x1]  ;;  %6053 = vmatprep.subr.bf16.mxu0 %v6481_v50 }
 0x28f   : > { %v3834_v30 = vsel %vm3831_vm7, %v3825_v47, %v3743_v39  ;;  %v4164_v48 = vld [vmem:[#allocation3 + $0x10] sm:$0xe]  ;;  %v5754_v33 = vcombine.low %v4148_v0, %v4148_v0  ;;  %v8168_v17 = vcombine.low %v4148_v0, %v4156_v29  ;;  %v4133_v36 = vld [vmem:[#allocation3 + $0x14] sm:$0x1] }
 0x290   : > { %v3843_v22 = vsel %vm3840_vm9, %v3834_v30, %v3759_v7  ;;  %v5770_v8 = vcombine.low %v4164_v48, %v4156_v29  ;;  %v4125_v46 = vld [vmem:[#allocation3 + $0x10] sm:$0xf]  ;;  %v8172_v6 = vld [vmem:[#allocation3 + $0x14] sm:$0x1]  ;;  %v6506_v48 = vld [vmem:[%s8630_s5 + $0xe0] sm:$0xff]  }
 0x291   : > { %v3852_v43 = vsel %vm3849_vm11, %v3843_v22, %v3775_v1  ;;  %v8170_v21 = vld [vmem:[#allocation3 + $0x10] sm:$0xf]  ;;  %v5739_v12 = vcombine.low %v4125_v46, %v4133_v36  ;;  %4366 = vrot.lane.b32.xlu1 %v5754_v33, %s6620_s29  ;;  %6054 = vmatpush3.bf16.msra.mxu0 %v6482_v15  ;;  %v4090_v22 = vld [vmem:[#allocation3 + $0x1c] sm:$0x1]  ;;  %v6494_v36 = vld [vmem:[%s8630_s5 + $0x40] sm:$0xff]  }
 0x292   : > { %v3861_v9 = vsel %vm1911_vm8, %v3852_v43, %v3791_v49  ;;  %v5777_v35 = vcombine.low %v8170_v21, %v8172_v6  ;;  %v4485_v11 = vrot.slane %v5770_v8, 1  ;;  %6055 = vmatprep.subr.bf16.mxu0 %v6484_v3  ;;  %v6503_v39 = vld [vmem:[%s8630_s5 + $0xe8] sm:$0xff]   ;;  %v4087_v49 = vld [vmem:[#allocation3 + $0x18] sm:$0xf]  ;;  %v6507_v3 = vld [vmem:[%s8630_s5 + $0xa0] sm:$0xff]  }
 0x293   : > { %v3876_v44 = vadd.f32 %v8074_v18, %v3861_v9  ;;  %v5963_v60 = vpop.f32.mrf.mxu1  ;;  %v4253_v34 = vshll.u32 %v5739_v12, 16  ;;  %v4251_v5 = vshrl.u32 %v5739_v12, 16  ;;  %v6504_v9 = vld [vmem:[%s8630_s5 + $0xa8] sm:$0xff]   ;;  %6091 = vmatprep.subr.bf16.mxu1 %v6503_v39 }
 0x294   : > { %v4551_v57 = vshll.u32 %v5777_v35, 16  ;;  %v4549_v26 = vshrl.u32 %v5777_v35, 16  ;;  %v6491_v8 = vld [vmem:[%s8630_s5 + $0x8] sm:$0xff]   ;;  %6092 = vmatpush3.bf16.msra.mxu1 %v6504_v9 }
 0x295   : > { %v3884_v61 = vmax.f32 %v3876_v44, 0.0  ;;  %v5964_v16 = vpop.f32.mrf.mxu1  ;;  %v4255_v10 = vrot.slane %v4253_v34, 1  ;;  %4494 = vrot.lane.b32.xlu1 %v4485_v11, %s6620_s29  ;;  %6056 = vmatpush3.bf16.msra.mxu0 %v6485_v25  ;;  %v3926_v11 = vld [vmem:[#allocation3 + $0x48] sm:$0x1]  ;;  %v6512_v25 = vld [vmem:[%s8630_s5 + $0x98] sm:$0xff]  }
 0x296   : > { %v4553_v47 = vrot.slane %v4551_v57, 1  ;;  %6057 = vmatprep.subr.bf16.mxu0 %v6486_v14  ;;  %6093 = vmatprep.subr.bf16.mxu1 %v6506_v48  ;;  %v3927_v51 = vsel %vm7779_vm3, 0, %v3926_v11 }
 0x297   : > { %v5892_v4 = vpack.c.bf16 %v3884_v61, %v3884_v61  ;;  %v5966_v20 = vpop.f32.mrf.mxu1  ;;  %v4256_v54 = vor.u32 %v4255_v10, %v4251_v5  ;;  %3928 = vst [vmem:[#allocation3 + $0x48] sm:$0x1] %v3927_v51 }
 0x298   : > { %v4554_v0 = vor.u32 %v4553_v47, %v4549_v26  ;;  %v3957_v20 = vld [vmem:[#allocation3 + $0x4c] sm:$0x1]  ;;  %6094 = vmatpush3.bf16.msra.mxu1 %v6507_v3  ;;  %v6522_v3 = vld [vmem:[%s8630_s5 + $0x88] sm:$0xff]  }
 0x299   : > { %v4009_v32 = vshrl.u32 %v5892_v4, 16  ;;  %v5967_v53 = vpop.f32.mrf.mxu1  ;;  %v4012_v1 = vshll.u32 %v5892_v4, 16  ;;  %4296 = vrot.lane.b32.xlu0 %v4256_v54, %s6620_s29  ;;  %6058 = vmatpush3.bf16.msra.mxu0 %v6487_v55  ;;  %v3958_v5 = vsel %vm7789_vm10, 0, %v3957_v20 }
 0x29a   : > { %6059 = vmatprep.subr.bf16.mxu0 %v6490_v58  ;;  %6095 = vmatprep.subr.bf16.mxu1 %v6511_v41  ;;  %3959 = vst [vmem:[#allocation3 + $0x4c] sm:$0x1] %v3958_v5 }
 0x29b   : > { %v4011_v7 = vrot.slane %v4009_v32, 7  ;;  %v5969_v30 = vpop.f32.mrf.mxu1  ;;  %v6517_v32 = vld [vmem:[%s8630_s5 + $0xd0] sm:$0xff]  }
 0x29c   : > { %6096 = vmatpush3.bf16.msra.mxu1 %v6512_v25 }
 0x29d   : > { %v4014_v43 = vor.u32 %v4012_v1, %v4011_v7  ;;  %v4015_v50 = vrot.slane %v4011_v7, 4  ;;  %v5970_v15 = vpop.f32.mrf.mxu1  ;;  %4604 = vrot.lane.b32.xlu0 %v4554_v0, %s6620_s29  ;;  %6060 = vmatpush3.bf16.msra.mxu0 %v6491_v8  ;;  %v6521_v0 = vld [vmem:[%s8630_s5 + $0xc8] sm:$0xff]  }
 0x29e   : > { %v5971_v29 = vadd.f32 %v5970_v15, %v5969_v30  ;;  %6061 = vmatprep.subr.bf16.mxu0 %v6494_v36  ;;  %6097 = vmatprep.subr.bf16.mxu1 %v6517_v32  ;;  %v4188_v8 = vld [vmem:[#allocation3 + $0x10] sm:$0xe] }
 0x29f   : > { %v4088_v44 = vsel %vm8089_vm12, %v4014_v43, %v4087_v49  ;;  %v4091_v33 = vsel %vm7779_vm3, %v4015_v50, %v4090_v22  ;;  %v5972_v60 = vpop.f32.mrf.mxu1  ;;  %v6518_v50 = vld [vmem:[%s8630_s5 + $0x90] sm:$0xff]  }
 0x2a0   : > { %4089 = vst [vmem:[#allocation3 + $0x18] sm:$0xf] %v4088_v44  ;;  %4092 = vst [vmem:[#allocation3 + $0x1c] sm:$0x1] %v4091_v33  ;;  %v3609_v46 = vadd.f32 %v5971_v29, %v7998_v38  ;;  %v6495_v38 = vld [vmem:[%s8630_s5] sm:$0xff]   ;;  %6098 = vmatpush3.bf16.msra.mxu1 %v6518_v50 }
 0x2a1   : > { %v5973_v12 = vpop.f32.mrf.mxu1  ;;  %6062 = vmatpush3.bf16.msra.mxu0 %v6495_v38  ;;  %6099 = vmatprep.subr.bf16.mxu1 %v6521_v0 }
 0x2a2   : > { %v3688_v61 = vrot.slane %v3609_v46, 1  ;;  %v3704_v16 = vrot.slane %v3609_v46, 2  ;;  %v5974_v35 = vadd.f32 %v5973_v12, %v5972_v60  ;;  %v3720_v13 = vrot.slane %v3609_v46, 3 }
 0x2a4   : > { %v3809_v34 = vsel %vm3805_vm4, %v3609_v46, %v3688_v61  ;;  %v3612_v4 = vadd.f32 %v5974_v35, %v8027_v31  ;;  %6100 = vmatpush3.bf16.msra.mxu1 %v6522_v3 }
 0x2a5   : > { %v3817_v57 = vsel %vm465_vm0, %v3809_v34, %v3704_v16  ;;  %v6523_v16 = vld [vmem:[%s8630_s5 + $0xc0] sm:$0xff]  }
 0x2a6   : > { %v3826_v10 = vsel %vm3822_vm5, %v3817_v57, %v3720_v13  ;;  %v3744_v14 = vrot.slane %v3612_v4, 4  ;;  %v3760_v31 = vrot.slane %v3612_v4, 5  ;;  %v3776_v53 = vrot.slane %v3612_v4, 6  ;;  %v6524_v57 = vld [vmem:[%s8630_s5 + $0x80] sm:$0xff]   ;;  %6101 = vmatprep.subr.bf16.mxu1 %v6523_v16 }
 0x2a7   : > { %v4149_v27 = vld [vmem:[#allocation3 + $0x18] sm:$0xf]  ;;  %v4157_v54 = vld [vmem:[#allocation3 + $0x1c] sm:$0x1]  ;;  %v3792_v55 = vrot.slane %v3612_v4, 7  ;;  %v5785_v13 = vcombine.low %v4188_v8, %v8172_v6 }
 0x2a8   : > { %v3835_v47 = vsel %vm3831_vm7, %v3826_v10, %v3744_v14  ;;  %v5755_v39 = vcombine.low %v4149_v27, %v4149_v27  ;;  %v4165_v28 = vld [vmem:[#allocation3 + $0x18] sm:$0xe]  ;;  %v8251_v7 = vcombine.low %v4149_v27, %v4157_v54  ;;  %v8255_v30 = vld [vmem:[#allocation3 + $0x1c] sm:$0x1]  ;;  %v4096_v27 = vld [vmem:[#allocation3 + $0x24] sm:$0x1]  ;;  %6102 = vmatpush3.bf16.msra.mxu1 %v6524_v57 }
 0x2a9   : > { %v8253_v1 = vld [vmem:[#allocation3 + $0x18] sm:$0xf]  ;;  %v3844_v49 = vsel %vm3840_vm9, %v3835_v47, %v3760_v31  ;;  %v5771_v22 = vcombine.low %v4165_v28, %v4157_v54  ;;  %v4181_v43 = vld [vmem:[#allocation3 + $0x1c] sm:$0x1]  ;;  %v8285_v14 = vrot.slane %v5785_v13, 1 }
 0x2aa   : > { %v5740_v26 = vcombine.low %v8253_v1, %v8255_v30  ;;  %v8260_v58 = vld [vmem:[#allocation3 + $0x18] sm:$0xf]  ;;  %v3853_v15 = vsel %vm3849_vm11, %v3844_v49, %v3776_v53  ;;  %4368 = vrot.lane.b32.xlu1 %v5755_v39, %s6620_s29  ;;  %v4093_v53 = vld [vmem:[#allocation3 + $0x20] sm:$0xf] }
 0x2ab   : > { %v5778_v9 = vcombine.low %v8260_v58, %v4181_v43  ;;  %v3862_v29 = vsel %vm1911_vm8, %v3853_v15, %v3792_v55  ;;  %v4486_v48 = vrot.slane %v5771_v22, 1  ;;  %v5975_v46 = vpop.f32.mrf.mxu1  ;;  %v4189_v4 = vld [vmem:[#allocation3 + $0x18] sm:$0xe] }
 0x2ac   : > { %v4260_v44 = vshll.u32 %v5740_v26, 16  ;;  %v3877_v33 = vadd.f32 %v8074_v18, %v3862_v29  ;;  %v4258_v36 = vshrl.u32 %v5740_v26, 16  ;;  %v5786_v25 = vcombine.low %v4189_v4, %v4181_v43 }
 0x2ad   : > { %v4558_v60 = vshll.u32 %v5778_v9, 16  ;;  %4496 = vrot.lane.b32.xlu0 %v4486_v48, %s6620_s29  ;;  %v5976_v35 = vpop.f32.mrf.mxu1  ;;  %v4556_v20 = vshrl.u32 %v5778_v9, 16 }
 0x2ae   : > { %v4262_v12 = vrot.slane %v4260_v44, 1  ;;  %v3885_v61 = vmax.f32 %v3877_v33, 0.0  ;;  %v8287_v31 = vrot.slane %v5786_v25, 1 }
 0x2af   : > { %v4560_v38 = vrot.slane %v4558_v60, 1  ;;  %v5978_v11 = vpop.f32.mrf.mxu1 }
 0x2b0   : > { %v4263_v41 = vor.u32 %v4262_v12, %v4258_v36  ;;  %v5893_v34 = vpack.c.bf16 %v3885_v61, %v3885_v61  ;;  %v5797_v47 = vcombine.low %v8285_v14, %v8287_v31 }
 0x2b1   : > { %v5979_v5 = vpop.f32.mrf.mxu1  ;;  %v4561_v10 = vor.u32 %v4560_v38, %v4556_v20 }
 0x2b2   : > { %4298 = vrot.lane.b32.xlu1 %v4263_v41, %s6620_s29  ;;  %v4017_v51 = vshrl.u32 %v5893_v34, 16  ;;  %v4020_v32 = vshll.u32 %v5893_v34, 16 }
 0x2b3   : > { %v5981_v54 = vpop.f32.mrf.mxu1 }
 0x2b4   : > { %v4019_v6 = vrot.slane %v4017_v51, 7 }
 0x2b5   : > { %v5982_v55 = vpop.f32.mrf.mxu1 }
 0x2b6   : > { %4606 = vrot.lane.b32.xlu1 %v4561_v10, %s6620_s29  ;;  %v4022_v39 = vor.u32 %v4020_v32, %v4019_v6  ;;  %v4023_v28 = vrot.slane %v4019_v6, 4  ;;  %v5983_v26 = vadd.f32 %v5982_v55, %v5981_v54 }
 0x2b7   : > { %v5984_v43 = vpop.f32.mrf.mxu1 }
 0x2b8   : > { %v4094_v49 = vsel %vm8089_vm12, %v4022_v39, %v4093_v53  ;;  %v4097_v22 = vsel %vm7779_vm3, %v4023_v28, %v4096_v27  ;;  %v3623_v50 = vadd.f32 %v5983_v26, %v8032_v19 }
 0x2b9   : > { %4095 = vst [vmem:[#allocation3 + $0x20] sm:$0xf] %v4094_v49  ;;  %4098 = vst [vmem:[#allocation3 + $0x24] sm:$0x1] %v4097_v22  ;;  %v5985_v15 = vpop.f32.mrf.mxu1 }
 0x2ba   : > { %v3689_v9 = vrot.slane %v3623_v50, 1  ;;  %v3705_v0 = vrot.slane %v3623_v50, 2  ;;  %v5986_v29 = vadd.f32 %v5985_v15, %v5984_v43  ;;  %v3721_v48 = vrot.slane %v3623_v50, 3 }
 0x2bc   : > { %v3810_v44 = vsel %vm3805_vm4, %v3623_v50, %v3689_v9  ;;  %v3626_v33 = vadd.f32 %v5986_v29, %v8048_v23 }
 0x2bd   : > { %v3818_v60 = vsel %vm465_vm0, %v3810_v44, %v3705_v0  ;;  %v4102_v44 = vld [vmem:[#allocation3 + $0x2c] sm:$0x1] }
 0x2be   : > { %v3827_v8 = vsel %vm3822_vm5, %v3818_v60, %v3721_v48  ;;  %v3745_v46 = vrot.slane %v3626_v33, 4  ;;  %v3761_v36 = vrot.slane %v3626_v33, 5  ;;  %v3777_v3 = vrot.slane %v3626_v33, 6  ;;  %v4099_v48 = vld [vmem:[#allocation3 + $0x28] sm:$0xf] }
 0x2bf   : > { %v3793_v4 = vrot.slane %v3626_v33, 7 }
 0x2c0   : > { %v4150_v12 = vld [vmem:[#allocation3 + $0x20] sm:$0xf]  ;;  %v4158_v16 = vld [vmem:[#allocation3 + $0x24] sm:$0x1]  ;;  %v3836_v35 = vsel %vm3831_vm7, %v3827_v8, %v3745_v46 }
 0x2c1   : > { %v5756_v61 = vcombine.low %v4150_v12, %v4150_v12  ;;  %v4166_v19 = vld [vmem:[#allocation3 + $0x20] sm:$0xe]  ;;  %v8302_v38 = vcombine.low %v4150_v12, %v4158_v16  ;;  %v8306_v34 = vld [vmem:[#allocation3 + $0x24] sm:$0x1]  ;;  %v3845_v11 = vsel %vm3840_vm9, %v3836_v35, %v3761_v36 }
 0x2c2   : > { %v5772_v41 = vcombine.low %v4166_v19, %v4158_v16  ;;  %v8304_v13 = vld [vmem:[#allocation3 + $0x20] sm:$0xf]  ;;  %v8314_v57 = vld [vmem:[#allocation3 + $0x24] sm:$0x1]  ;;  %v3854_v25 = vsel %vm3849_vm11, %v3845_v11, %v3777_v3 }
 0x2c3   : > { %v8308_v23 = vld [vmem:[#allocation3 + $0x20] sm:$0xf]  ;;  %4370 = vrot.lane.b32.xlu0 %v5756_v61, %s6620_s29  ;;  %v5741_v20 = vcombine.low %v8304_v13, %v8306_v34  ;;  %v3863_v10 = vsel %vm1911_vm8, %v3854_v25, %v3793_v4 }
 0x2c4   : > { %v4487_v51 = vrot.slane %v5772_v41, 1  ;;  %v5779_v5 = vcombine.low %v8308_v23, %v8314_v57  ;;  %v3878_v32 = vadd.f32 %v8074_v18, %v3863_v10  ;;  %v4190_v19 = vld [vmem:[#allocation3 + $0x20] sm:$0xe] }
 0x2c5   : > { %v4267_v6 = vshll.u32 %v5741_v20, 16  ;;  %v4265_v27 = vshrl.u32 %v5741_v20, 16 }
 0x2c6   : > { %4498 = vrot.lane.b32.xlu1 %v4487_v51, %s6620_s29  ;;  %v4565_v53 = vshll.u32 %v5779_v5, 16  ;;  %v3886_v39 = vmax.f32 %v3878_v32, 0.0  ;;  %v4563_v26 = vshrl.u32 %v5779_v5, 16  ;;  %v5787_v51 = vcombine.low %v4190_v19, %v8314_v57 }
 0x2c7   : > { %v4269_v54 = vrot.slane %v4267_v6, 1  ;;  %v5987_v22 = vpop.f32.mrf.mxu1 }
 0x2c8   : > { %v4567_v55 = vrot.slane %v4565_v53, 1  ;;  %v5894_v49 = vpack.c.bf16 %v3886_v39, %v3886_v39 }
 0x2c9   : > { %v4270_v28 = vor.u32 %v4269_v54, %v4265_v27  ;;  %v5988_v50 = vpop.f32.mrf.mxu1 }
 0x2ca   : > { %v4025_v43 = vshrl.u32 %v5894_v49, 16  ;;  %v4568_v15 = vor.u32 %v4567_v55, %v4563_v26  ;;  %v4028_v0 = vshll.u32 %v5894_v49, 16 }
 0x2cb   : > { %4300 = vrot.lane.b32.xlu0 %v4270_v28, %s6620_s29  ;;  %v5990_v29 = vpop.f32.mrf.mxu1 }
 0x2cc   : > { %v4027_v9 = vrot.slane %v4025_v43, 7 }
 0x2cd   : > { %v5991_v8 = vpop.f32.mrf.mxu1 }
 0x2ce   : > { %v4030_v33 = vor.u32 %v4028_v0, %v4027_v9  ;;  %v4031_v60 = vrot.slane %v4027_v9, 4  ;;  %v8346_v9 = vrot.slane %v5787_v51, 1 }
 0x2cf   : > { %4608 = vrot.lane.b32.xlu0 %v4568_v15, %s6620_s29  ;;  %v5993_v12 = vpop.f32.mrf.mxu1 }
 0x2d0   : > { %v4100_v46 = vsel %vm8089_vm12, %v4030_v33, %v4099_v48  ;;  %v4103_v36 = vsel %vm7779_vm3, %v4031_v60, %v4102_v44 }
 0x2d1   : > { %4101 = vst [vmem:[#allocation3 + $0x28] sm:$0xf] %v4100_v46  ;;  %4104 = vst [vmem:[#allocation3 + $0x2c] sm:$0x1] %v4103_v36  ;;  %v5994_v3 = vpop.f32.mrf.mxu1 }
 0x2d2   : > { %v5995_v61 = vadd.f32 %v5994_v3, %v5993_v12 }
 0x2d3   : > { %v5996_v16 = vpop.f32.mrf.mxu1 }
 0x2d4   : > { %v3637_v35 = vadd.f32 %v5995_v61, %v8052_v37 }
 0x2d5   : > { %v5997_v41 = vpop.f32.mrf.mxu1 }
 0x2d6   : > { %v3690_v4 = vrot.slane %v3637_v35, 1  ;;  %v3706_v11 = vrot.slane %v3637_v35, 2  ;;  %v3722_v20 = vrot.slane %v3637_v35, 3  ;;  %v5998_v25 = vadd.f32 %v5997_v41, %v5996_v16 }
 0x2d7   : > { %v5999_v5 = vpop.f32.mrf.mxu1 }
 0x2d8   : > { %v4151_v10 = vld [vmem:[#allocation3 + $0x28] sm:$0xf]  ;;  %v8332_v32 = vld [vmem:[#allocation3 + $0x2c] sm:$0x1]  ;;  %v3811_v53 = vsel %vm3805_vm4, %v3637_v35, %v3690_v4  ;;  %v3640_v27 = vadd.f32 %v5998_v25, %v8078_v62 }
 0x2d9   : > { %v8330_v6 = vld [vmem:[#allocation3 + $0x28] sm:$0xf]  ;;  %v5757_v54 = vcombine.low %v4151_v10, %v4151_v10  ;;  %v4183_v28 = vld [vmem:[#allocation3 + $0x2c] sm:$0x1]  ;;  %v3819_v57 = vsel %vm465_vm0, %v3811_v53, %v3706_v11  ;;  %v6000_v49 = vpop.f32.mrf.mxu1 }
 0x2da   : > { %v5742_v37 = vcombine.low %v8330_v6, %v8332_v32  ;;  %v8338_v39 = vld [vmem:[#allocation3 + $0x28] sm:$0xf]  ;;  %v8342_v43 = vld [vmem:[#allocation3 + $0x2c] sm:$0x1]  ;;  %v3828_v50 = vsel %vm3822_vm5, %v3819_v57, %v3722_v20  ;;  %v3746_v15 = vrot.slane %v3640_v27, 4  ;;  %v3762_v62 = vrot.slane %v3640_v27, 5 }
 0x2db   : > { %v4191_v55 = vld [vmem:[#allocation3 + $0x28] sm:$0xe]  ;;  %v5780_v22 = vcombine.low %v8338_v39, %v4183_v28  ;;  %4372 = vrot.lane.b32.xlu0 %v5757_v54, %s6620_s29  ;;  %v3778_v0 = vrot.slane %v3640_v27, 6  ;;  %v6002_v29 = vpop.f32.mrf.mxu1  ;;  %v8352_v8 = vcombine.low %v4151_v10, %v8342_v43  ;;  %v3794_v46 = vrot.slane %v3640_v27, 7 }
 0x2dc   : > { %v5788_v26 = vcombine.low %v4191_v55, %v4183_v28  ;;  %v4274_v48 = vshll.u32 %v5742_v37, 16  ;;  %v3837_v44 = vsel %vm3831_vm7, %v3828_v50, %v3746_v15  ;;  %v4272_v3 = vshrl.u32 %v5742_v37, 16  ;;  %v4105_v29 = vld [vmem:[#allocation3 + $0x30] sm:$0xf] }
 0x2dd   : > { %v4572_v33 = vshll.u32 %v5780_v22, 16  ;;  %v3846_v36 = vsel %vm3840_vm9, %v3837_v44, %v3762_v62  ;;  %v6003_v12 = vpop.f32.mrf.mxu1  ;;  %v4570_v51 = vshrl.u32 %v5780_v22, 16 }
 0x2de   : > { %v8349_v60 = vrot.slane %v5788_v26, 1  ;;  %v4276_v61 = vrot.slane %v4274_v48, 1  ;;  %v3855_v16 = vsel %vm3849_vm11, %v3846_v36, %v3778_v0  ;;  %v4108_v48 = vld [vmem:[#allocation3 + $0x34] sm:$0x1] }
 0x2df   : > { %v3864_v35 = vsel %vm1911_vm8, %v3855_v16, %v3794_v46  ;;  %v6005_v41 = vpop.f32.mrf.mxu1  ;;  %v4574_v11 = vrot.slane %v4572_v33, 1 }
 0x2e0   : > { %v5802_v19 = vcombine.low %v8346_v9, %v8349_v60  ;;  %v4277_v4 = vor.u32 %v4276_v61, %v4272_v3  ;;  %v3879_v20 = vadd.f32 %v8074_v18, %v3864_v35 }
 0x2e1   : > { %v6006_v25 = vpop.f32.mrf.mxu1  ;;  %v4575_v27 = vor.u32 %v4574_v11, %v4570_v51 }
 0x2e2   : > { %4302 = vrot.lane.b32.xlu1 %v4277_v4, %s6620_s29  ;;  %v3887_v5 = vmax.f32 %v3879_v20, 0.0  ;;  %v6007_v10 = vadd.f32 %v6006_v25, %v6005_v41 }
 0x2e3   : > { %v6008_v53 = vpop.f32.mrf.mxu1 }
 0x2e4   : > { %v5895_v54 = vpack.c.bf16 %v3887_v5, %v3887_v5  ;;  %v3651_v37 = vadd.f32 %v6007_v10, %v8081_v56 }
 0x2e5   : > { %v6009_v28 = vpop.f32.mrf.mxu1 }
 0x2e6   : > { %4610 = vrot.lane.b32.xlu1 %v4575_v27, %s6620_s29  ;;  %v4033_v55 = vshrl.u32 %v5895_v54, 16  ;;  %v3691_v57 = vrot.slane %v3651_v37, 1  ;;  %v3707_v49 = vrot.slane %v3651_v37, 2  ;;  %v6010_v26 = vadd.f32 %v6009_v28, %v6008_v53  ;;  %v8378_v53 = vld [vmem:[%s8630_s5 + $0x118] sm:$0xff]  }
 0x2e7   : > { %v6011_v50 = vpop.f32.mrf.mxu1  ;;  %v4036_v62 = vshll.u32 %v5895_v54, 16  ;;  %v3723_v0 = vrot.slane %v3651_v37, 3  ;;  %6209 = vmatprep.subr.bf16.mxu0 %v8378_v53 }
 0x2e8   : > { %v4035_v15 = vrot.slane %v4033_v55, 7  ;;  %v3812_v22 = vsel %vm3805_vm4, %v3651_v37, %v3691_v57  ;;  %v3654_v33 = vadd.f32 %v6010_v26, %v8139_v59 }
 0x2e9   : > { %v3820_v44 = vsel %vm465_vm0, %v3812_v22, %v3707_v49  ;;  %v6012_v56 = vpop.f32.mrf.mxu1 }
 0x2ea   : > { %v4038_v46 = vor.u32 %v4036_v62, %v4035_v15  ;;  %v4039_v36 = vrot.slane %v4035_v15, 4  ;;  %v3829_v12 = vsel %vm3822_vm5, %v3820_v44, %v3723_v0  ;;  %v3747_v3 = vrot.slane %v3654_v33, 4 }
 0x2eb   : > { %v3763_v61 = vrot.slane %v3654_v33, 5  ;;  %v6014_v16 = vpop.f32.mrf.mxu1  ;;  %v3779_v4 = vrot.slane %v3654_v33, 6  ;;  %v3795_v20 = vrot.slane %v3654_v33, 7 }
 0x2ec   : > { %v4106_v35 = vsel %vm8089_vm12, %v4038_v46, %v4105_v29  ;;  %v4109_v41 = vsel %vm7779_vm3, %v4039_v36, %v4108_v48  ;;  %v3838_v11 = vsel %vm3831_vm7, %v3829_v12, %v3747_v3  ;;  %v3667_v46 = vpop.f32.mrf.mxu0  ;;  %v4139_v16 = vld [vmem:[#allocation3] sm:$0xe] }
 0x2ed   : > { %4107 = vst [vmem:[#allocation3 + $0x30] sm:$0xf] %v4106_v35  ;;  %4110 = vst [vmem:[#allocation3 + $0x34] sm:$0x1] %v4109_v41  ;;  %v6015_v59 = vpop.f32.mrf.mxu1  ;;  %v3847_v25 = vsel %vm3840_vm9, %v3838_v11, %v3763_v61 }
 0x2ee   : > { %v3856_v51 = vsel %vm3849_vm11, %v3847_v25, %v3779_v4  ;;  %v4111_v59 = vld [vmem:[#allocation3 + $0x38] sm:$0xf] }
 0x2ef   : > { %v6017_v5 = vpop.f32.mrf.mxu1  ;;  %v3865_v10 = vsel %vm1911_vm8, %v3856_v51, %v3795_v20  ;;  %v4114_v20 = vld [vmem:[#allocation3 + $0x3c] sm:$0x1] }
 0x2f0   : > { %v3880_v27 = vadd.f32 %v8074_v18, %v3865_v10 }
 0x2f1   : > { %v6018_v54 = vpop.f32.mrf.mxu1 }
 0x2f2   : > { %v6019_v37 = vadd.f32 %v6018_v54, %v6017_v5  ;;  %v3888_v28 = vmax.f32 %v3880_v27, 0.0 }
 0x2f3   : > { %v6020_v55 = vpop.f32.mrf.mxu1 }
 0x2f4   : > { %v3665_v57 = vadd.f32 %v6019_v37, %v8149_v24  ;;  %v4152_v49 = vld [vmem:[#allocation3 + $0x30] sm:$0xf]  ;;  %v8385_v50 = vld [vmem:[#allocation3 + $0x34] sm:$0x1]  ;;  %v5896_v15 = vpack.c.bf16 %v3888_v28, %v3888_v28 }
 0x2f5   : > { %v8383_v26 = vld [vmem:[#allocation3 + $0x30] sm:$0xf]  ;;  %v6021_v62 = vpop.f32.mrf.mxu1  ;;  %v5758_v0 = vcombine.low %v4152_v49, %v4152_v49  ;;  %v8389_v18 = vld [vmem:[#allocation3 + $0x34] sm:$0x1] }
 0x2f6   : > { %v5743_v22 = vcombine.low %v8383_v26, %v8385_v50  ;;  %v3692_v29 = vrot.slane %v3665_v57, 1  ;;  %v3708_v48 = vrot.slane %v3665_v57, 2  ;;  %v6022_v44 = vadd.f32 %v6021_v62, %v6020_v55  ;;  %v8398_v37 = vld [vmem:[#allocation3 + $0x30] sm:$0xf]  ;;  %v8400_v28 = vld [vmem:[#allocation3 + $0x34] sm:$0x1] }
 0x2f7   : > { %v4041_v33 = vshrl.u32 %v5896_v15, 16  ;;  %v3724_v56 = vrot.slane %v3665_v57, 3  ;;  %4374 = vrot.lane.b32.xlu1 %v5758_v0, %s6620_s29  ;;  %v4044_v36 = vshll.u32 %v5896_v15, 16  ;;  %v8394_v61 = vcombine.low %v4152_v49, %v8389_v18  ;;  %v6552_v55 = vld [vmem:[#allocation3 + $0x4] sm:$0x1] }
 0x2f8   : > { %v4281_v24 = vshll.u32 %v5743_v22, 16  ;;  %v3813_v12 = vsel %vm3805_vm4, %v3665_v57, %v3692_v29  ;;  %v3668_v3 = vadd.f32 %v6022_v44, %v3667_v46  ;;  %v4279_v4 = vshrl.u32 %v5743_v22, 16  ;;  %v4140_v62 = vld [vmem:[#allocation3 + $0x8] sm:$0xe] }
 0x2f9   : > { %v4043_v35 = vrot.slane %v4041_v33, 7  ;;  %v3821_v41 = vsel %vm465_vm0, %v3813_v12, %v3708_v48  ;;  %v5745_v57 = vcombine.low %v4139_v16, %v6552_v55  ;;  %v5781_v33 = vcombine.low %v8398_v37, %v8400_v28  ;;  %v4365_v12 = vpop.permute.xlu0 %4364  ;;  %v6553_v16 = vld [vmem:[%s8629_s4] ss:$0 sm:$0xff] }
 0x2fa   : > { %v4283_v11 = vrot.slane %v4281_v24, 1  ;;  %v3830_v25 = vsel %vm3822_vm5, %v3821_v41, %v3724_v56  ;;  %v3748_v51 = vrot.slane %v3668_v3, 4  ;;  %v3764_v5 = vrot.slane %v3668_v3, 5 }
 0x2fb   : > { %v4046_v10 = vor.u32 %v4044_v36, %v4043_v35  ;;  %v4047_v27 = vrot.slane %v4043_v35, 4  ;;  %v3780_v49 = vrot.slane %v3668_v3, 6  ;;  %v3796_v29 = vrot.slane %v3668_v3, 7  ;;  %v4295_v3 = vpop.permute.xlu1 %4294 }
 0x2fc   : > { %v4284_v54 = vor.u32 %v4283_v11, %v4279_v4  ;;  %v3839_v15 = vsel %vm3831_vm7, %v3830_v25, %v3748_v51  ;;  %v4407_v56 = vshll.u32 %v8098_v52, 16  ;;  %v5746_v24 = vcombine.low %v4140_v62, %v8102_v2 }
 0x2fd   : > { %v4112_v0 = vsel %vm8089_vm12, %v4046_v10, %v4111_v59  ;;  %v4115_v22 = vsel %vm7779_vm3, %v4047_v27, %v4114_v20  ;;  %v3848_v48 = vsel %vm3840_vm9, %v3839_v15, %v3764_v5  ;;  %v4414_v36 = vshll.u32 %v8168_v17, 16  ;;  %v6554_v59 = vld [vmem:[#allocation3] sm:$0xf] }
 0x2fe   : > { %4304 = vrot.lane.b32.xlu0 %v4284_v54, %s6620_s29  ;;  %4113 = vst [vmem:[#allocation3 + $0x38] sm:$0xf] %v4112_v0  ;;  %4116 = vst [vmem:[#allocation3 + $0x3c] sm:$0x1] %v4115_v22  ;;  %v3857_v44 = vsel %vm3849_vm11, %v3848_v48, %v3780_v49  ;;  %v4332_v41 = vrot.slane %v5745_v57, 1  ;;  %v4579_v11 = vshll.u32 %v5781_v33, 16  ;;  %v4654_v20 = vsel %vm2985_vm14, %v6554_v59, %v8046_v45  ;;  %v4493_v0 = vpop.permute.xlu0 %4492 }
 0x2ff   : > { %v3866_v46 = vsel %vm1911_vm8, %v3857_v44, %v3796_v29  ;;  %v4409_v25 = vrot.slane %v4407_v56, 1  ;;  %v4333_v51 = vrot.slane %v5746_v24, 1  ;;  %v4416_v5 = vrot.slane %v4414_v36, 1  ;;  %v4167_v44 = vld [vmem:[#allocation3 + $0x28] sm:$0xe] }
 0x300   : > { %v3881_v35 = vadd.f32 %v6553_v16, %v3866_v46  ;;  %v4405_v2 = vshrl.u32 %v8098_v52, 16  ;;  %v4657_v10 = vsel %vm2985_vm14, %v8100_v40, %v4295_v3  ;;  %v4412_v55 = vshrl.u32 %v8168_v17, 16  ;;  %v4117_v46 = vld [vmem:[#allocation3 + $0x40] sm:$0xf] }
 0x301   : > { %v4678_v57 = vsel %vm2985_vm14, %v4332_v41, %v4365_v12  ;;  %v4581_v48 = vrot.slane %v4579_v11, 1  ;;  %v5793_v56 = vcombine.low %v4654_v20, %v4657_v10  ;;  %v6530_v12 = vld [vmem:[%s8630_s5 + $0x110] sm:$0xff]   ;;  %v4192_v11 = vld [vmem:[#allocation3 + $0x30] sm:$0xe]  ;;  %v4120_v20 = vld [vmem:[#allocation3 + $0x44] sm:$0x1] }
 0x302   : > { %v3889_v4 = vmax.f32 %v3881_v35, 0.0  ;;  %v4410_v40 = vor.u32 %v4409_v25, %v4405_v2  ;;  %v4417_v24 = vor.u32 %v4416_v5, %v4412_v55  ;;  %v4577_v35 = vshrl.u32 %v5781_v33, 16 }
 0x303   : > { %v4367_v54 = vpop.permute.xlu1 %4366  ;;  %v5773_v5 = vcombine.low %v4167_v44, %v8342_v43  ;;  %v6531_v43 = vld [vmem:[%s8630_s5 + $0x108] sm:$0xff]  }
 0x304   : > { %v5897_v27 = vpack.c.bf16 %v3889_v4, %v3889_v4  ;;  %v4681_v15 = vsel %vm2985_vm14, %v4333_v51, %v4367_v54  ;;  %v8443_v59 = vsel %vm2985_vm14, %v4410_v40, %v4493_v0 }
 0x305   : > { %v4153_v49 = vld [vmem:[#allocation3 + $0x38] sm:$0xf]  ;;  %v8429_v45 = vld [vmem:[#allocation3 + $0x3c] sm:$0x1]  ;;  %v5794_v52 = vcombine.low %v4678_v57, %v4681_v15 }
 0x306   : > { %v8427_v62 = vld [vmem:[#allocation3 + $0x38] sm:$0xf]  ;;  %v4049_v22 = vshrl.u32 %v5897_v27, 16  ;;  %v5759_v29 = vcombine.low %v4153_v49, %v4153_v49  ;;  %v8433_v36 = vld [vmem:[#allocation3 + $0x3c] sm:$0x1]  ;;  %v4052_v16 = vshll.u32 %v5897_v27, 16  ;;  %v4582_v27 = vor.u32 %v4581_v48, %v4577_v35 }
 0x307   : > { %v5744_v17 = vcombine.low %v8427_v62, %v8429_v45  ;;  %5188 = vmatprep.mubr.bf16.mxu0 %v5794_v52  ;;  %v4495_v41 = vpop.permute.xlu1 %4494  ;;  %v8440_v4 = vcombine.low %v4153_v49, %v8433_v36  ;;  %v8449_v2 = vld [vmem:[#allocation3 + $0x38] sm:$0xf]  ;;  %v4185_v55 = vld [vmem:[#allocation3 + $0x3c] sm:$0x1] }
 0x308   : > { %v4051_v3 = vrot.slane %v4049_v22, 7  ;;  %4376 = vrot.lane.b32.xlu0 %v5759_v29, %s6620_s29  ;;  %v8446_v51 = vsel %vm2985_vm14, %v4417_v24, %v4495_v41  ;;  %5189 = vmatmul.mubr.bf16.vlgmr.msra.gmra.mxu0 %v5793_v56  ;;  %v4193_v57 = vld [vmem:[#allocation3 + $0x38] sm:$0xe]  ;;  %v5789_v22 = vcombine.low %v4192_v11, %v8400_v28  ;;  %v5782_v44 = vcombine.low %v8449_v2, %v4185_v55 }
 0x309   : > { %v4288_v25 = vshll.u32 %v5744_v17, 16  ;;  %v5795_v54 = vcombine.low %v8443_v59, %v8446_v51  ;;  %6210 = vmatpush3.bf16.msra.mxu0 %v8378_v53  ;;  %v4286_v15 = vshrl.u32 %v5744_v17, 16  ;;  %v5790_v40 = vcombine.low %v4193_v57, %v4185_v55 }
 0x30a   : > { %v4054_v33 = vor.u32 %v4052_v16, %v4051_v3  ;;  %v4055_v10 = vrot.slane %v4051_v3, 4  ;;  %v6023_v49 = vpop.f32.mrf.mxu1  ;;  %6211 = vmatprep.subr.bf16.mxu0 %v6530_v12  ;;  %v4488_v56 = vrot.slane %v5773_v5, 1  ;;  %v8468_v63 = vrot.slane %v5789_v22, 1  ;;  %v8477_v16 = vld [vmem:[#allocation3 + $0x4c] sm:$0x1] }
 0x30b   : > { %v4290_v0 = vrot.slane %v4288_v25, 1  ;;  %v8470_v28 = vrot.slane %v5790_v40, 1  ;;  %v4586_v3 = vshll.u32 %v5782_v44, 16  ;;  %v4584_v57 = vshrl.u32 %v5782_v44, 16 }
 0x30c   : > { %v4118_v29 = vsel %vm8089_vm12, %v4054_v33, %v4117_v46  ;;  %v4121_v52 = vsel %vm7779_vm3, %v4055_v10, %v4120_v20  ;;  %4612 = vrot.lane.b32.xlu0 %v4582_v27, %s6620_s29  ;;  %v6024_v53 = vpop.f32.mrf.mxu1  ;;  %v8473_v46 = vld [vmem:[#allocation3 + $0x48] sm:$0xf]  ;;  %v4168_v27 = vld [vmem:[#allocation3 + $0x30] sm:$0xe] }
 0x30d   : > { %4119 = vst [vmem:[#allocation3 + $0x40] sm:$0xf] %v4118_v29  ;;  %4122 = vst [vmem:[#allocation3 + $0x44] sm:$0x1] %v4121_v52  ;;  %v4291_v48 = vor.u32 %v4290_v0, %v4286_v15  ;;  %6212 = vmatpush3.bf16.msra.mxu0 %v6530_v12  ;;  %v5807_v12 = vcombine.low %v8468_v63, %v8470_v28  ;;  %v5784_v35 = vcombine.low %v8473_v46, %v8477_v16  ;;  %v4169_v0 = vld [vmem:[#allocation3 + $0x38] sm:$0xe] }
 0x30e   : > { %v6026_v17 = vpop.f32.mrf.mxu1  ;;  %6213 = vmatprep.subr.bf16.mxu0 %v6531_v43  ;;  %v4588_v5 = vrot.slane %v4586_v3, 1  ;;  %v5774_v52 = vcombine.low %v4168_v27, %v8389_v18 }
 0x30f   : > { %4306 = vrot.lane.b32.xlu1 %v4291_v48, %s6620_s29  ;;  %v4600_v15 = vshll.u32 %v5784_v35, 16  ;;  %v5775_v48 = vcombine.low %v4169_v0, %v8433_v36  ;;  %v4598_v40 = vshrl.u32 %v5784_v35, 16  ;;  %v4297_v17 = vpop.permute.xlu0 %4296  ;;  %v4428_v0 = vshll.u32 %v8302_v38, 16 }
 0x310   : > { %4500 = vrot.lane.b32.xlu0 %v4488_v56, %s6620_s29  ;;  %v6027_v24 = vpop.f32.mrf.mxu1  ;;  %v4489_v44 = vrot.slane %v5774_v52, 1 }
 0x311   : > { %6214 = vmatpush3.bf16.msra.mxu0 %v6531_v43  ;;  %v4589_v43 = vor.u32 %v4588_v5, %v4584_v57  ;;  %v4602_v56 = vrot.slane %v4600_v15, 1  ;;  %v4490_v3 = vrot.slane %v5775_v48, 1  ;;  %v4421_v15 = vshll.u32 %v8251_v7, 16 }
 0x312   : > { %6215 = vmatprep.subr.bf16.mxu0 %v6533_v42  ;;  %v4430_v52 = vrot.slane %v4428_v0, 1 }
 0x313   : > { %v4605_v5 = vpop.permute.xlu0 %4604 }
 0x314   : > { %v4154_v41 = vld [vmem:[#allocation3 + $0x40] sm:$0xf]  ;;  %v8483_v20 = vld [vmem:[#allocation3 + $0x44] sm:$0x1]  ;;  %v4726_v35 = vsel %vm2985_vm14, %v8170_v21, %v4605_v5 }
 0x315   : > { %v8481_v11 = vld [vmem:[#allocation3 + $0x40] sm:$0xf]  ;;  %v5760_v25 = vcombine.low %v4154_v41, %v4154_v41  ;;  %v4162_v10 = vld [vmem:[#allocation3 + $0x44] sm:$0x1]  ;;  %6216 = vmatpush3.bf16.msra.mxu0 %v6533_v42 }
 0x316   : > { %v5783_v33 = vcombine.low %v8481_v11, %v8483_v20  ;;  %v8487_v55 = vcombine.low %v4154_v41, %v4162_v10  ;;  %v4170_v24 = vld [vmem:[#allocation3 + $0x40] sm:$0xe]  ;;  %v4603_v41 = vor.u32 %v4602_v56, %v4598_v40  ;;  %v4419_v40 = vshrl.u32 %v8251_v7, 16 }
 0x317   : > { %4378 = vrot.lane.b32.xlu1 %v5760_v25, %s6620_s29  ;;  %v5776_v18 = vcombine.low %v4170_v24, %v4162_v10  ;;  %v4141_v10 = vld [vmem:[#allocation3 + $0x10] sm:$0xe] }
 0x318   : > { %v4593_v49 = vshll.u32 %v5783_v33, 16  ;;  %v4591_v22 = vshrl.u32 %v5783_v33, 16  ;;  %v6556_v24 = vld [vmem:[#allocation3 + $0x10] sm:$0xf] }
 0x319   : > { %v4491_v33 = vrot.slane %v5776_v18, 1 }
 0x31a   : > { %v4595_v29 = vrot.slane %v4593_v49, 1  ;;  %v4142_v49 = vld [vmem:[#allocation3 + $0x18] sm:$0xe] }
 0x31b   : > { %4614 = vrot.lane.b32.xlu1 %v4589_v43, %s6620_s29  ;;  %v6555_v43 = vld [vmem:[#allocation3 + $0x14] sm:$0x1] }
 0x31c   : > { %v4596_v53 = vor.u32 %v4595_v29, %v4591_v22  ;;  %v4369_v42 = vpop.permute.xlu1 %4368  ;;  %v5747_v21 = vcombine.low %v4141_v10, %v6555_v43  ;;  %v5748_v22 = vcombine.low %v4142_v49, %v8255_v30  ;;  %v4660_v30 = vsel %vm2985_vm14, %v6556_v24, %v4297_v17  ;;  %v4143_v10 = vld [vmem:[#allocation3 + $0x20] sm:$0xe]  ;;  %v4144_v49 = vld [vmem:[#allocation3 + $0x28] sm:$0xe] }
 0x31d   : > { %v5750_v0 = vcombine.low %v4144_v49, %v8332_v32  ;;  %v4145_v32 = vld [vmem:[#allocation3 + $0x30] sm:$0xe]  ;;  %v4435_v24 = vshll.u32 %v8352_v8, 16  ;;  %v4194_v49 = vld [vmem:[#allocation3 + $0x40] sm:$0xe] }
 0x31e   : > { %4616 = vrot.lane.b32.xlu0 %v4596_v53, %s6620_s29  ;;  %v4334_v53 = vrot.slane %v5747_v21, 1  ;;  %v4335_v48 = vrot.slane %v5748_v22, 1  ;;  %v5791_v31 = vcombine.low %v4194_v49, %v8483_v20 }
 0x31f   : > { %4502 = vrot.lane.b32.xlu1 %v4489_v44, %s6620_s29  ;;  %v4497_v29 = vpop.permute.xlu0 %4496  ;;  %v4337_v22 = vrot.slane %v5750_v0, 1 }
 0x320   : > { %v4684_v56 = vsel %vm2985_vm14, %v4334_v53, %v4369_v42 }
 0x322   : > { %4504 = vrot.lane.b32.xlu0 %v4490_v3, %s6620_s29 }
 0x323   : > { %4618 = vrot.lane.b32.xlu1 %v4603_v41, %s6620_s29 }
 0x324   : > { %v4299_v25 = vpop.permute.xlu1 %4298 }
 0x325   : > { %v4663_v59 = vsel %vm2985_vm14, %v8253_v1, %v4299_v25 }
 0x326   : > { %v5798_v5 = vcombine.low %v4660_v30, %v4663_v59  ;;  %v4146_v59 = vld [vmem:[#allocation3 + $0x38] sm:$0xe] }
 0x327   : > { %4506 = vrot.lane.b32.xlu1 %v4491_v33, %s6620_s29 }
 0x328   : > { %v4607_v36 = vpop.permute.xlu1 %4606 }
 0x329   : > { %v4729_v27 = vsel %vm2985_vm14, %v8260_v58, %v4607_v36  ;;  %v4423_v58 = vrot.slane %v4421_v15, 1  ;;  %v5749_v15 = vcombine.low %v4143_v10, %v8306_v34 }
 0x32a   : > { %v5796_v57 = vcombine.low %v4726_v35, %v4729_v27 }
 0x32b   : > { %v4424_v3 = vor.u32 %v4423_v58, %v4419_v40  ;;  %v4336_v21 = vrot.slane %v5749_v15, 1 }
 0x32c   : > { %5249 = vmatprep.mubr.bf16.mxu1 %v5796_v57 }
 0x32d   : > { %5250 = vmatmul.mubr.bf16.vlgmr.msra.gmra.mxu1 %v5795_v54  ;;  %v4426_v54 = vshrl.u32 %v8302_v38, 16  ;;  %v4708_v7 = vsel %vm2985_vm14, %v4424_v3, %v4497_v29 }
 0x32f   : > { %v4431_v18 = vor.u32 %v4430_v52, %v4426_v54 }
 0x335   : > { %v4371_v51 = vpop.permute.xlu0 %4370 }
 0x336   : > { %v4687_v44 = vsel %vm2985_vm14, %v4335_v48, %v4371_v51  ;;  %v5751_v51 = vcombine.low %v4145_v32, %v8385_v50 }
 0x337   : > { %v5799_v41 = vcombine.low %v4684_v56, %v4687_v44 }
 0x338   : > { %v4499_v36 = vpop.permute.xlu1 %4498  ;;  %v4338_v44 = vrot.slane %v5751_v51, 1 }
 0x339   : > { %v4711_v35 = vsel %vm2985_vm14, %v4431_v18, %v4499_v36  ;;  %5195 = vmatprep.mubr.bf16.mxu0 %v5799_v41 }
 0x33a   : > { %v5800_v1 = vcombine.low %v4708_v7, %v4711_v35  ;;  %5196 = vmatmul.mubr.bf16.gmra.mxu0 %v5798_v5  ;;  %v4437_v7 = vrot.slane %v4435_v24, 1 }
 0x33d   : > { %v4301_v38 = vpop.permute.xlu0 %4300 }
 0x33e   : > { %v4666_v52 = vsel %vm2985_vm14, %v8304_v13, %v4301_v38  ;;  %v4442_v13 = vshll.u32 %v8394_v61, 16 }
 0x340   : > { %v4444_v35 = vrot.slane %v4442_v13, 1 }
 0x341   : > { %v4609_v42 = vpop.permute.xlu0 %4608 }
 0x342   : > { %v4732_v27 = vsel %vm2985_vm14, %v8308_v23, %v4609_v42 }
 0x34d   : > { %v4373_v43 = vpop.permute.xlu0 %4372 }
 0x34e   : > { %v4690_v23 = vsel %vm2985_vm14, %v4336_v21, %v4373_v43 }
 0x354   : > { %v4303_v25 = vpop.permute.xlu1 %4302 }
 0x355   : > { %v4669_v29 = vsel %vm2985_vm14, %v8330_v6, %v4303_v25  ;;  %v5752_v6 = vcombine.low %v4146_v59, %v8429_v45 }
 0x356   : > { %v5803_v48 = vcombine.low %v4666_v52, %v4669_v29  ;;  %v4447_v29 = vshrl.u32 %v8440_v4, 16 }
 0x357   : > { %v4339_v30 = vrot.slane %v5752_v6, 1 }
 0x358   : > { %v4611_v33 = vpop.permute.xlu1 %4610 }
 0x359   : > { %v4735_v17 = vsel %vm2985_vm14, %v8338_v39, %v4611_v33  ;;  %v4440_v33 = vshrl.u32 %v8394_v61, 16 }
 0x35a   : > { %v5801_v57 = vcombine.low %v4732_v27, %v4735_v17 }
 0x35b   : > { %v4445_v17 = vor.u32 %v4444_v35, %v4440_v33 }
 0x35c   : > { %5256 = vmatprep.mubr.bf16.mxu1 %v5801_v57  ;;  %v4449_v57 = vshll.u32 %v8440_v4, 16  ;;  %v4650_v4 = vrot.slane %v5791_v31, 1 }
 0x35d   : > { %5257 = vmatmul.mubr.bf16.gmra.mxu1 %v5800_v1 }
 0x35e   : > { %v4451_v43 = vrot.slane %v4449_v57, 1 }
 0x369   : > { %v4375_v58 = vpop.permute.xlu1 %4374 }
 0x36a   : > { %v4693_v39 = vsel %vm2985_vm14, %v4337_v22, %v4375_v58 }
 0x36b   : > { %v5804_v53 = vcombine.low %v4690_v23, %v4693_v39  ;;  %v4454_v23 = vshrl.u32 %v8487_v55, 16 }
 0x36d   : > { %5202 = vmatprep.mubr.bf16.mxu0 %v5804_v53 }
 0x36e   : > { %5203 = vmatmul.mubr.bf16.gmra.mxu0 %v5803_v48 }
 0x370   : > { %v4305_v34 = vpop.permute.xlu0 %4304 }
 0x371   : > { %v4672_v50 = vsel %vm2985_vm14, %v8383_v26, %v4305_v34 }
 0x37a   : > { %v4377_v40 = vpop.permute.xlu0 %4376 }
 0x37b   : > { %v4696_v18 = vsel %vm2985_vm14, %v4338_v44, %v4377_v40 }
 0x37e   : > { %v4613_v56 = vpop.permute.xlu0 %4612 }
 0x37f   : > { %v4738_v25 = vsel %vm2985_vm14, %v8398_v37, %v4613_v56  ;;  %v4456_v37 = vshll.u32 %v8487_v55, 16 }
 0x381   : > { %v4307_v54 = vpop.permute.xlu1 %4306  ;;  %v4458_v14 = vrot.slane %v4456_v37, 1 }
 0x382   : > { %v4675_v3 = vsel %vm2985_vm14, %v8427_v62, %v4307_v54  ;;  %v4501_v1 = vpop.permute.xlu0 %4500  ;;  %v4433_v62 = vshrl.u32 %v8352_v8, 16 }
 0x383   : > { %v5808_v36 = vcombine.low %v4672_v50, %v4675_v3 }
 0x384   : > { %v4438_v26 = vor.u32 %v4437_v7, %v4433_v62 }
 0x386   : > { %v4714_v15 = vsel %vm2985_vm14, %v4438_v26, %v4501_v1 }
 0x389   : > { %v4379_v41 = vpop.permute.xlu1 %4378 }
 0x38a   : > { %v4699_v5 = vsel %vm2985_vm14, %v4339_v30, %v4379_v41 }
 0x38b   : > { %v5809_v45 = vcombine.low %v4696_v18, %v4699_v5 }
 0x38d   : > { %5209 = vmatprep.mubr.bf16.mxu0 %v5809_v45  ;;  %v4615_v38 = vpop.permute.xlu1 %4614 }
 0x38e   : > { %v4741_v42 = vsel %vm2985_vm14, %v8449_v2, %v4615_v38  ;;  %5210 = vmatmul.mubr.bf16.gmra.mxu0 %v5808_v36  ;;  %v4195_v2 = vld [vmem:[#allocation3 + $0x48] sm:$0xe] }
 0x38f   : > { %v5806_v27 = vcombine.low %v4738_v25, %v4741_v42  ;;  %6217 = vmatprep.mubr.msk.bf16.mxu0 %vm2985_vm14, %v5797_v47  ;;  %v5792_v47 = vcombine.low %v4195_v2, %v8477_v16  ;;  %v4452_v16 = vor.u32 %v4451_v43, %v4447_v29 }
 0x390   : > { %v4617_v10 = vpop.permute.xlu0 %4616 }
 0x391   : > { %5263 = vmatprep.mubr.bf16.mxu1 %v5806_v27  ;;  %v4503_v8 = vpop.permute.xlu1 %4502  ;;  %v4744_v22 = vsel %vm2985_vm14, %v8481_v11, %v4617_v10  ;;  %v4459_v11 = vor.u32 %v4458_v14, %v4454_v23  ;;  %v4651_v52 = vrot.slane %v5792_v47, 1 }
 0x392   : > { %v4717_v61 = vsel %vm2985_vm14, %v4445_v17, %v4503_v8 }
 0x393   : > { %v5805_v0 = vcombine.low %v4714_v15, %v4717_v61 }
 0x394   : > { %v4505_v20 = vpop.permute.xlu0 %4504 }
 0x395   : > { %5264 = vmatmul.mubr.bf16.gmra.mxu1 %v5805_v0  ;;  %v4619_v21 = vpop.permute.xlu1 %4618  ;;  %v4720_v53 = vsel %vm2985_vm14, %v4452_v16, %v4505_v20  ;;  %v5853_v0 = vld [vmem:[%s8631_s6] ss:$0 sm:$0xff] }
 0x396   : > { %v4747_v58 = vsel %vm2985_vm14, %v8473_v46, %v4619_v21  ;;  %6218 = vmatmul.mubr.msk.bf16.vlgmr.msra.gmra.mxu0 %vm2985_vm14, %v5802_v19  ;;  %v5812_v19 = vcombine.low %v4650_v4, %v4651_v52 }
 0x397   : > { %v5811_v39 = vcombine.low %v4744_v22, %v4747_v58  ;;  %6221 = vmatprep.mubr.msk.bf16.mxu0 %vm2985_vm14, %v5807_v12 }
 0x399   : > { %5270 = vmatprep.mubr.bf16.mxu1 %v5811_v39  ;;  %v4507_v46 = vpop.permute.xlu1 %4506 }
 0x39a   : > { %v4723_v9 = vsel %vm2985_vm14, %v4459_v11, %v4507_v46 }
 0x39b   : > { %v5810_v60 = vcombine.low %v4720_v53, %v4723_v9 }
 0x39d   : > { %5271 = vmatmul.mubr.bf16.gmra.mxu1 %v5810_v60 }
 0x39e   : > { %6222 = vmatmul.mubr.msk.bf16.gmra.mxu0 %vm2985_vm14, %v5812_v19 }
 0x3c8   : > { %v6063_v55 = vpop.f32.mrf.mxu0 }
 0x3ca   : > { %v6064_v48 = vpop.f32.mrf.mxu0 }
 0x3cb   : > { %v6065_v63 = vadd.f32 %v6064_v48, %v6063_v55 }
 0x3cc   : > { %v6066_v28 = vpop.f32.mrf.mxu0 }
 0x3ce   : > { %v6067_v12 = vpop.f32.mrf.mxu0 }
 0x3ed   : > { %v6103_v34 = vpop.f32.mrf.mxu1 }
 0x3ef   : > { %v6104_v32 = vpop.f32.mrf.mxu1 }
 0x3f0   : > { %v6105_v40 = vadd.f32 %v6104_v32, %v6103_v34 }
 0x3f1   : > { %v6106_v59 = vpop.f32.mrf.mxu1 }
 0x3f2   : > { %v5252_v51 = vadd.f32 %v6105_v40, %v6065_v63 }
 0x3f3   : > { %v6107_v6 = vpop.f32.mrf.mxu1 }
 0x3fa   : > { %v6069_v54 = vpop.f32.mrf.mxu0 }
 0x3fc   : > { %v6070_v56 = vpop.f32.mrf.mxu0 }
 0x3fd   : > { %v6071_v44 = vadd.f32 %v6070_v56, %v6069_v54 }
 0x3fe   : > { %v6072_v24 = vpop.f32.mrf.mxu0 }
 0x400   : > { %v6073_v30 = vpop.f32.mrf.mxu0 }
 0x41d   : > { %v6109_v13 = vpop.f32.mrf.mxu1 }
 0x41f   : > { %v6110_v3 = vpop.f32.mrf.mxu1 }
 0x420   : > { %v6111_v1 = vadd.f32 %v6110_v3, %v6109_v13 }
 0x421   : > { %v6112_v41 = vpop.f32.mrf.mxu1 }
 0x422   : > { %v5259_v42 = vadd.f32 %v6111_v1, %v6071_v44 }
 0x423   : > { %v6113_v18 = vpop.f32.mrf.mxu1 }
 0x42e   : > { %v6075_v5 = vpop.f32.mrf.mxu0 }
 0x430   : > { %v6076_v50 = vpop.f32.mrf.mxu0 }
 0x431   : > { %v6077_v22 = vadd.f32 %v6076_v50, %v6075_v5 }
 0x432   : > { %v6078_v45 = vpop.f32.mrf.mxu0 }
 0x434   : > { %v6079_v36 = vpop.f32.mrf.mxu0 }
 0x44e   : > { %v6081_v7 = vpop.f32.mrf.mxu0 }
 0x450   : > { %v6082_v35 = vpop.f32.mrf.mxu0 }
 0x451   : > { %v6083_v53 = vadd.f32 %v6082_v35, %v6081_v7 }
 0x452   : > { %v6084_v38 = vpop.f32.mrf.mxu0 }
 0x454   : > { %v6085_v25 = vpop.f32.mrf.mxu0 }
 0x455   : > { %v6115_v62 = vpop.f32.mrf.mxu1 }
 0x456   : > { %v6219_v33 = vpop.f32.mrf.mxu0 }
 0x457   : > { %v5320_v27 = vadd.f32 %v6219_v33, %v5259_v42  ;;  %v6116_v26 = vpop.f32.mrf.mxu1 }
 0x458   : > { %v5312_v17 = vpop.f32.mrf.mxu0  ;;  %v6117_v49 = vadd.f32 %v6116_v26, %v6115_v62 }
 0x459   : > { %v5344_v57 = vrot.slane %v5320_v27, 1  ;;  %v5352_v37 = vrot.slane %v5320_v27, 2  ;;  %v5313_v10 = vadd.f32 %v5312_v17, %v5252_v51  ;;  %v6118_v8 = vpop.f32.mrf.mxu1  ;;  %v5360_v15 = vrot.slane %v5320_v27, 3 }
 0x45a   : > { %v6220_v2 = vpop.f32.mrf.mxu0  ;;  %v5266_v46 = vadd.f32 %v6117_v49, %v6077_v22 }
 0x45b   : > { %v5368_v61 = vsel %vm3805_vm4, %v5320_v27, %v5344_v57  ;;  %v5343_v43 = vrot.slane %v5313_v10, 1  ;;  %v5351_v14 = vrot.slane %v5313_v10, 2  ;;  %v6119_v31 = vpop.f32.mrf.mxu1  ;;  %v5359_v58 = vrot.slane %v5313_v10, 3 }
 0x45c   : > { %v5372_v47 = vsel %vm465_vm0, %v5368_v61, %v5352_v37  ;;  %v5315_v21 = vpop.f32.mrf.mxu0 }
 0x45d   : > { %v5376_v29 = vsel %vm3822_vm5, %v5372_v47, %v5360_v15  ;;  %v5367_v23 = vsel %vm3805_vm4, %v5313_v10, %v5343_v43  ;;  %v6121_v20 = vpop.f32.mrf.mxu1 }
 0x45e   : > { %v5387_v39 = vadd.f32 %v5853_v0, %v5376_v29  ;;  %v5371_v16 = vsel %vm465_vm0, %v5367_v23, %v5351_v14  ;;  %v6223_v11 = vpop.f32.mrf.mxu0 }
 0x45f   : > { %v5375_v4 = vsel %vm3822_vm5, %v5371_v16, %v5359_v58  ;;  %v6122_v52 = vpop.f32.mrf.mxu1 }
 0x460   : > { %v5391_v9 = vmax.f32 %v5387_v39, 0.0  ;;  %v5386_v60 = vadd.f32 %v5853_v0, %v5375_v4  ;;  %v6123_v19 = vadd.f32 %v6122_v52, %v6121_v20  ;;  %v5326_v55 = vpop.f32.mrf.mxu0 }
 0x461   : > { %v5327_v48 = vadd.f32 %v5326_v55, %v5266_v46  ;;  %v6124_v63 = vpop.f32.mrf.mxu1 }
 0x462   : > { %v5390_v28 = vmax.f32 %v5386_v60, 0.0  ;;  %v5273_v12 = vadd.f32 %v6123_v19, %v6083_v53  ;;  %v6224_v34 = vpop.f32.mrf.mxu0  ;;  %v5395_v56 = vsel %vm3831_vm7, %v5391_v9, 0.0 }
 0x463   : > { %v5345_v32 = vrot.slane %v5327_v48, 1  ;;  %v5353_v40 = vrot.slane %v5327_v48, 2  ;;  %v6125_v59 = vpop.f32.mrf.mxu1  ;;  %v5361_v44 = vrot.slane %v5327_v48, 3 }
 0x464   : > { %v5334_v51 = vadd.f32 %v6223_v11, %v5273_v12  ;;  %v5329_v6 = vpop.f32.mrf.mxu0  ;;  %v5394_v54 = vsel %vm3831_vm7, %v5390_v28, 0.0 }
 0x465   : > { %v5369_v24 = vsel %vm3805_vm4, %v5327_v48, %v5345_v32  ;;  %v5396_v30 = vadd.f32 %v5395_v56, %v5394_v54 }
 0x466   : > { %v5346_v13 = vrot.slane %v5334_v51, 1  ;;  %v5354_v3 = vrot.slane %v5334_v51, 2  ;;  %v5373_v41 = vsel %vm465_vm0, %v5369_v24, %v5353_v40  ;;  %v5362_v5 = vrot.slane %v5334_v51, 3 }
 0x467   : > { %v5377_v18 = vsel %vm3822_vm5, %v5373_v41, %v5361_v44 }
 0x468   : > { %v5370_v50 = vsel %vm3805_vm4, %v5334_v51, %v5346_v13  ;;  %v5388_v45 = vadd.f32 %v5853_v0, %v5377_v18 }
 0x469   : > { %v5374_v36 = vsel %vm465_vm0, %v5370_v50, %v5354_v3 }
 0x46a   : > { %v5392_v7 = vmax.f32 %v5388_v45, 0.0  ;;  %v5378_v35 = vsel %vm3822_vm5, %v5374_v36, %v5362_v5 }
 0x46b   : > { %v5389_v1 = vadd.f32 %v5853_v0, %v5378_v35 }
 0x46c   : > { %v5397_v38 = vsel %vm3831_vm7, %v5392_v7, 0.0 }
 0x46d   : > { %v5393_v25 = vmax.f32 %v5389_v1, 0.0  ;;  %v5398_v62 = vadd.f32 %v5397_v38, %v5396_v30 }
 0x46f   : > { %v5399_v42 = vsel %vm3831_vm7, %v5393_v25, 0.0 }
 0x470   : > { %v5400_v33 = vadd.f32 %v5399_v42, %v5398_v62 }
 0x472   : > { %v5401_v27 = vrot.slane %v5400_v33, 4 }
 0x474   : > { %v5402_v26 = vadd.f32 %v5401_v27, %v5400_v33 }
 0x476   : > { %v5403_v17 = vrot.slane %v5402_v26, 2 }
 0x478   : > { %v5404_v57 = vadd.f32 %v5403_v17, %v5402_v26 }
 0x47a   : > { %v5405_v37 = vrot.slane %v5404_v57, 1 }
 0x47c   : > { %v5406_v10 = vadd.f32 %v5405_v37, %v5404_v57 }
 0x47e   : > { %5407 = vst [vmem:[%s270_s17] sm:$0x1] %v5406_v10 }
 0x47f   : > { %6570 = shalt.err (!%p6567_p3)
}
 0x480   : > { %s6571_s14 = scalar_lea.hbm %s5419_s21, 16  ;;  %s6575_s16 = scalar_lea.hbm %s8632_s7, 32 }
 0x481   : > { %p6572_p4 = scmp.ne.s32.totalorder %s5419_s21, %s6571_s14  ;;  %p6576_p9 = scmp.lt.s32.totalorder %s5419_s21, %s8632_s7 }
 0x482   : > { %p6577_p10 = scmp.lt.s32.totalorder %s6575_s16, %s6571_s14 }
 0x483   : > { %p6573_p7 = pnand %p6572_p4, %p6702_p5 }
 0x484   : > { %p6578_p11 = por %p6577_p10, %p6576_p9 }
 0x485   : > { %p6574_p8 = pneg %p6573_p7 }
 0x487   : > { %p6579_p12 = pnand %p6578_p11, %p6574_p8 }
 0x489   : > { %6582 = shalt.err (!%p6579_p12)
}
 0x48a   : > { %6226 = dma.vmem_to_hbm [thread:$0]  (%p6702_p5), %s5422_s18, 16, %s5419_s21, %s5409_s22  }
 0x48b PF: > { %p6232_p13 = scmp.ge.s32.totalorder %s6617_s27, 2  ;;  %s5433_s19 = sand.u32 1, %s6605_s24  }
 0x48c   : > { %s5434_s20 = scalar_lea.sflag [#allocation5], %s5433_s19 }
 0x48d   : > { %p6229_p0 = pnand %p6232_p13, %p6706_p6 }
 0x48f   : > { %p6230_p1 = pneg %p6229_p0 }
 0x491   : > { %6600 = dma.done.wait (%p6230_p1), %s5434_s20, 16  }
 0x492   : > { %6602 = vsyncadd (%p6230_p1), %s5434_s20, 4294967280  ;;  %p17_p2 = scmp.ge.s32.totalorder %s6689_s30, 4   ;;  %s8687_s24 = smov %s6609_s25 }
 0x493   : > { %s8688_s25 = smov %s6613_s26  ;;  %s8689_s26 = smov %s6700_s10 }
 0x494   : > { %s8690_s27 = smov %s6689_s30  ;;  %19 = sbr.rel (!%p17_p2) target bundleno = 3 (0x3), region = 89 }
 0x499   :  { %5438 = vsyncpa [#allocation5], 1 }
 0x49a   :  { %5440 = vsyncpa [#allocation5 + $0x1], 1 }

</bundles_post_ra>
